<compile_context>
chip_gen: v6e
topology: v6e:2x2x1
jax: 0.10.0
libtpu: 0.0.40
codegen_flags: <defaults>
</compile_context>

<pallas_src>
import functools

import jax
import jax.numpy as jnp
from jax import lax
from jax.experimental import pallas as pl
from jax.experimental.pallas import tpu as pltpu


# ---------------------------------------------------------------------------
# Fused forward kernel
# ---------------------------------------------------------------------------
def _elmo_kernel(tok_ref, embw_ref, s512_ref, sepi_ref,
                 preds_ref, comb_ref, *, B, T, H, V):
    N = T * B
    TWOH = 2 * H
    G4, G16 = 4 * H, 16 * H
    f32 = jnp.float32

    def mm(a, b):
        return jnp.dot(a, b, preferred_element_type=f32)

    # ---- static views into the two consolidated weight slabs ---------------
    w1f = s512_ref[0:H, :]                       # (H, 16H) L1-fwd input->gate
    w1b = s512_ref[H:TWOH, :]                    # (H, 16H) L1-bwd input->gate
    wbig = s512_ref[TWOH:6 * H, :]               # (4H,16H) recurrent + L1->L2
    bias = s512_ref[6 * H:6 * H + 1, :]          # (1, 16H) all gate biases

    wz = sepi_ref[0:G4, 0:G4]                    # (4H, 4H) comb_w@lf_w folds
    head_w = sepi_ref[G4:2 * G4, 0:2 * V]        # (4H, 2V) both output heads
    lf_e_w = sepi_ref[2 * G4:2 * G4 + H, 0:H]    # (H, H)   lf_w[:H]
    hb_row = 2 * G4 + H
    head_b = sepi_ref[hb_row:hb_row + 1, 0:2 * V]
    lf_b = sepi_ref[hb_row + 8:hb_row + 9, 0:H]

    # ---- prologue: embedding gather (exact one-hot matmul) + hoisted gates --
    tok = tok_ref[...]                                              # (N, 1)
    onehot = (tok == lax.broadcasted_iota(jnp.int32, (N, V), 1)).astype(f32)
    e = mm(onehot, embw_ref[...])                                   # (N, H)
    pgf = mm(e, w1f)                                                # (N, 16H)
    pgb = mm(e, w1b)                                                # (N, 16H)
    # Per-step layer-1 addend: fwd pre-gates at t + bwd pre-gates at T-1-t +
    # all biases (b1, b2 and the proj_b folds are pre-summed into `bias`).
    pg = [pgf[s * B:(s + 1) * B] + pgb[(T - 1 - s) * B:(T - s) * B] + bias
          for s in range(T)]

    # ---- wavefront recurrence: layer-2 runs one step behind layer-1 ---------
    # State lanes: [h1_f | h1_b | h2_f | h2_b]; gate columns are gate-major
    # [i | f | g | o] x [l1f l1b l2f l2b] -> all sliced slabs 128-lane aligned.
    lane = lax.broadcasted_iota(jnp.int32, (1, G4), 1)
    mask_l1 = (lane < TWOH).astype(f32)
    mask_h2f = ((lane >= TWOH) & (lane < 3 * H)).astype(f32)
    mask_h2b = (lane >= 3 * H).astype(f32)

    h = jnp.zeros((B, G4), f32)
    c = jnp.zeros((B, G4), f32)
    states = []
    for s in range(T + 1):                       # T+1 dependent steps (was 2T)
        if s == 0:
            gates = pg[0]                        # h == 0 -> skip the matmul
        elif s < T:
            gates = mm(h, wbig) + pg[s]
        else:                                    # final layer-2-only step
            gates = mm(h, wbig) + bias
        sig = jax.nn.sigmoid(gates)              # ONE full-width transcendental
        i_g = sig[:, 0:G4]
        f_g = sig[:, G4:2 * G4]
        g_g = sig[:, 2 * G4:3 * G4] * 2.0 - 1.0  # tanh(x) = 2*sigmoid(2x) - 1
        o_g = sig[:, 3 * G4:G16]
        c = f_g * c + i_g * g_g
        h = o_g * jnp.tanh(c)
        if s == 0:                               # layer-2 not started yet
            h = h * mask_l1
            c = c * mask_l1
        states.append(h)

    # ---- prediction heads: one lane-dense (B, 2V) output --------------------
    # fwd head: layer-2 fwd state at last step; bwd head: layer-2 bwd state at
    # its step 0 (== flip-then-[:, -1] of the PyTorch module).
    head_in = states[T] * mask_h2f + states[1] * mask_h2b
    preds_ref[...] = mm(head_in, head_w) + head_b

    # ---- combined projections + learnable_function (folded into wz) ---------
    sl = jnp.concatenate(states, axis=0)          # ((T+1)*B, 4H)
    z = mm(sl, wz)                                # ((T+1)*B, 4H)
    e2 = mm(e, lf_e_w)                            # (N, H)

    def zrow(s):
        return z[s * B:(s + 1) * B]

    outs = []
    for t in range(T):
        pre = (e2[t * B:(t + 1) * B]
               + zrow(t)[:, 0:H]                  # fwd layer-1 @ t
               + zrow(T - 1 - t)[:, H:TWOH]       # bwd layer-1 (time-flipped)
               + zrow(t + 1)[:, TWOH:3 * H]       # fwd layer-2 @ t
               + zrow(T - t)[:, 3 * H:G4]         # bwd layer-2 (time-flipped)
               + lf_b)
        outs.append(jnp.maximum(pre, 0.0))
    comb_ref[...] = jnp.concatenate(outs, axis=1)  # (B, T*H) lane-dense


# ---------------------------------------------------------------------------
# Host-side weight packing / folding (one-time)
# Gate column layout (16H): gate-major [i|f|g|o], each 4H slab interleaved as
# [layer1-fwd | layer1-bwd | layer2-fwd | layer2-bwd]; g columns pre-scaled x2.
# ---------------------------------------------------------------------------
def pack_params(p):
    f32 = jnp.float32
    V, _ = p['embedding'].shape
    H = p['proj_w'].shape[1]
    proj_b = p['proj_b']
    fw1, fh1, fb1 = p['f_lstm1']
    bw1, bh1, bb1 = p['b_lstm1']
    fw2, fh2, fb2 = p['f_lstm2']
    bw2, bh2, bb2 = p['b_lstm2']

    def pack16(p1f=None, p1b=None, p2f=None, p2b=None):
        pieces = (p1f, p1b, p2f, p2b)
        din = next(x.shape[0] for x in pieces if x is not None)
        zeros = jnp.zeros((din, H), f32)
        cols = []
        for g in range(4):                        # PyTorch gate order i,f,g,o
            for q in pieces:
                blk = zeros if q is None else q[:, g * H:(g + 1) * H]
                if g == 2:
                    blk = 2.0 * blk               # tanh(x) = 2*sigmoid(2x) - 1
                cols.append(blk)
        return jnp.concatenate(cols, axis=1)      # (din, 16H)

    w1f_wide = pack16(p1f=fw1)                    # (H, 16H)
    w1b_wide = pack16(p1b=bw1)                    # (H, 16H)
    w_big = jnp.concatenate([                     # rows: [h1_f|h1_b|h2_f|h2_b]
        pack16(p1f=fh1, p2f=fw2),
        pack16(p1b=bh1, p2b=bw2),
        pack16(p2f=fh2),
        pack16(p2b=bh2),
    ], axis=0)                                    # (4H, 16H)
    bias_full = pack16(p1f=fb1 + proj_b @ fw1,    # proj_b folded into biases
                       p1b=bb1 + proj_b @ bw1,
                       p2f=fb2, p2b=bb2)          # (1, 16H)
    s512 = jnp.concatenate([w1f_wide, w1b_wide, w_big, bias_full], axis=0)

    comb_w, comb_b = p['comb_w'], p['comb_b']
    lf_w, lf_b = p['lf_w'], p['lf_b']
    lw_c1, lw_c2 = lf_w[H:2 * H], lf_w[2 * H:3 * H]
    zhh = jnp.zeros((H, H), f32)
    wz = jnp.block([                              # comb_w folded into lf_w
        [comb_w[:H] @ lw_c1, zhh, zhh, zhh],
        [zhh, comb_w[H:] @ lw_c1, zhh, zhh],
        [zhh, zhh, comb_w[:H] @ lw_c2, zhh],
        [zhh, zhh, zhh, comb_w[H:] @ lw_c2],
    ])                                            # (4H, 4H)
    zhv = jnp.zeros((H, V), f32)
    head_w = jnp.concatenate([
        jnp.zeros((2 * H, 2 * V), f32),
        jnp.concatenate([p['out_f_w'], zhv], axis=1),
        jnp.concatenate([zhv, p['out_b_w']], axis=1),
    ], axis=0)                                    # (4H, 2V)
    head_b = jnp.concatenate([p['out_f_b'], p['out_b_b']], axis=1)   # (1, 2V)
    lf_e_w = lf_w[:H]                                                # (H, H)
    lf_bias = lf_b + comb_b @ lw_c1 + comb_b @ lw_c2 + proj_b @ lf_e_w

    we = max(4 * H, 2 * V)
    pad = lambda a: jnp.pad(a, ((0, 0), (0, we - a.shape[1])))
    sepi = jnp.concatenate([pad(wz), pad(head_w), pad(lf_e_w),
                            pad(head_b), jnp.zeros((7, we), f32),
                            pad(lf_bias)], axis=0)

    return {'embW': (p['embedding'] @ p['proj_w']).astype(f32),  # proj fold
            'S512': s512, 'SEPI': sepi}


# ---------------------------------------------------------------------------
# Wrapper: one pallas_call for the whole forward
# ---------------------------------------------------------------------------
@jax.jit
def learnable_elmo_forward(packed, x):
    B, T = x.shape
    V, H = packed['embW'].shape
    tok_tm = x.T.reshape(T * B, 1).astype(jnp.int32)   # time-major token ids

    kernel = functools.partial(_elmo_kernel, B=B, T=T, H=H, V=V)
    vmem = pl.BlockSpec(memory_space=pltpu.MemorySpace.VMEM)
    preds, comb = pl.pallas_call(
        kernel,
        out_shape=(jax.ShapeDtypeStruct((B, 2 * V), jnp.float32),
                   jax.ShapeDtypeStruct((B, T * H), jnp.float32)),
        in_specs=[vmem] * 4,
        out_specs=(vmem, vmem),
    )(tok_tm, packed['embW'], packed['S512'], packed['SEPI'])

    return preds[:, :V], preds[:, V:], comb.reshape(B, T, H)


# ---------------------------------------------------------------------------
# Parameters (deterministic synthetic init, PyTorch i,f,g,o gate order;
# LSTM weights stored pre-transposed as (Din, 4H) / (H, 4H), biases combined)
# ---------------------------------------------------------------------------
def init_params(key, vocab_size, embedding_dim, hidden_dim):
    ks = jax.random.split(key, 10)

    def dense(k, din, dout, scale=0.05):
        kw, kb = jax.random.split(k)
        return (scale * jax.random.normal(kw, (din, dout), jnp.float32),
                scale * jax.random.normal(kb, (1, dout), jnp.float32))

    def lstm(k, din, h, scale=0.05):
        k1, k2, k3 = jax.random.split(k, 3)
        return (scale * jax.random.normal(k1, (din, 4 * h), jnp.float32),
                scale * jax.random.normal(k2, (h, 4 * h), jnp.float32),
                scale * jax.random.normal(k3, (1, 4 * h), jnp.float32))

    p = {}
    p['embedding'] = 0.1 * jax.random.normal(ks[0], (vocab_size, embedding_dim), jnp.float32)
    p['proj_w'], p['proj_b'] = dense(ks[1], embedding_dim, hidden_dim)
    p['f_lstm1'] = lstm(ks[2], hidden_dim, hidden_dim)
    p['f_lstm2'] = lstm(ks[3], hidden_dim, hidden_dim)
    p['b_lstm1'] = lstm(ks[4], hidden_dim, hidden_dim)
    p['b_lstm2'] = lstm(ks[5], hidden_dim, hidden_dim)
    p['out_f_w'], p['out_f_b'] = dense(ks[6], hidden_dim, vocab_size)
    p['out_b_w'], p['out_b_b'] = dense(ks[7], hidden_dim, vocab_size)
    p['comb_w'], p['comb_b'] = dense(ks[8], 2 * hidden_dim, hidden_dim)
    p['lf_w'], p['lf_b'] = dense(ks[9], 3 * hidden_dim, hidden_dim)
    return p


# ---------------------------------------------------------------------------
# Pure-JAX reference (mirrors LearnableELMo.forward, dropout = identity)
# ---------------------------------------------------------------------------
def _ref_lstm(x_bth, w_ih, w_hh, b):
    B, _, _ = x_bth.shape
    H = w_hh.shape[0]

    def step(carry, x_t):
        h, c = carry
        gates = x_t @ w_ih + h @ w_hh + b
        i = jax.nn.sigmoid(gates[:, :H])
        f = jax.nn.sigmoid(gates[:, H:2 * H])
        g = jnp.tanh(gates[:, 2 * H:3 * H])
        o = jax.nn.sigmoid(gates[:, 3 * H:])
        c = f * c + i * g
        h = o * jnp.tanh(c)
        return (h, c), h

    init = (jnp.zeros((B, H), jnp.float32), jnp.zeros((B, H), jnp.float32))
    _, hs = lax.scan(step, init, jnp.transpose(x_bth, (1, 0, 2)))
    return jnp.transpose(hs, (1, 0, 2))


def reference_forward(params, x):
    def embed_project(tokens):
        return params['embedding'][tokens] @ params['proj_w'] + params['proj_b']

    embeddings = embed_project(x)
    f1 = _ref_lstm(embeddings, *params['f_lstm1'])
    f2 = _ref_lstm(f1, *params['f_lstm2'])
    b1 = _ref_lstm(embed_project(jnp.flip(x, axis=1)), *params['b_lstm1'])
    b2 = _ref_lstm(b1, *params['b_lstm2'])
    b1 = jnp.flip(b1, axis=1)
    b2 = jnp.flip(b2, axis=1)
    fwd_pred = f2[:, -1, :] @ params['out_f_w'] + params['out_f_b']
    bwd_pred = b2[:, -1, :] @ params['out_b_w'] + params['out_b_b']
    c1 = jnp.concatenate([f1, b1], -1) @ params['comb_w'] + params['comb_b']
    c2 = jnp.concatenate([f2, b2], -1) @ params['comb_w'] + params['comb_b']
    comb = jnp.maximum(
        jnp.concatenate([embeddings, c1, c2], -1) @ params['lf_w'] + params['lf_b'], 0.0)
    return fwd_pred, bwd_pred, comb


# ---------------------------------------------------------------------------
if __name__ == "__main__":
    B, T = 2, 8
    VOCAB, EMB, HID = 64, 32, 32

    key = jax.random.PRNGKey(0)
    k_tok, k_par = jax.random.split(key)
    x = jax.random.randint(k_tok, (B, T), 0, VOCAB, dtype=jnp.int32)
    params = init_params(k_par, VOCAB, EMB, HID)
    packed = pack_params(params)

    fwd_pred, bwd_pred, combined = learnable_elmo_forward(packed, x)
    jax.block_until_ready((fwd_pred, bwd_pred, combined))

    assert fwd_pred.shape == (B, VOCAB)
    assert bwd_pred.shape == (B, VOCAB)
    assert combined.shape == (B, T, HID)

    # numerical check against the pure-JAX reference of the PyTorch module
    r_f, r_b, r_c = reference_forward(params, x)
    for got, ref in ((fwd_pred, r_f), (bwd_pred, r_b), (combined, r_c)):
        assert float(jnp.max(jnp.abs(got - ref))) < 1e-3

    print("KERNEL_OK")
</pallas_src>

<mosaic_0001>
module attributes {stable_mosaic.version = 11 : i64} {
  func.func @_elmo_kernel(%arg0: memref<16x1xi32, #tpu.memory_space<vmem>>, %arg1: memref<64x32xf32, #tpu.memory_space<vmem>>, %arg2: memref<193x512xf32, #tpu.memory_space<vmem>>, %arg3: memref<297x128xf32, #tpu.memory_space<vmem>>, %arg4: memref<2x128xf32, #tpu.memory_space<vmem>>, %arg5: memref<2x256xf32, #tpu.memory_space<vmem>>) attributes {dimension_semantics = [], scalar_prefetch = 0 : i64, scratch_operands = 0 : i64, tpu.core_type = #tpu.core_type<tc>} {
    %c0 = arith.constant 0 : index
    %c0_0 = arith.constant 0 : index
    %0 = vector.load %arg2[%c0, %c0_0] : memref<193x512xf32, #tpu.memory_space<vmem>>, vector<32x512xf32>
    %c32 = arith.constant 32 : index
    %c0_1 = arith.constant 0 : index
    %1 = vector.load %arg2[%c32, %c0_1] : memref<193x512xf32, #tpu.memory_space<vmem>>, vector<32x512xf32>
    %c64 = arith.constant 64 : index
    %c0_2 = arith.constant 0 : index
    %2 = vector.load %arg2[%c64, %c0_2] : memref<193x512xf32, #tpu.memory_space<vmem>>, vector<128x512xf32>
    %c192 = arith.constant 192 : index
    %c0_3 = arith.constant 0 : index
    %3 = vector.load %arg2[%c192, %c0_3] : memref<193x512xf32, #tpu.memory_space<vmem>>, vector<1x512xf32>
    %c0_4 = arith.constant 0 : index
    %c0_5 = arith.constant 0 : index
    %4 = vector.load %arg3[%c0_4, %c0_5] : memref<297x128xf32, #tpu.memory_space<vmem>>, vector<128x128xf32>
    %c128 = arith.constant 128 : index
    %c0_6 = arith.constant 0 : index
    %5 = vector.load %arg3[%c128, %c0_6] : memref<297x128xf32, #tpu.memory_space<vmem>>, vector<128x128xf32>
    %c256 = arith.constant 256 : index
    %c0_7 = arith.constant 0 : index
    %6 = vector.load %arg3[%c256, %c0_7] : memref<297x128xf32, #tpu.memory_space<vmem>>, vector<32x32xf32>
    %c288 = arith.constant 288 : index
    %c0_8 = arith.constant 0 : index
    %7 = vector.load %arg3[%c288, %c0_8] : memref<297x128xf32, #tpu.memory_space<vmem>>, vector<1x128xf32>
    %c296 = arith.constant 296 : index
    %c0_9 = arith.constant 0 : index
    %8 = vector.load %arg3[%c296, %c0_9] : memref<297x128xf32, #tpu.memory_space<vmem>>, vector<1x32xf32>
    %c0_10 = arith.constant 0 : index
    %c0_11 = arith.constant 0 : index
    %9 = vector.load %arg0[%c0_10, %c0_11] : memref<16x1xi32, #tpu.memory_space<vmem>>, vector<16x1xi32>
    %10 = tpu.iota {dimensions = array<i32: 1>} : vector<16x64xi32>
    %11 = vector.broadcast %9 : vector<16x1xi32> to vector<16x64xi32>
    %12 = arith.cmpi eq, %11, %10 : vector<16x64xi32>
    %13 = arith.extui %12 : vector<16x64xi1> to vector<16x64xi32>
    %14 = arith.sitofp %13 : vector<16x64xi32> to vector<16x64xf32>
    %c0_12 = arith.constant 0 : index
    %c0_13 = arith.constant 0 : index
    %15 = vector.load %arg1[%c0_12, %c0_13] : memref<64x32xf32, #tpu.memory_space<vmem>>, vector<64x32xf32>
    %cst = arith.constant dense<0.000000e+00> : vector<16x32xf32>
    %16 = tpu.matmul %14, %15, %cst {dimension_numbers = #tpu.dot_dimension_numbers<[1], [0], [0], [1], [0, 0, 1, 1], [], []>} : vector<16x64xf32>, vector<64x32xf32>, vector<16x32xf32> -> vector<16x32xf32>
    %cst_14 = arith.constant dense<0.000000e+00> : vector<16x512xf32>
    %17 = tpu.matmul %16, %0, %cst_14 {dimension_numbers = #tpu.dot_dimension_numbers<[1], [0], [0], [1], [0, 0, 1, 1], [], []>} : vector<16x32xf32>, vector<32x512xf32>, vector<16x512xf32> -> vector<16x512xf32>
    %cst_15 = arith.constant dense<0.000000e+00> : vector<16x512xf32>
    %18 = tpu.matmul %16, %1, %cst_15 {dimension_numbers = #tpu.dot_dimension_numbers<[1], [0], [0], [1], [0, 0, 1, 1], [], []>} : vector<16x32xf32>, vector<32x512xf32>, vector<16x512xf32> -> vector<16x512xf32>
    %19 = vector.extract_strided_slice %17 {offsets = [0, 0], sizes = [2, 512], strides = [1, 1]} : vector<16x512xf32> to vector<2x512xf32>
    %20 = vector.extract_strided_slice %18 {offsets = [14, 0], sizes = [2, 512], strides = [1, 1]} : vector<16x512xf32> to vector<2x512xf32>
    %21 = arith.addf %19, %20 : vector<2x512xf32>
    %22 = vector.broadcast %3 : vector<1x512xf32> to vector<2x512xf32>
    %23 = arith.addf %21, %22 : vector<2x512xf32>
    %24 = vector.extract_strided_slice %17 {offsets = [2, 0], sizes = [2, 512], strides = [1, 1]} : vector<16x512xf32> to vector<2x512xf32>
    %25 = vector.extract_strided_slice %18 {offsets = [12, 0], sizes = [2, 512], strides = [1, 1]} : vector<16x512xf32> to vector<2x512xf32>
    %26 = arith.addf %24, %25 : vector<2x512xf32>
    %27 = vector.broadcast %3 : vector<1x512xf32> to vector<2x512xf32>
    %28 = arith.addf %26, %27 : vector<2x512xf32>
    %29 = vector.extract_strided_slice %17 {offsets = [4, 0], sizes = [2, 512], strides = [1, 1]} : vector<16x512xf32> to vector<2x512xf32>
    %30 = vector.extract_strided_slice %18 {offsets = [10, 0], sizes = [2, 512], strides = [1, 1]} : vector<16x512xf32> to vector<2x512xf32>
    %31 = arith.addf %29, %30 : vector<2x512xf32>
    %32 = vector.broadcast %3 : vector<1x512xf32> to vector<2x512xf32>
    %33 = arith.addf %31, %32 : vector<2x512xf32>
    %34 = vector.extract_strided_slice %17 {offsets = [6, 0], sizes = [2, 512], strides = [1, 1]} : vector<16x512xf32> to vector<2x512xf32>
    %35 = vector.extract_strided_slice %18 {offsets = [8, 0], sizes = [2, 512], strides = [1, 1]} : vector<16x512xf32> to vector<2x512xf32>
    %36 = arith.addf %34, %35 : vector<2x512xf32>
    %37 = vector.broadcast %3 : vector<1x512xf32> to vector<2x512xf32>
    %38 = arith.addf %36, %37 : vector<2x512xf32>
    %39 = vector.extract_strided_slice %17 {offsets = [8, 0], sizes = [2, 512], strides = [1, 1]} : vector<16x512xf32> to vector<2x512xf32>
    %40 = vector.extract_strided_slice %18 {offsets = [6, 0], sizes = [2, 512], strides = [1, 1]} : vector<16x512xf32> to vector<2x512xf32>
    %41 = arith.addf %39, %40 : vector<2x512xf32>
    %42 = vector.broadcast %3 : vector<1x512xf32> to vector<2x512xf32>
    %43 = arith.addf %41, %42 : vector<2x512xf32>
    %44 = vector.extract_strided_slice %17 {offsets = [10, 0], sizes = [2, 512], strides = [1, 1]} : vector<16x512xf32> to vector<2x512xf32>
    %45 = vector.extract_strided_slice %18 {offsets = [4, 0], sizes = [2, 512], strides = [1, 1]} : vector<16x512xf32> to vector<2x512xf32>
    %46 = arith.addf %44, %45 : vector<2x512xf32>
    %47 = vector.broadcast %3 : vector<1x512xf32> to vector<2x512xf32>
    %48 = arith.addf %46, %47 : vector<2x512xf32>
    %49 = vector.extract_strided_slice %17 {offsets = [12, 0], sizes = [2, 512], strides = [1, 1]} : vector<16x512xf32> to vector<2x512xf32>
    %50 = vector.extract_strided_slice %18 {offsets = [2, 0], sizes = [2, 512], strides = [1, 1]} : vector<16x512xf32> to vector<2x512xf32>
    %51 = arith.addf %49, %50 : vector<2x512xf32>
    %52 = vector.broadcast %3 : vector<1x512xf32> to vector<2x512xf32>
    %53 = arith.addf %51, %52 : vector<2x512xf32>
    %54 = vector.extract_strided_slice %17 {offsets = [14, 0], sizes = [2, 512], strides = [1, 1]} : vector<16x512xf32> to vector<2x512xf32>
    %55 = vector.extract_strided_slice %18 {offsets = [0, 0], sizes = [2, 512], strides = [1, 1]} : vector<16x512xf32> to vector<2x512xf32>
    %56 = arith.addf %54, %55 : vector<2x512xf32>
    %57 = vector.broadcast %3 : vector<1x512xf32> to vector<2x512xf32>
    %58 = arith.addf %56, %57 : vector<2x512xf32>
    %59 = tpu.iota {dimensions = array<i32: 1>} : vector<1x128xi32>
    %c64_i32 = arith.constant 64 : i32
    %60 = vector.broadcast %c64_i32 : i32 to vector<1x128xi32>
    %61 = arith.cmpi slt, %59, %60 : vector<1x128xi32>
    %62 = arith.extui %61 : vector<1x128xi1> to vector<1x128xi32>
    %63 = arith.sitofp %62 : vector<1x128xi32> to vector<1x128xf32>
    %c64_i32_16 = arith.constant 64 : i32
    %64 = vector.broadcast %c64_i32_16 : i32 to vector<1x128xi32>
    %65 = arith.cmpi sge, %59, %64 : vector<1x128xi32>
    %c96_i32 = arith.constant 96 : i32
    %66 = vector.broadcast %c96_i32 : i32 to vector<1x128xi32>
    %67 = arith.cmpi slt, %59, %66 : vector<1x128xi32>
    %68 = arith.andi %65, %67 : vector<1x128xi1>
    %69 = arith.extui %68 : vector<1x128xi1> to vector<1x128xi32>
    %70 = arith.sitofp %69 : vector<1x128xi32> to vector<1x128xf32>
    %c96_i32_17 = arith.constant 96 : i32
    %71 = vector.broadcast %c96_i32_17 : i32 to vector<1x128xi32>
    %72 = arith.cmpi sge, %59, %71 : vector<1x128xi32>
    %73 = arith.extui %72 : vector<1x128xi1> to vector<1x128xi32>
    %74 = arith.sitofp %73 : vector<1x128xi32> to vector<1x128xf32>
    %cst_18 = arith.constant 0.000000e+00 : f32
    %75 = vector.broadcast %cst_18 : f32 to vector<2x128xf32>
    %76 = arith.negf %23 : vector<2x512xf32>
    %77 = math.exp %76 : vector<2x512xf32>
    %cst_19 = arith.constant 1.000000e+00 : f32
    %78 = vector.broadcast %cst_19 : f32 to vector<2x512xf32>
    %79 = arith.addf %78, %77 : vector<2x512xf32>
    %80 = arith.divf %78, %79 : vector<2x512xf32>
    %81 = vector.extract_strided_slice %80 {offsets = [0, 0], sizes = [2, 128], strides = [1, 1]} : vector<2x512xf32> to vector<2x128xf32>
    %82 = vector.extract_strided_slice %80 {offsets = [0, 128], sizes = [2, 128], strides = [1, 1]} : vector<2x512xf32> to vector<2x128xf32>
    %83 = vector.extract_strided_slice %80 {offsets = [0, 256], sizes = [2, 128], strides = [1, 1]} : vector<2x512xf32> to vector<2x128xf32>
    %cst_20 = arith.constant 2.000000e+00 : f32
    %84 = vector.broadcast %cst_20 : f32 to vector<2x128xf32>
    %85 = arith.mulf %83, %84 : vector<2x128xf32>
    %cst_21 = arith.constant 1.000000e+00 : f32
    %86 = vector.broadcast %cst_21 : f32 to vector<2x128xf32>
    %87 = arith.subf %85, %86 : vector<2x128xf32>
    %88 = vector.extract_strided_slice %80 {offsets = [0, 384], sizes = [2, 128], strides = [1, 1]} : vector<2x512xf32> to vector<2x128xf32>
    %89 = arith.mulf %82, %75 : vector<2x128xf32>
    %90 = arith.mulf %81, %87 : vector<2x128xf32>
    %91 = arith.addf %89, %90 : vector<2x128xf32>
    %92 = math.tanh %91 : vector<2x128xf32>
    %93 = arith.mulf %88, %92 : vector<2x128xf32>
    %94 = vector.broadcast %63 : vector<1x128xf32> to vector<2x128xf32>
    %95 = arith.mulf %93, %94 : vector<2x128xf32>
    %96 = vector.broadcast %63 : vector<1x128xf32> to vector<2x128xf32>
    %97 = arith.mulf %91, %96 : vector<2x128xf32>
    %cst_22 = arith.constant dense<0.000000e+00> : vector<2x512xf32>
    %98 = tpu.matmul %95, %2, %cst_22 {dimension_numbers = #tpu.dot_dimension_numbers<[1], [0], [0], [1], [0, 0, 1, 1], [], []>} : vector<2x128xf32>, vector<128x512xf32>, vector<2x512xf32> -> vector<2x512xf32>
    %99 = arith.addf %98, %28 : vector<2x512xf32>
    %100 = arith.negf %99 : vector<2x512xf32>
    %101 = math.exp %100 : vector<2x512xf32>
    %cst_23 = arith.constant 1.000000e+00 : f32
    %102 = vector.broadcast %cst_23 : f32 to vector<2x512xf32>
    %103 = arith.addf %102, %101 : vector<2x512xf32>
    %104 = arith.divf %102, %103 : vector<2x512xf32>
    %105 = vector.extract_strided_slice %104 {offsets = [0, 0], sizes = [2, 128], strides = [1, 1]} : vector<2x512xf32> to vector<2x128xf32>
    %106 = vector.extract_strided_slice %104 {offsets = [0, 128], sizes = [2, 128], strides = [1, 1]} : vector<2x512xf32> to vector<2x128xf32>
    %107 = vector.extract_strided_slice %104 {offsets = [0, 256], sizes = [2, 128], strides = [1, 1]} : vector<2x512xf32> to vector<2x128xf32>
    %cst_24 = arith.constant 2.000000e+00 : f32
    %108 = vector.broadcast %cst_24 : f32 to vector<2x128xf32>
    %109 = arith.mulf %107, %108 : vector<2x128xf32>
    %cst_25 = arith.constant 1.000000e+00 : f32
    %110 = vector.broadcast %cst_25 : f32 to vector<2x128xf32>
    %111 = arith.subf %109, %110 : vector<2x128xf32>
    %112 = vector.extract_strided_slice %104 {offsets = [0, 384], sizes = [2, 128], strides = [1, 1]} : vector<2x512xf32> to vector<2x128xf32>
    %113 = arith.mulf %106, %97 : vector<2x128xf32>
    %114 = arith.mulf %105, %111 : vector<2x128xf32>
    %115 = arith.addf %113, %114 : vector<2x128xf32>
    %116 = math.tanh %115 : vector<2x128xf32>
    %117 = arith.mulf %112, %116 : vector<2x128xf32>
    %cst_26 = arith.constant dense<0.000000e+00> : vector<2x512xf32>
    %118 = tpu.matmul %117, %2, %cst_26 {dimension_numbers = #tpu.dot_dimension_numbers<[1], [0], [0], [1], [0, 0, 1, 1], [], []>} : vector<2x128xf32>, vector<128x512xf32>, vector<2x512xf32> -> vector<2x512xf32>
    %119 = arith.addf %118, %33 : vector<2x512xf32>
    %120 = arith.negf %119 : vector<2x512xf32>
    %121 = math.exp %120 : vector<2x512xf32>
    %cst_27 = arith.constant 1.000000e+00 : f32
    %122 = vector.broadcast %cst_27 : f32 to vector<2x512xf32>
    %123 = arith.addf %122, %121 : vector<2x512xf32>
    %124 = arith.divf %122, %123 : vector<2x512xf32>
    %125 = vector.extract_strided_slice %124 {offsets = [0, 0], sizes = [2, 128], strides = [1, 1]} : vector<2x512xf32> to vector<2x128xf32>
    %126 = vector.extract_strided_slice %124 {offsets = [0, 128], sizes = [2, 128], strides = [1, 1]} : vector<2x512xf32> to vector<2x128xf32>
    %127 = vector.extract_strided_slice %124 {offsets = [0, 256], sizes = [2, 128], strides = [1, 1]} : vector<2x512xf32> to vector<2x128xf32>
    %cst_28 = arith.constant 2.000000e+00 : f32
    %128 = vector.broadcast %cst_28 : f32 to vector<2x128xf32>
    %129 = arith.mulf %127, %128 : vector<2x128xf32>
    %cst_29 = arith.constant 1.000000e+00 : f32
    %130 = vector.broadcast %cst_29 : f32 to vector<2x128xf32>
    %131 = arith.subf %129, %130 : vector<2x128xf32>
    %132 = vector.extract_strided_slice %124 {offsets = [0, 384], sizes = [2, 128], strides = [1, 1]} : vector<2x512xf32> to vector<2x128xf32>
    %133 = arith.mulf %126, %115 : vector<2x128xf32>
    %134 = arith.mulf %125, %131 : vector<2x128xf32>
    %135 = arith.addf %133, %134 : vector<2x128xf32>
    %136 = math.tanh %135 : vector<2x128xf32>
    %137 = arith.mulf %132, %136 : vector<2x128xf32>
    %cst_30 = arith.constant dense<0.000000e+00> : vector<2x512xf32>
    %138 = tpu.matmul %137, %2, %cst_30 {dimension_numbers = #tpu.dot_dimension_numbers<[1], [0], [0], [1], [0, 0, 1, 1], [], []>} : vector<2x128xf32>, vector<128x512xf32>, vector<2x512xf32> -> vector<2x512xf32>
    %139 = arith.addf %138, %38 : vector<2x512xf32>
    %140 = arith.negf %139 : vector<2x512xf32>
    %141 = math.exp %140 : vector<2x512xf32>
    %cst_31 = arith.constant 1.000000e+00 : f32
    %142 = vector.broadcast %cst_31 : f32 to vector<2x512xf32>
    %143 = arith.addf %142, %141 : vector<2x512xf32>
    %144 = arith.divf %142, %143 : vector<2x512xf32>
    %145 = vector.extract_strided_slice %144 {offsets = [0, 0], sizes = [2, 128], strides = [1, 1]} : vector<2x512xf32> to vector<2x128xf32>
    %146 = vector.extract_strided_slice %144 {offsets = [0, 128], sizes = [2, 128], strides = [1, 1]} : vector<2x512xf32> to vector<2x128xf32>
    %147 = vector.extract_strided_slice %144 {offsets = [0, 256], sizes = [2, 128], strides = [1, 1]} : vector<2x512xf32> to vector<2x128xf32>
    %cst_32 = arith.constant 2.000000e+00 : f32
    %148 = vector.broadcast %cst_32 : f32 to vector<2x128xf32>
    %149 = arith.mulf %147, %148 : vector<2x128xf32>
    %cst_33 = arith.constant 1.000000e+00 : f32
    %150 = vector.broadcast %cst_33 : f32 to vector<2x128xf32>
    %151 = arith.subf %149, %150 : vector<2x128xf32>
    %152 = vector.extract_strided_slice %144 {offsets = [0, 384], sizes = [2, 128], strides = [1, 1]} : vector<2x512xf32> to vector<2x128xf32>
    %153 = arith.mulf %146, %135 : vector<2x128xf32>
    %154 = arith.mulf %145, %151 : vector<2x128xf32>
    %155 = arith.addf %153, %154 : vector<2x128xf32>
    %156 = math.tanh %155 : vector<2x128xf32>
    %157 = arith.mulf %152, %156 : vector<2x128xf32>
    %cst_34 = arith.constant dense<0.000000e+00> : vector<2x512xf32>
    %158 = tpu.matmul %157, %2, %cst_34 {dimension_numbers = #tpu.dot_dimension_numbers<[1], [0], [0], [1], [0, 0, 1, 1], [], []>} : vector<2x128xf32>, vector<128x512xf32>, vector<2x512xf32> -> vector<2x512xf32>
    %159 = arith.addf %158, %43 : vector<2x512xf32>
    %160 = arith.negf %159 : vector<2x512xf32>
    %161 = math.exp %160 : vector<2x512xf32>
    %cst_35 = arith.constant 1.000000e+00 : f32
    %162 = vector.broadcast %cst_35 : f32 to vector<2x512xf32>
    %163 = arith.addf %162, %161 : vector<2x512xf32>
    %164 = arith.divf %162, %163 : vector<2x512xf32>
    %165 = vector.extract_strided_slice %164 {offsets = [0, 0], sizes = [2, 128], strides = [1, 1]} : vector<2x512xf32> to vector<2x128xf32>
    %166 = vector.extract_strided_slice %164 {offsets = [0, 128], sizes = [2, 128], strides = [1, 1]} : vector<2x512xf32> to vector<2x128xf32>
    %167 = vector.extract_strided_slice %164 {offsets = [0, 256], sizes = [2, 128], strides = [1, 1]} : vector<2x512xf32> to vector<2x128xf32>
    %cst_36 = arith.constant 2.000000e+00 : f32
    %168 = vector.broadcast %cst_36 : f32 to vector<2x128xf32>
    %169 = arith.mulf %167, %168 : vector<2x128xf32>
    %cst_37 = arith.constant 1.000000e+00 : f32
    %170 = vector.broadcast %cst_37 : f32 to vector<2x128xf32>
    %171 = arith.subf %169, %170 : vector<2x128xf32>
    %172 = vector.extract_strided_slice %164 {offsets = [0, 384], sizes = [2, 128], strides = [1, 1]} : vector<2x512xf32> to vector<2x128xf32>
    %173 = arith.mulf %166, %155 : vector<2x128xf32>
    %174 = arith.mulf %165, %171 : vector<2x128xf32>
    %175 = arith.addf %173, %174 : vector<2x128xf32>
    %176 = math.tanh %175 : vector<2x128xf32>
    %177 = arith.mulf %172, %176 : vector<2x128xf32>
    %cst_38 = arith.constant dense<0.000000e+00> : vector<2x512xf32>
    %178 = tpu.matmul %177, %2, %cst_38 {dimension_numbers = #tpu.dot_dimension_numbers<[1], [0], [0], [1], [0, 0, 1, 1], [], []>} : vector<2x128xf32>, vector<128x512xf32>, vector<2x512xf32> -> vector<2x512xf32>
    %179 = arith.addf %178, %48 : vector<2x512xf32>
    %180 = arith.negf %179 : vector<2x512xf32>
    %181 = math.exp %180 : vector<2x512xf32>
    %cst_39 = arith.constant 1.000000e+00 : f32
    %182 = vector.broadcast %cst_39 : f32 to vector<2x512xf32>
    %183 = arith.addf %182, %181 : vector<2x512xf32>
    %184 = arith.divf %182, %183 : vector<2x512xf32>
    %185 = vector.extract_strided_slice %184 {offsets = [0, 0], sizes = [2, 128], strides = [1, 1]} : vector<2x512xf32> to vector<2x128xf32>
    %186 = vector.extract_strided_slice %184 {offsets = [0, 128], sizes = [2, 128], strides = [1, 1]} : vector<2x512xf32> to vector<2x128xf32>
    %187 = vector.extract_strided_slice %184 {offsets = [0, 256], sizes = [2, 128], strides = [1, 1]} : vector<2x512xf32> to vector<2x128xf32>
    %cst_40 = arith.constant 2.000000e+00 : f32
    %188 = vector.broadcast %cst_40 : f32 to vector<2x128xf32>
    %189 = arith.mulf %187, %188 : vector<2x128xf32>
    %cst_41 = arith.constant 1.000000e+00 : f32
    %190 = vector.broadcast %cst_41 : f32 to vector<2x128xf32>
    %191 = arith.subf %189, %190 : vector<2x128xf32>
    %192 = vector.extract_strided_slice %184 {offsets = [0, 384], sizes = [2, 128], strides = [1, 1]} : vector<2x512xf32> to vector<2x128xf32>
    %193 = arith.mulf %186, %175 : vector<2x128xf32>
    %194 = arith.mulf %185, %191 : vector<2x128xf32>
    %195 = arith.addf %193, %194 : vector<2x128xf32>
    %196 = math.tanh %195 : vector<2x128xf32>
    %197 = arith.mulf %192, %196 : vector<2x128xf32>
    %cst_42 = arith.constant dense<0.000000e+00> : vector<2x512xf32>
    %198 = tpu.matmul %197, %2, %cst_42 {dimension_numbers = #tpu.dot_dimension_numbers<[1], [0], [0], [1], [0, 0, 1, 1], [], []>} : vector<2x128xf32>, vector<128x512xf32>, vector<2x512xf32> -> vector<2x512xf32>
    %199 = arith.addf %198, %53 : vector<2x512xf32>
    %200 = arith.negf %199 : vector<2x512xf32>
    %201 = math.exp %200 : vector<2x512xf32>
    %cst_43 = arith.constant 1.000000e+00 : f32
    %202 = vector.broadcast %cst_43 : f32 to vector<2x512xf32>
    %203 = arith.addf %202, %201 : vector<2x512xf32>
    %204 = arith.divf %202, %203 : vector<2x512xf32>
    %205 = vector.extract_strided_slice %204 {offsets = [0, 0], sizes = [2, 128], strides = [1, 1]} : vector<2x512xf32> to vector<2x128xf32>
    %206 = vector.extract_strided_slice %204 {offsets = [0, 128], sizes = [2, 128], strides = [1, 1]} : vector<2x512xf32> to vector<2x128xf32>
    %207 = vector.extract_strided_slice %204 {offsets = [0, 256], sizes = [2, 128], strides = [1, 1]} : vector<2x512xf32> to vector<2x128xf32>
    %cst_44 = arith.constant 2.000000e+00 : f32
    %208 = vector.broadcast %cst_44 : f32 to vector<2x128xf32>
    %209 = arith.mulf %207, %208 : vector<2x128xf32>
    %cst_45 = arith.constant 1.000000e+00 : f32
    %210 = vector.broadcast %cst_45 : f32 to vector<2x128xf32>
    %211 = arith.subf %209, %210 : vector<2x128xf32>
    %212 = vector.extract_strided_slice %204 {offsets = [0, 384], sizes = [2, 128], strides = [1, 1]} : vector<2x512xf32> to vector<2x128xf32>
    %213 = arith.mulf %206, %195 : vector<2x128xf32>
    %214 = arith.mulf %205, %211 : vector<2x128xf32>
    %215 = arith.addf %213, %214 : vector<2x128xf32>
    %216 = math.tanh %215 : vector<2x128xf32>
    %217 = arith.mulf %212, %216 : vector<2x128xf32>
    %cst_46 = arith.constant dense<0.000000e+00> : vector<2x512xf32>
    %218 = tpu.matmul %217, %2, %cst_46 {dimension_numbers = #tpu.dot_dimension_numbers<[1], [0], [0], [1], [0, 0, 1, 1], [], []>} : vector<2x128xf32>, vector<128x512xf32>, vector<2x512xf32> -> vector<2x512xf32>
    %219 = arith.addf %218, %58 : vector<2x512xf32>
    %220 = arith.negf %219 : vector<2x512xf32>
    %221 = math.exp %220 : vector<2x512xf32>
    %cst_47 = arith.constant 1.000000e+00 : f32
    %222 = vector.broadcast %cst_47 : f32 to vector<2x512xf32>
    %223 = arith.addf %222, %221 : vector<2x512xf32>
    %224 = arith.divf %222, %223 : vector<2x512xf32>
    %225 = vector.extract_strided_slice %224 {offsets = [0, 0], sizes = [2, 128], strides = [1, 1]} : vector<2x512xf32> to vector<2x128xf32>
    %226 = vector.extract_strided_slice %224 {offsets = [0, 128], sizes = [2, 128], strides = [1, 1]} : vector<2x512xf32> to vector<2x128xf32>
    %227 = vector.extract_strided_slice %224 {offsets = [0, 256], sizes = [2, 128], strides = [1, 1]} : vector<2x512xf32> to vector<2x128xf32>
    %cst_48 = arith.constant 2.000000e+00 : f32
    %228 = vector.broadcast %cst_48 : f32 to vector<2x128xf32>
    %229 = arith.mulf %227, %228 : vector<2x128xf32>
    %cst_49 = arith.constant 1.000000e+00 : f32
    %230 = vector.broadcast %cst_49 : f32 to vector<2x128xf32>
    %231 = arith.subf %229, %230 : vector<2x128xf32>
    %232 = vector.extract_strided_slice %224 {offsets = [0, 384], sizes = [2, 128], strides = [1, 1]} : vector<2x512xf32> to vector<2x128xf32>
    %233 = arith.mulf %226, %215 : vector<2x128xf32>
    %234 = arith.mulf %225, %231 : vector<2x128xf32>
    %235 = arith.addf %233, %234 : vector<2x128xf32>
    %236 = math.tanh %235 : vector<2x128xf32>
    %237 = arith.mulf %232, %236 : vector<2x128xf32>
    %cst_50 = arith.constant dense<0.000000e+00> : vector<2x512xf32>
    %238 = tpu.matmul %237, %2, %cst_50 {dimension_numbers = #tpu.dot_dimension_numbers<[1], [0], [0], [1], [0, 0, 1, 1], [], []>} : vector<2x128xf32>, vector<128x512xf32>, vector<2x512xf32> -> vector<2x512xf32>
    %239 = vector.broadcast %3 : vector<1x512xf32> to vector<2x512xf32>
    %240 = arith.addf %238, %239 : vector<2x512xf32>
    %241 = arith.negf %240 : vector<2x512xf32>
    %242 = math.exp %241 : vector<2x512xf32>
    %cst_51 = arith.constant 1.000000e+00 : f32
    %243 = vector.broadcast %cst_51 : f32 to vector<2x512xf32>
    %244 = arith.addf %243, %242 : vector<2x512xf32>
    %245 = arith.divf %243, %244 : vector<2x512xf32>
    %246 = vector.extract_strided_slice %245 {offsets = [0, 0], sizes = [2, 128], strides = [1, 1]} : vector<2x512xf32> to vector<2x128xf32>
    %247 = vector.extract_strided_slice %245 {offsets = [0, 128], sizes = [2, 128], strides = [1, 1]} : vector<2x512xf32> to vector<2x128xf32>
    %248 = vector.extract_strided_slice %245 {offsets = [0, 256], sizes = [2, 128], strides = [1, 1]} : vector<2x512xf32> to vector<2x128xf32>
    %cst_52 = arith.constant 2.000000e+00 : f32
    %249 = vector.broadcast %cst_52 : f32 to vector<2x128xf32>
    %250 = arith.mulf %248, %249 : vector<2x128xf32>
    %cst_53 = arith.constant 1.000000e+00 : f32
    %251 = vector.broadcast %cst_53 : f32 to vector<2x128xf32>
    %252 = arith.subf %250, %251 : vector<2x128xf32>
    %253 = vector.extract_strided_slice %245 {offsets = [0, 384], sizes = [2, 128], strides = [1, 1]} : vector<2x512xf32> to vector<2x128xf32>
    %254 = arith.mulf %247, %235 : vector<2x128xf32>
    %255 = arith.mulf %246, %252 : vector<2x128xf32>
    %256 = arith.addf %254, %255 : vector<2x128xf32>
    %257 = math.tanh %256 : vector<2x128xf32>
    %258 = arith.mulf %253, %257 : vector<2x128xf32>
    %259 = vector.broadcast %70 : vector<1x128xf32> to vector<2x128xf32>
    %260 = arith.mulf %258, %259 : vector<2x128xf32>
    %261 = vector.broadcast %74 : vector<1x128xf32> to vector<2x128xf32>
    %262 = arith.mulf %117, %261 : vector<2x128xf32>
    %263 = arith.addf %260, %262 : vector<2x128xf32>
    %cst_54 = arith.constant dense<0.000000e+00> : vector<2x128xf32>
    %264 = tpu.matmul %263, %5, %cst_54 {dimension_numbers = #tpu.dot_dimension_numbers<[1], [0], [0], [1], [0, 0, 1, 1], [], []>} : vector<2x128xf32>, vector<128x128xf32>, vector<2x128xf32> -> vector<2x128xf32>
    %265 = vector.broadcast %7 : vector<1x128xf32> to vector<2x128xf32>
    %266 = arith.addf %264, %265 : vector<2x128xf32>
    %c0_55 = arith.constant 0 : index
    %c0_56 = arith.constant 0 : index
    %267 = vector.load %arg4[%c0_55, %c0_56] : memref<2x128xf32, #tpu.memory_space<vmem>>, vector<2x128xf32>
    tpu.vector_store %arg4[%c0_55, %c0_56], %266 {strides = array<i32>} : memref<2x128xf32, #tpu.memory_space<vmem>>, vector<2x128xf32>,
    %268 = tpu.concatenate %95, %117, %137, %157, %177, %197, %217, %237, %258 in 0 : vector<2x128xf32>, vector<2x128xf32>, vector<2x128xf32>, vector<2x128xf32>, vector<2x128xf32>, vector<2x128xf32>, vector<2x128xf32>, vector<2x128xf32>, vector<2x128xf32> -> vector<18x128xf32>
    %cst_57 = arith.constant dense<0.000000e+00> : vector<18x128xf32>
    %269 = tpu.matmul %268, %4, %cst_57 {dimension_numbers = #tpu.dot_dimension_numbers<[1], [0], [0], [1], [0, 0, 1, 1], [], []>} : vector<18x128xf32>, vector<128x128xf32>, vector<18x128xf32> -> vector<18x128xf32>
    %cst_58 = arith.constant dense<0.000000e+00> : vector<16x32xf32>
    %270 = tpu.matmul %16, %6, %cst_58 {dimension_numbers = #tpu.dot_dimension_numbers<[1], [0], [0], [1], [0, 0, 1, 1], [], []>} : vector<16x32xf32>, vector<32x32xf32>, vector<16x32xf32> -> vector<16x32xf32>
    %271 = vector.extract_strided_slice %270 {offsets = [0, 0], sizes = [2, 32], strides = [1, 1]} : vector<16x32xf32> to vector<2x32xf32>
    %272 = vector.extract_strided_slice %269 {offsets = [0, 0], sizes = [2, 128], strides = [1, 1]} : vector<18x128xf32> to vector<2x128xf32>
    %273 = vector.extract_strided_slice %272 {offsets = [0, 0], sizes = [2, 32], strides = [1, 1]} : vector<2x128xf32> to vector<2x32xf32>
    %274 = arith.addf %271, %273 : vector<2x32xf32>
    %275 = vector.extract_strided_slice %269 {offsets = [14, 0], sizes = [2, 128], strides = [1, 1]} : vector<18x128xf32> to vector<2x128xf32>
    %276 = vector.extract_strided_slice %275 {offsets = [0, 32], sizes = [2, 32], strides = [1, 1]} : vector<2x128xf32> to vector<2x32xf32>
    %277 = arith.addf %274, %276 : vector<2x32xf32>
    %278 = vector.extract_strided_slice %269 {offsets = [2, 0], sizes = [2, 128], strides = [1, 1]} : vector<18x128xf32> to vector<2x128xf32>
    %279 = vector.extract_strided_slice %278 {offsets = [0, 64], sizes = [2, 32], strides = [1, 1]} : vector<2x128xf32> to vector<2x32xf32>
    %280 = arith.addf %277, %279 : vector<2x32xf32>
    %281 = vector.extract_strided_slice %269 {offsets = [16, 0], sizes = [2, 128], strides = [1, 1]} : vector<18x128xf32> to vector<2x128xf32>
    %282 = vector.extract_strided_slice %281 {offsets = [0, 96], sizes = [2, 32], strides = [1, 1]} : vector<2x128xf32> to vector<2x32xf32>
    %283 = arith.addf %280, %282 : vector<2x32xf32>
    %284 = vector.broadcast %8 : vector<1x32xf32> to vector<2x32xf32>
    %285 = arith.addf %283, %284 : vector<2x32xf32>
    %cst_59 = arith.constant 0.000000e+00 : f32
    %286 = vector.broadcast %cst_59 : f32 to vector<2x32xf32>
    %287 = arith.maximumf %285, %286 : vector<2x32xf32>
    %288 = vector.extract_strided_slice %270 {offsets = [2, 0], sizes = [2, 32], strides = [1, 1]} : vector<16x32xf32> to vector<2x32xf32>
    %289 = vector.extract_strided_slice %269 {offsets = [2, 0], sizes = [2, 128], strides = [1, 1]} : vector<18x128xf32> to vector<2x128xf32>
    %290 = vector.extract_strided_slice %289 {offsets = [0, 0], sizes = [2, 32], strides = [1, 1]} : vector<2x128xf32> to vector<2x32xf32>
    %291 = arith.addf %288, %290 : vector<2x32xf32>
    %292 = vector.extract_strided_slice %269 {offsets = [12, 0], sizes = [2, 128], strides = [1, 1]} : vector<18x128xf32> to vector<2x128xf32>
    %293 = vector.extract_strided_slice %292 {offsets = [0, 32], sizes = [2, 32], strides = [1, 1]} : vector<2x128xf32> to vector<2x32xf32>
    %294 = arith.addf %291, %293 : vector<2x32xf32>
    %295 = vector.extract_strided_slice %269 {offsets = [4, 0], sizes = [2, 128], strides = [1, 1]} : vector<18x128xf32> to vector<2x128xf32>
    %296 = vector.extract_strided_slice %295 {offsets = [0, 64], sizes = [2, 32], strides = [1, 1]} : vector<2x128xf32> to vector<2x32xf32>
    %297 = arith.addf %294, %296 : vector<2x32xf32>
    %298 = vector.extract_strided_slice %269 {offsets = [14, 0], sizes = [2, 128], strides = [1, 1]} : vector<18x128xf32> to vector<2x128xf32>
    %299 = vector.extract_strided_slice %298 {offsets = [0, 96], sizes = [2, 32], strides = [1, 1]} : vector<2x128xf32> to vector<2x32xf32>
    %300 = arith.addf %297, %299 : vector<2x32xf32>
    %301 = vector.broadcast %8 : vector<1x32xf32> to vector<2x32xf32>
    %302 = arith.addf %300, %301 : vector<2x32xf32>
    %cst_60 = arith.constant 0.000000e+00 : f32
    %303 = vector.broadcast %cst_60 : f32 to vector<2x32xf32>
    %304 = arith.maximumf %302, %303 : vector<2x32xf32>
    %305 = vector.extract_strided_slice %270 {offsets = [4, 0], sizes = [2, 32], strides = [1, 1]} : vector<16x32xf32> to vector<2x32xf32>
    %306 = vector.extract_strided_slice %269 {offsets = [4, 0], sizes = [2, 128], strides = [1, 1]} : vector<18x128xf32> to vector<2x128xf32>
    %307 = vector.extract_strided_slice %306 {offsets = [0, 0], sizes = [2, 32], strides = [1, 1]} : vector<2x128xf32> to vector<2x32xf32>
    %308 = arith.addf %305, %307 : vector<2x32xf32>
    %309 = vector.extract_strided_slice %269 {offsets = [10, 0], sizes = [2, 128], strides = [1, 1]} : vector<18x128xf32> to vector<2x128xf32>
    %310 = vector.extract_strided_slice %309 {offsets = [0, 32], sizes = [2, 32], strides = [1, 1]} : vector<2x128xf32> to vector<2x32xf32>
    %311 = arith.addf %308, %310 : vector<2x32xf32>
    %312 = vector.extract_strided_slice %269 {offsets = [6, 0], sizes = [2, 128], strides = [1, 1]} : vector<18x128xf32> to vector<2x128xf32>
    %313 = vector.extract_strided_slice %312 {offsets = [0, 64], sizes = [2, 32], strides = [1, 1]} : vector<2x128xf32> to vector<2x32xf32>
    %314 = arith.addf %311, %313 : vector<2x32xf32>
    %315 = vector.extract_strided_slice %269 {offsets = [12, 0], sizes = [2, 128], strides = [1, 1]} : vector<18x128xf32> to vector<2x128xf32>
    %316 = vector.extract_strided_slice %315 {offsets = [0, 96], sizes = [2, 32], strides = [1, 1]} : vector<2x128xf32> to vector<2x32xf32>
    %317 = arith.addf %314, %316 : vector<2x32xf32>
    %318 = vector.broadcast %8 : vector<1x32xf32> to vector<2x32xf32>
    %319 = arith.addf %317, %318 : vector<2x32xf32>
    %cst_61 = arith.constant 0.000000e+00 : f32
    %320 = vector.broadcast %cst_61 : f32 to vector<2x32xf32>
    %321 = arith.maximumf %319, %320 : vector<2x32xf32>
    %322 = vector.extract_strided_slice %270 {offsets = [6, 0], sizes = [2, 32], strides = [1, 1]} : vector<16x32xf32> to vector<2x32xf32>
    %323 = vector.extract_strided_slice %269 {offsets = [6, 0], sizes = [2, 128], strides = [1, 1]} : vector<18x128xf32> to vector<2x128xf32>
    %324 = vector.extract_strided_slice %323 {offsets = [0, 0], sizes = [2, 32], strides = [1, 1]} : vector<2x128xf32> to vector<2x32xf32>
    %325 = arith.addf %322, %324 : vector<2x32xf32>
    %326 = vector.extract_strided_slice %269 {offsets = [8, 0], sizes = [2, 128], strides = [1, 1]} : vector<18x128xf32> to vector<2x128xf32>
    %327 = vector.extract_strided_slice %326 {offsets = [0, 32], sizes = [2, 32], strides = [1, 1]} : vector<2x128xf32> to vector<2x32xf32>
    %328 = arith.addf %325, %327 : vector<2x32xf32>
    %329 = vector.extract_strided_slice %269 {offsets = [8, 0], sizes = [2, 128], strides = [1, 1]} : vector<18x128xf32> to vector<2x128xf32>
    %330 = vector.extract_strided_slice %329 {offsets = [0, 64], sizes = [2, 32], strides = [1, 1]} : vector<2x128xf32> to vector<2x32xf32>
    %331 = arith.addf %328, %330 : vector<2x32xf32>
    %332 = vector.extract_strided_slice %269 {offsets = [10, 0], sizes = [2, 128], strides = [1, 1]} : vector<18x128xf32> to vector<2x128xf32>
    %333 = vector.extract_strided_slice %332 {offsets = [0, 96], sizes = [2, 32], strides = [1, 1]} : vector<2x128xf32> to vector<2x32xf32>
    %334 = arith.addf %331, %333 : vector<2x32xf32>
    %335 = vector.broadcast %8 : vector<1x32xf32> to vector<2x32xf32>
    %336 = arith.addf %334, %335 : vector<2x32xf32>
    %cst_62 = arith.constant 0.000000e+00 : f32
    %337 = vector.broadcast %cst_62 : f32 to vector<2x32xf32>
    %338 = arith.maximumf %336, %337 : vector<2x32xf32>
    %339 = vector.extract_strided_slice %270 {offsets = [8, 0], sizes = [2, 32], strides = [1, 1]} : vector<16x32xf32> to vector<2x32xf32>
    %340 = vector.extract_strided_slice %269 {offsets = [8, 0], sizes = [2, 128], strides = [1, 1]} : vector<18x128xf32> to vector<2x128xf32>
    %341 = vector.extract_strided_slice %340 {offsets = [0, 0], sizes = [2, 32], strides = [1, 1]} : vector<2x128xf32> to vector<2x32xf32>
    %342 = arith.addf %339, %341 : vector<2x32xf32>
    %343 = vector.extract_strided_slice %269 {offsets = [6, 0], sizes = [2, 128], strides = [1, 1]} : vector<18x128xf32> to vector<2x128xf32>
    %344 = vector.extract_strided_slice %343 {offsets = [0, 32], sizes = [2, 32], strides = [1, 1]} : vector<2x128xf32> to vector<2x32xf32>
    %345 = arith.addf %342, %344 : vector<2x32xf32>
    %346 = vector.extract_strided_slice %269 {offsets = [10, 0], sizes = [2, 128], strides = [1, 1]} : vector<18x128xf32> to vector<2x128xf32>
    %347 = vector.extract_strided_slice %346 {offsets = [0, 64], sizes = [2, 32], strides = [1, 1]} : vector<2x128xf32> to vector<2x32xf32>
    %348 = arith.addf %345, %347 : vector<2x32xf32>
    %349 = vector.extract_strided_slice %269 {offsets = [8, 0], sizes = [2, 128], strides = [1, 1]} : vector<18x128xf32> to vector<2x128xf32>
    %350 = vector.extract_strided_slice %349 {offsets = [0, 96], sizes = [2, 32], strides = [1, 1]} : vector<2x128xf32> to vector<2x32xf32>
    %351 = arith.addf %348, %350 : vector<2x32xf32>
    %352 = vector.broadcast %8 : vector<1x32xf32> to vector<2x32xf32>
    %353 = arith.addf %351, %352 : vector<2x32xf32>
    %cst_63 = arith.constant 0.000000e+00 : f32
    %354 = vector.broadcast %cst_63 : f32 to vector<2x32xf32>
    %355 = arith.maximumf %353, %354 : vector<2x32xf32>
    %356 = vector.extract_strided_slice %270 {offsets = [10, 0], sizes = [2, 32], strides = [1, 1]} : vector<16x32xf32> to vector<2x32xf32>
    %357 = vector.extract_strided_slice %269 {offsets = [10, 0], sizes = [2, 128], strides = [1, 1]} : vector<18x128xf32> to vector<2x128xf32>
    %358 = vector.extract_strided_slice %357 {offsets = [0, 0], sizes = [2, 32], strides = [1, 1]} : vector<2x128xf32> to vector<2x32xf32>
    %359 = arith.addf %356, %358 : vector<2x32xf32>
    %360 = vector.extract_strided_slice %269 {offsets = [4, 0], sizes = [2, 128], strides = [1, 1]} : vector<18x128xf32> to vector<2x128xf32>
    %361 = vector.extract_strided_slice %360 {offsets = [0, 32], sizes = [2, 32], strides = [1, 1]} : vector<2x128xf32> to vector<2x32xf32>
    %362 = arith.addf %359, %361 : vector<2x32xf32>
    %363 = vector.extract_strided_slice %269 {offsets = [12, 0], sizes = [2, 128], strides = [1, 1]} : vector<18x128xf32> to vector<2x128xf32>
    %364 = vector.extract_strided_slice %363 {offsets = [0, 64], sizes = [2, 32], strides = [1, 1]} : vector<2x128xf32> to vector<2x32xf32>
    %365 = arith.addf %362, %364 : vector<2x32xf32>
    %366 = vector.extract_strided_slice %269 {offsets = [6, 0], sizes = [2, 128], strides = [1, 1]} : vector<18x128xf32> to vector<2x128xf32>
    %367 = vector.extract_strided_slice %366 {offsets = [0, 96], sizes = [2, 32], strides = [1, 1]} : vector<2x128xf32> to vector<2x32xf32>
    %368 = arith.addf %365, %367 : vector<2x32xf32>
    %369 = vector.broadcast %8 : vector<1x32xf32> to vector<2x32xf32>
    %370 = arith.addf %368, %369 : vector<2x32xf32>
    %cst_64 = arith.constant 0.000000e+00 : f32
    %371 = vector.broadcast %cst_64 : f32 to vector<2x32xf32>
    %372 = arith.maximumf %370, %371 : vector<2x32xf32>
    %373 = vector.extract_strided_slice %270 {offsets = [12, 0], sizes = [2, 32], strides = [1, 1]} : vector<16x32xf32> to vector<2x32xf32>
    %374 = vector.extract_strided_slice %269 {offsets = [12, 0], sizes = [2, 128], strides = [1, 1]} : vector<18x128xf32> to vector<2x128xf32>
    %375 = vector.extract_strided_slice %374 {offsets = [0, 0], sizes = [2, 32], strides = [1, 1]} : vector<2x128xf32> to vector<2x32xf32>
    %376 = arith.addf %373, %375 : vector<2x32xf32>
    %377 = vector.extract_strided_slice %269 {offsets = [2, 0], sizes = [2, 128], strides = [1, 1]} : vector<18x128xf32> to vector<2x128xf32>
    %378 = vector.extract_strided_slice %377 {offsets = [0, 32], sizes = [2, 32], strides = [1, 1]} : vector<2x128xf32> to vector<2x32xf32>
    %379 = arith.addf %376, %378 : vector<2x32xf32>
    %380 = vector.extract_strided_slice %269 {offsets = [14, 0], sizes = [2, 128], strides = [1, 1]} : vector<18x128xf32> to vector<2x128xf32>
    %381 = vector.extract_strided_slice %380 {offsets = [0, 64], sizes = [2, 32], strides = [1, 1]} : vector<2x128xf32> to vector<2x32xf32>
    %382 = arith.addf %379, %381 : vector<2x32xf32>
    %383 = vector.extract_strided_slice %269 {offsets = [4, 0], sizes = [2, 128], strides = [1, 1]} : vector<18x128xf32> to vector<2x128xf32>
    %384 = vector.extract_strided_slice %383 {offsets = [0, 96], sizes = [2, 32], strides = [1, 1]} : vector<2x128xf32> to vector<2x32xf32>
    %385 = arith.addf %382, %384 : vector<2x32xf32>
    %386 = vector.broadcast %8 : vector<1x32xf32> to vector<2x32xf32>
    %387 = arith.addf %385, %386 : vector<2x32xf32>
    %cst_65 = arith.constant 0.000000e+00 : f32
    %388 = vector.broadcast %cst_65 : f32 to vector<2x32xf32>
    %389 = arith.maximumf %387, %388 : vector<2x32xf32>
    %390 = vector.extract_strided_slice %270 {offsets = [14, 0], sizes = [2, 32], strides = [1, 1]} : vector<16x32xf32> to vector<2x32xf32>
    %391 = vector.extract_strided_slice %269 {offsets = [14, 0], sizes = [2, 128], strides = [1, 1]} : vector<18x128xf32> to vector<2x128xf32>
    %392 = vector.extract_strided_slice %391 {offsets = [0, 0], sizes = [2, 32], strides = [1, 1]} : vector<2x128xf32> to vector<2x32xf32>
    %393 = arith.addf %390, %392 : vector<2x32xf32>
    %394 = vector.extract_strided_slice %269 {offsets = [0, 0], sizes = [2, 128], strides = [1, 1]} : vector<18x128xf32> to vector<2x128xf32>
    %395 = vector.extract_strided_slice %394 {offsets = [0, 32], sizes = [2, 32], strides = [1, 1]} : vector<2x128xf32> to vector<2x32xf32>
    %396 = arith.addf %393, %395 : vector<2x32xf32>
    %397 = vector.extract_strided_slice %269 {offsets = [16, 0], sizes = [2, 128], strides = [1, 1]} : vector<18x128xf32> to vector<2x128xf32>
    %398 = vector.extract_strided_slice %397 {offsets = [0, 64], sizes = [2, 32], strides = [1, 1]} : vector<2x128xf32> to vector<2x32xf32>
    %399 = arith.addf %396, %398 : vector<2x32xf32>
    %400 = vector.extract_strided_slice %269 {offsets = [2, 0], sizes = [2, 128], strides = [1, 1]} : vector<18x128xf32> to vector<2x128xf32>
    %401 = vector.extract_strided_slice %400 {offsets = [0, 96], sizes = [2, 32], strides = [1, 1]} : vector<2x128xf32> to vector<2x32xf32>
    %402 = arith.addf %399, %401 : vector<2x32xf32>
    %403 = vector.broadcast %8 : vector<1x32xf32> to vector<2x32xf32>
    %404 = arith.addf %402, %403 : vector<2x32xf32>
    %cst_66 = arith.constant 0.000000e+00 : f32
    %405 = vector.broadcast %cst_66 : f32 to vector<2x32xf32>
    %406 = arith.maximumf %404, %405 : vector<2x32xf32>
    %407 = tpu.concatenate %287, %304, %321, %338, %355, %372, %389, %406 in 1 : vector<2x32xf32>, vector<2x32xf32>, vector<2x32xf32>, vector<2x32xf32>, vector<2x32xf32>, vector<2x32xf32>, vector<2x32xf32>, vector<2x32xf32> -> vector<2x256xf32>
    %c0_67 = arith.constant 0 : index
    %c0_68 = arith.constant 0 : index
    %408 = vector.load %arg5[%c0_67, %c0_68] : memref<2x256xf32, #tpu.memory_space<vmem>>, vector<2x256xf32>
    tpu.vector_store %arg5[%c0_67, %c0_68], %407 {strides = array<i32>} : memref<2x256xf32, #tpu.memory_space<vmem>>, vector<2x256xf32>,
    return
  }
}

</mosaic_0001>

<bundles_post_ra>
// kernel: learnable_elmo_forward.1
= control target key start
LH: loop header
LB: loop body
LE: loop exit
PB: predicated region body
PF: predicated region fallthrough
CT: control target
= control target key end

     0   :  { %11 = vsyncpa [#allocation3], 0  ;;  %s4301_s0 = inlined_call_operand.vmem [shape: s32[16,1], index: 0, kind: input, shape index: {}]   ;;  %s4302_s1 = inlined_call_operand.vmem [shape: f32[64,32], index: 1, kind: input, shape index: {}]   ;;  %s4303_s2 = inlined_call_operand.hbm [shape: f32[193,512], index: 2, kind: input, shape index: {}]   ;;  %s4304_s3 = inlined_call_operand.hbm [shape: f32[297,128], index: 3, kind: input, shape index: {}]   ;;  %s4305_s4 = inlined_call_operand.vmem [shape: f32[2,128], index: 4, kind: output, shape index: {0}]   ;;  %s4306_s5 = inlined_call_operand.vmem [shape: f32[2,256], index: 5, kind: output, shape index: {1}]  }
   0x1   :  { %12 = vsyncpa [#allocation5], 0  ;;  %s3099_s18 = smov [#allocation2]  }
   0x2   :  { %s22_s19 = sshll.u32 %s3099_s18, 4  ;;  %s23_s19 = int_to_ptr.vmem [resolvable:$true] %s22_s19 }
   0x3   :  { %s3063_s20 = scalar_lea.vmem %s23_s19, 12800  ;;  %p3068_p1 = scmp.lt.s32.totalorder %s23_s19, %s23_s19 }
   0x4   :  { %p3064_p0 = scmp.ne.s32.totalorder %s23_s19, %s3063_s20  ;;  %p3069_p2 = scmp.lt.s32.totalorder %s3063_s20, %s3063_s20 }
   0x6   :  { %p3070_p3 = por %p3069_p2, %p3068_p1 }
   0x8   :  { %p3071_p4 = pnand %p3070_p3, %p3064_p0 }
   0xa   :  { %3074 = shalt.err (!%p3071_p4)
}
   0xb   :  { %s3100_s21 = smov 512   ;;  %s3101_s22 = smov 32  }
   0xc   :  { %28 = dma.hbm_to_vmem [thread:$0]  %s4303_s2, 12800, %s23_s19, [#allocation3], %s3100_s21, %s3100_s21, %s3101_s22  }
   0xd   :  { %s3102_s25 = smov [#allocation4]  }
   0xe   :  { %s34_s26 = sshll.u32 %s3102_s25, 4  ;;  %s35_s26 = int_to_ptr.vmem [resolvable:$true] %s34_s26 }
   0xf   :  { %s3083_s27 = scalar_lea.vmem %s35_s26, 4864  ;;  %p3088_p6 = scmp.lt.s32.totalorder %s35_s26, %s35_s26 }
  0x10   :  { %p3084_p5 = scmp.ne.s32.totalorder %s35_s26, %s3083_s27  ;;  %p3089_p7 = scmp.lt.s32.totalorder %s3083_s27, %s3083_s27 }
  0x12   :  { %p3090_p8 = por %p3089_p7, %p3088_p6 }
  0x14   :  { %p3091_p9 = pnand %p3090_p8, %p3084_p5 }
  0x16   :  { %3094 = shalt.err (!%p3091_p9)
}
  0x17   :  { %s3103_s28 = smov 128   ;;  %s3104_s29 = smov 8  }
  0x18   :  { %40 = dma.hbm_to_vmem [thread:$0]  %s4304_s3, 4864, %s35_s26, [#allocation5], %s3103_s28, %s3103_s28, %s3104_s29  }
  0x19   :  { %3095 = dma.done.wait [#allocation3], 12800  }
  0x1a   :  { %3096 = vsyncadd [#allocation3], 4294954496 }
  0x1b   :  { %3097 = dma.done.wait [#allocation5], 4864  }
  0x1c   :  { %3098 = vsyncadd [#allocation5], 4294962432  ;;  %v3105_v0 = vmov 0   ;;  %v4307_v1 = vmov 0.0   ;;  %v183_v2 = vld [vmem:[%s4301_s0] sm:$0xff]  ;;  %v206_v3 = vld [vmem:[%s4302_s1 + $0x38] sm:$0xff]  ;;  %v4309_v19 = vlaneseq }
  0x1d   :  { %2828 = vset.pattern.permute.xlu0 %v3105_v0  ;;  %360 = vmatprep.mubr.f32.mxu1 %v4307_v1  ;;  %v205_v4 = vld [vmem:[%s4302_s1 + $0x30] sm:$0xff]  ;;  %v184_v5 = vld [vmem:[%s4301_s0 + $0x8] sm:$0xff]  ;;  %v59_v8 = vld [vmem:[#allocation2 + $0x60] sm:$0xff]  ;;  %vm207_vm0 = vcmask 523264   ;;  %vm289_vm3 = vcmask 261120   ;;  %vm2285_vm5 = vcmask 1041408  }
  0x1e   :  { %188 = vperm.xlu0 %2828, %v183_v2   ;;  %2711 = vmatprep.subr.mxu0 %v206_v3  ;;  %v204_v6 = vld [vmem:[%s4302_s1 + $0x28] sm:$0xff]  ;;  %v203_v9 = vld [vmem:[%s4302_s1 + $0x20] sm:$0xff]  ;;  %v202_v12 = vld [vmem:[%s4302_s1 + $0x18] sm:$0xff]  ;;  %v3179_v20 = vand.u32 127, %v4309_v19  ;;  %vm2287_vm6 = vcmask 1043456   ;;  %vm2289_vm7 = vcmask 1045504  }
  0x1f   :  { %2712 = vmatpush3.msra.mxu0 %v206_v3  ;;  %v60_v7 = vld [vmem:[#allocation2 + $0x68] sm:$0xff]  ;;  %v55_v11 = vld [vmem:[#allocation2 + $0x40] sm:$0xff]  ;;  %v201_v15 = vld [vmem:[%s4302_s1 + $0x10] sm:$0xff]  ;;  %vm3107_vm8 = vmmov 0   ;;  %s3109_s25 = smov 96   ;;  %vm2567_vm13 = vcmask 785408  }
  0x20   :  { %2713 = vmatprep.subr.mxu0 %v205_v4  ;;  %320 = vmatprep.subr.mxu1 %v60_v7  ;;  %v56_v10 = vld [vmem:[#allocation2 + $0x48] sm:$0xff]  ;;  %v51_v14 = vld [vmem:[#allocation2 + $0x20] sm:$0xff]  ;;  %4446 = vst [vmem:[#allocation8_spill] sm:$0xff] %v3179_v20  ;;  %v62_v34 = vld [vmem:[#allocation2 + $0x78] sm:$0xff]  ;;  %vm697_vm4 = vcmp.lt.s32.totalorder %v3179_v20, 64 }
  0x21   :  { %2714 = vmatpush3.msra.mxu0 %v205_v4  ;;  %321 = vmatpush1.msra.mxu1 %v59_v8  ;;  %v52_v13 = vld [vmem:[#allocation2 + $0x28] sm:$0xff]  ;;  %v199_v17 = vld [vmem:[%s4302_s1] sm:$0xff]  ;;  %v61_v36 = vld [vmem:[#allocation2 + $0x70] sm:$0xff] }
  0x22   :  { %191 = vperm.xlu0 %2828, %v184_v5   ;;  %2715 = vmatprep.subr.mxu0 %v204_v6  ;;  %v200_v16 = vld [vmem:[%s4302_s1 + $0x8] sm:$0xff]  ;;  %v75_v24 = vld [vmem:[#allocation2 + $0xe0] sm:$0xff]  ;;  %v58_v38 = vld [vmem:[#allocation2 + $0x58] sm:$0xff]  ;;  %s3108_s1 = smov 64  }
  0x23   :  { %2716 = vmatpush3.msra.mxu0 %v204_v6  ;;  %322 = vmatprep.subr.mxu1 %v56_v10  ;;  %v76_v18 = vld [vmem:[#allocation2 + $0xe8] sm:$0xff]  ;;  %v71_v27 = vld [vmem:[#allocation2 + $0xc0] sm:$0xff]  ;;  %v57_v39 = vld [vmem:[#allocation2 + $0x50] sm:$0xff] }
  0x24   :  { %2717 = vmatprep.subr.mxu0 %v203_v9  ;;  %323 = vmatpush1.msra.mxu1 %v55_v11  ;;  %v72_v26 = vld [vmem:[#allocation2 + $0xc8] sm:$0xff]  ;;  %v67_v29 = vld [vmem:[#allocation2 + $0xa0] sm:$0xff]  ;;  %v54_v40 = vld [vmem:[#allocation2 + $0x38] sm:$0xff] }
  0x25   :  { %2718 = vmatpush3.msra.mxu0 %v203_v9  ;;  %324 = vmatprep.subr.mxu1 %v52_v13  ;;  %v68_v28 = vld [vmem:[#allocation2 + $0xa8] sm:$0xff]  ;;  %v47_v31 = vld [vmem:[#allocation2] sm:$0xff]  ;;  %v53_v41 = vld [vmem:[#allocation2 + $0x30] sm:$0xff] }
  0x26   :  { %2719 = vmatprep.subr.mxu0 %v202_v12  ;;  %325 = vmatpush1.msra.mxu1 %v51_v14  ;;  %v48_v30 = vld [vmem:[#allocation2 + $0x8] sm:$0xff]  ;;  %v63_v33 = vld [vmem:[#allocation2 + $0x80] sm:$0xff]  ;;  %v50_v42 = vld [vmem:[#allocation2 + $0x18] sm:$0xff] }
  0x27   :  { %2720 = vmatpush3.msra.mxu0 %v202_v12  ;;  %v64_v32 = vld [vmem:[#allocation2 + $0x88] sm:$0xff]  ;;  %326 = vmatprep.subr.mxu1 %v48_v30  ;;  %v49_v43 = vld [vmem:[#allocation2 + $0x10] sm:$0xff]  ;;  %v78_v44 = vld [vmem:[#allocation2 + $0xf8] sm:$0xff] }
  0x28   :  { %2721 = vmatprep.subr.mxu0 %v201_v15  ;;  %327 = vmatpush1.msra.mxu1 %v47_v31  ;;  %v77_v45 = vld [vmem:[#allocation2 + $0xf0] sm:$0xff]  ;;  %v74_v46 = vld [vmem:[#allocation2 + $0xd8] sm:$0xff]  ;;  %v3216_v52 = vld [vmem:[#allocation2 + $0x2e8] sm:$0xff] }
  0x29   :  { %2722 = vmatpush3.msra.mxu0 %v201_v15  ;;  %397 = vmatprep.subr.mxu1 %v62_v34  ;;  %v73_v47 = vld [vmem:[#allocation2 + $0xd0] sm:$0xff]  ;;  %v70_v48 = vld [vmem:[#allocation2 + $0xb8] sm:$0xff]  ;;  %4449 = vst [vmem:[#allocation11_spill] sm:$0xff] %v3216_v52  ;;  %v3222_v54 = vld [vmem:[#allocation2 + $0x2e0] sm:$0xff] }
  0x2a   :  { %2723 = vmatprep.subr.mxu0 %v200_v16  ;;  %v69_v49 = vld [vmem:[#allocation2 + $0xb0] sm:$0xff]  ;;  %v66_v50 = vld [vmem:[#allocation2 + $0x98] sm:$0xff]  ;;  %v3228_v56 = vld [vmem:[#allocation2 + $0x2c8] sm:$0xff] }
  0x2b   :  { %2724 = vmatpush3.msra.mxu0 %v200_v16  ;;  %v65_v51 = vld [vmem:[#allocation2 + $0x90] sm:$0xff]  ;;  %v3218_v53 = vld [vmem:[#allocation2 + $0x2f8] sm:$0xff]  ;;  %v3234_v58 = vld [vmem:[#allocation2 + $0x2c0] sm:$0xff] }
  0x2c   :  { %2725 = vmatprep.subr.mxu0 %v199_v17  ;;  %4450 = vst [vmem:[#allocation12_spill] sm:$0xff] %v3218_v53  ;;  %v3224_v55 = vld [vmem:[#allocation2 + $0x2f0] sm:$0xff]  ;;  %v3230_v57 = vld [vmem:[#allocation2 + $0x2d8] sm:$0xff]  ;;  %v3240_v60 = vld [vmem:[#allocation2 + $0x2a8] sm:$0xff] }
  0x2d   :  { %2726 = vmatpush3.msra.mxu0 %v199_v17  ;;  %v3236_v59 = vld [vmem:[#allocation2 + $0x2d0] sm:$0xff]  ;;  %v3242_v61 = vld [vmem:[#allocation2 + $0x2b8] sm:$0xff]  ;;  %v3246_v62 = vld [vmem:[#allocation2 + $0x2a0] sm:$0xff] }
  0x2e   :  { %474 = vmatprep.subr.mxu0 %v76_v18  ;;  %v3248_v63 = vld [vmem:[#allocation2 + $0x2b0] sm:$0xff]  ;;  %v3252_v0 = vld [vmem:[#allocation2 + $0x288] sm:$0xff]  ;;  %v3254_v2 = vld [vmem:[#allocation2 + $0x298] sm:$0xff] }
  0x2f   :  { %v3258_v3 = vld [vmem:[#allocation2 + $0x280] sm:$0xff]  ;;  %v3260_v4 = vld [vmem:[#allocation2 + $0x290] sm:$0xff]  ;;  %v3264_v5 = vld [vmem:[#allocation2 + $0x268] sm:$0xff] }
  0x30   :  { %v3266_v6 = vld [vmem:[#allocation2 + $0x278] sm:$0xff]  ;;  %v3268_v7 = vld [vmem:[#allocation2 + $0x260] sm:$0xff]  ;;  %v3272_v8 = vld [vmem:[#allocation2 + $0x270] sm:$0xff] }
  0x31   :  { %v3274_v9 = vld [vmem:[#allocation2 + $0x248] sm:$0xff]  ;;  %v3276_v10 = vld [vmem:[#allocation2 + $0x258] sm:$0xff]  ;;  %v3280_v11 = vld [vmem:[#allocation2 + $0x240] sm:$0xff] }
  0x32   :  { %v3282_v12 = vld [vmem:[#allocation2 + $0x250] sm:$0xff]  ;;  %v3284_v13 = vld [vmem:[#allocation2 + $0x228] sm:$0xff]  ;;  %v3288_v14 = vld [vmem:[#allocation2 + $0x238] sm:$0xff] }
  0x33   :  { %v3290_v15 = vld [vmem:[#allocation2 + $0x220] sm:$0xff]  ;;  %v3292_v16 = vld [vmem:[#allocation2 + $0x230] sm:$0xff]  ;;  %v3296_v17 = vld [vmem:[#allocation2 + $0x208] sm:$0xff] }
  0x34   :  { %v3298_v18 = vld [vmem:[#allocation2 + $0x218] sm:$0xff]  ;;  %v3328_v30 = vld [vmem:[#allocation2 + $0x1d0] sm:$0xff]  ;;  %v3332_v31 = vld [vmem:[#allocation2 + $0x1a8] sm:$0xff] }
  0x35   :  { %4451 = vst [vmem:[#allocation13_spill] sm:$0xff] %v3328_v30  ;;  %4452 = vst [vmem:[#allocation14_spill] sm:$0xff] %v3332_v31  ;;  %v3340_v34 = vld [vmem:[#allocation2 + $0x1b0] sm:$0xff]  ;;  %v3392_v19 = vld [vmem:[#allocation2 + $0x108] sm:$0xff] }
  0x36   :  { %4455 = vst [vmem:[#allocation17_spill] sm:$0xff] %v3340_v34  ;;  %4472 = vst [vmem:[#allocation34_spill] sm:$0xff] %v3392_v19 }
  0x99   :  { %v189_v21 = vpop.permute.xlu0 %188 }
  0x9a   :  { %vm193_vm1 = vcmp.eq.s32.totalorder %v189_v21, %v3179_v20  ;;  %v3302_v21 = vld [vmem:[#allocation2 + $0x200] sm:$0xff] }
  0x9b   :  { %v2594_v22 = vsel %vm193_vm1, 1.0, %v4307_v1 }
  0x9c   :  { %2727 = vmatprep.mubr.msk.f32.mxu0 %vm207_vm0, %v2594_v22  ;;  %v3304_v22 = vld [vmem:[#allocation2 + $0x210] sm:$0xff] }
  0x9d   :  { %v192_v23 = vpop.permute.xlu0 %191 }
  0x9e   :  { %vm194_vm2 = vcmp.eq.s32.totalorder %v192_v23, %v3179_v20  ;;  %v3308_v23 = vld [vmem:[#allocation2 + $0x1e8] sm:$0xff] }
  0x9f   :  { %v2595_v25 = vsel %vm194_vm2, 1.0, %v4307_v1 }
  0xa0   :  { %2728 = vmatmul.mubr.msk.f32.vlgmr.msra.gmra.mxu0 %vm207_vm0, %v2595_v25  ;;  %v3314_v25 = vld [vmem:[#allocation2 + $0x1e0] sm:$0xff] }
  0xa1   :  { %475 = vmatpush1.msra.mxu0 %v75_v24  ;;  %514 = vmatprep.mubr.f32.mxu0 %v4307_v1  ;;  %v3310_v24 = vld [vmem:[#allocation2 + $0x1f8] sm:$0xff] }
  0xa2   :  { %476 = vmatprep.subr.mxu0 %v72_v26  ;;  %v3316_v26 = vld [vmem:[#allocation2 + $0x1f0] sm:$0xff] }
  0xa3   :  { %477 = vmatpush1.msra.mxu0 %v71_v27  ;;  %v3320_v27 = vld [vmem:[#allocation2 + $0x1c8] sm:$0xff] }
  0xa4   :  { %478 = vmatprep.subr.mxu0 %v68_v28  ;;  %v3322_v28 = vld [vmem:[#allocation2 + $0x1d8] sm:$0xff] }
  0xa5   :  { %479 = vmatpush1.msra.mxu0 %v67_v29  ;;  %v3326_v29 = vld [vmem:[#allocation2 + $0x1c0] sm:$0xff] }
  0xa6   :  { %480 = vmatprep.subr.mxu0 %v64_v32  ;;  %v3334_v32 = vld [vmem:[#allocation2 + $0x1b8] sm:$0xff] }
  0xa7   :  { %481 = vmatpush1.msra.mxu0 %v63_v33  ;;  %4453 = vst [vmem:[#allocation15_spill] sm:$0xff] %v3334_v32  ;;  %v3338_v33 = vld [vmem:[#allocation2 + $0x1a0] sm:$0xff] }
  0xa8   :  { %753 = vmatprep.subr.mxu0 %v3216_v52  ;;  %4454 = vst [vmem:[#allocation16_spill] sm:$0xff] %v3338_v33 }
 0x160   :  { %v3188_v35 = vpop.f32.mrf.mxu0 }
 0x161   :  { %4447 = vst [vmem:[#allocation9_spill] sm:$0xff] %v3188_v35 }
 0x162   :  { %v3190_v37 = vpop.f32.mrf.mxu0 }
 0x163   :  { %4448 = vst [vmem:[#allocation10_spill] sm:$0xff] %v3190_v37  ;;  %2598 = vmatmul.mubr.msk.f32.vlgmr.msra.gmra.mxu1 %vm289_vm3, %v3190_v37  ;;  %2602 = vmatmul.mubr.msk.f32.vlgmr.msra.gmra.mxu0 %vm289_vm3, %v3190_v37 }
 0x164   :  { %398 = vmatpush1.msra.mxu1 %v61_v36  ;;  %366 = vmatprep.mubr.f32.mxu1 %v4307_v1  ;;  %v3344_v36 = vld [vmem:[#allocation2 + $0x188] sm:$0xff] }
 0x165   :  { %399 = vmatprep.subr.mxu1 %v58_v38  ;;  %520 = vmatprep.mubr.f32.mxu0 %v4307_v1  ;;  %4456 = vst [vmem:[#allocation18_spill] sm:$0xff] %v3344_v36  ;;  %v3346_v38 = vld [vmem:[#allocation2 + $0x198] sm:$0xff] }
 0x166   :  { %400 = vmatpush1.msra.mxu1 %v57_v39  ;;  %754 = vmatpush1.msra.mxu0 %v3222_v54  ;;  %4457 = vst [vmem:[#allocation19_spill] sm:$0xff] %v3346_v38  ;;  %v3350_v39 = vld [vmem:[#allocation2 + $0x180] sm:$0xff] }
 0x167   :  { %401 = vmatprep.subr.mxu1 %v54_v40  ;;  %2599 = vmatmul.mubr.msk.f32.gmra.mxu1 %vm289_vm3, %v3188_v35  ;;  %4458 = vst [vmem:[#allocation20_spill] sm:$0xff] %v3350_v39  ;;  %v3352_v40 = vld [vmem:[#allocation2 + $0x190] sm:$0xff] }
 0x168   :  { %402 = vmatpush1.msra.mxu1 %v53_v41  ;;  %2603 = vmatmul.mubr.msk.f32.gmra.mxu0 %vm289_vm3, %v3188_v35  ;;  %4459 = vst [vmem:[#allocation21_spill] sm:$0xff] %v3352_v40  ;;  %v3356_v41 = vld [vmem:[#allocation2 + $0x168] sm:$0xff] }
 0x169   :  { %403 = vmatprep.subr.mxu1 %v50_v42  ;;  %437 = vmatprep.mubr.f32.mxu1 %v4307_v1  ;;  %4460 = vst [vmem:[#allocation22_spill] sm:$0xff] %v3356_v41  ;;  %v3358_v42 = vld [vmem:[#allocation2 + $0x178] sm:$0xff] }
 0x16a   :  { %404 = vmatpush1.msra.mxu1 %v49_v43  ;;  %817 = vmatprep.mubr.f32.mxu0 %v4307_v1  ;;  %4461 = vst [vmem:[#allocation23_spill] sm:$0xff] %v3358_v42  ;;  %v3362_v43 = vld [vmem:[#allocation2 + $0x160] sm:$0xff] }
 0x16b   :  { %551 = vmatprep.subr.mxu1 %v78_v44  ;;  %2600 = vmatmul.mubr.msk.f32.vlgmr.msra.gmra.mxu1 %vm289_vm3, %v3190_v37  ;;  %4462 = vst [vmem:[#allocation24_spill] sm:$0xff] %v3362_v43  ;;  %v3364_v44 = vld [vmem:[#allocation2 + $0x170] sm:$0xff] }
 0x16c   :  { %552 = vmatpush1.msra.mxu1 %v77_v45  ;;  %443 = vmatprep.mubr.f32.mxu1 %v4307_v1  ;;  %4463 = vst [vmem:[#allocation25_spill] sm:$0xff] %v3364_v44  ;;  %v3368_v45 = vld [vmem:[#allocation2 + $0x148] sm:$0xff] }
 0x16d   :  { %553 = vmatprep.subr.mxu1 %v74_v46  ;;  %755 = vmatprep.subr.mxu0 %v3228_v56  ;;  %4464 = vst [vmem:[#allocation26_spill] sm:$0xff] %v3368_v45  ;;  %v3370_v46 = vld [vmem:[#allocation2 + $0x158] sm:$0xff] }
 0x16e   :  { %554 = vmatpush1.msra.mxu1 %v73_v47  ;;  %756 = vmatpush1.msra.mxu0 %v3234_v58  ;;  %4465 = vst [vmem:[#allocation27_spill] sm:$0xff] %v3370_v46  ;;  %v3374_v47 = vld [vmem:[#allocation2 + $0x140] sm:$0xff] }
 0x16f   :  { %555 = vmatprep.subr.mxu1 %v70_v48  ;;  %2601 = vmatmul.mubr.msk.f32.gmra.mxu1 %vm289_vm3, %v3188_v35  ;;  %4466 = vst [vmem:[#allocation28_spill] sm:$0xff] %v3374_v47  ;;  %v3376_v48 = vld [vmem:[#allocation2 + $0x150] sm:$0xff] }
 0x170   :  { %556 = vmatpush1.msra.mxu1 %v69_v49  ;;  %591 = vmatprep.mubr.f32.mxu1 %v4307_v1  ;;  %4467 = vst [vmem:[#allocation29_spill] sm:$0xff] %v3376_v48  ;;  %v3380_v49 = vld [vmem:[#allocation2 + $0x128] sm:$0xff] }
 0x171   :  { %557 = vmatprep.subr.mxu1 %v66_v50  ;;  %757 = vmatprep.subr.mxu0 %v3240_v60  ;;  %4468 = vst [vmem:[#allocation30_spill] sm:$0xff] %v3380_v49  ;;  %v3382_v50 = vld [vmem:[#allocation2 + $0x138] sm:$0xff] }
 0x172   :  { %558 = vmatpush1.msra.mxu1 %v65_v51  ;;  %758 = vmatpush1.msra.mxu0 %v3246_v62  ;;  %4469 = vst [vmem:[#allocation31_spill] sm:$0xff] %v3382_v50  ;;  %v3386_v51 = vld [vmem:[#allocation2 + $0x120] sm:$0xff] }
 0x173   :  { %2604 = vmatmul.mubr.msk.f32.vlgmr.msra.gmra.mxu1 %vm289_vm3, %v3190_v37  ;;  %824 = vmatprep.subr.mxu1 %v3218_v53  ;;  %4470 = vst [vmem:[#allocation32_spill] sm:$0xff] %v3386_v51  ;;  %v3398_v37 = vld [vmem:[#allocation2 + $0x100] sm:$0xff] }
 0x174   :  { %597 = vmatprep.mubr.f32.mxu1 %v4307_v1  ;;  %825 = vmatpush1.msra.mxu1 %v3224_v55  ;;  %4474 = vst [vmem:[#allocation36_spill] sm:$0xff] %v3398_v37 }
 0x175   :  { %826 = vmatprep.subr.mxu1 %v3230_v57  ;;  %759 = vmatprep.subr.mxu0 %v3252_v0 }
 0x176   :  { %827 = vmatpush1.msra.mxu1 %v3236_v59  ;;  %760 = vmatpush1.msra.mxu0 %v3258_v3  ;;  %v4513_v20 = vld [vmem:[#allocation28_spill] sm:$0xff] }
 0x177   :  { %2605 = vmatmul.mubr.msk.f32.gmra.mxu1 %vm289_vm3, %v3188_v35  ;;  %828 = vmatprep.subr.mxu1 %v3242_v61  ;;  %v3394_v35 = vld [vmem:[#allocation2 + $0x118] sm:$0xff] }
 0x178   :  { %888 = vmatprep.mubr.f32.mxu1 %v4307_v1  ;;  %829 = vmatpush1.msra.mxu1 %v3248_v63  ;;  %v3388_v1 = vld [vmem:[#allocation2 + $0x130] sm:$0xff]  ;;  %4473 = vst [vmem:[#allocation35_spill] sm:$0xff] %v3394_v35 }
 0x179   :  { %830 = vmatprep.subr.mxu1 %v3254_v2  ;;  %761 = vmatprep.subr.mxu0 %v3264_v5  ;;  %4471 = vst [vmem:[#allocation33_spill] sm:$0xff] %v3388_v1 }
 0x17a   :  { %831 = vmatpush1.msra.mxu1 %v3260_v4  ;;  %762 = vmatpush1.msra.mxu0 %v3268_v7 }
 0x17b   :  { %832 = vmatprep.subr.mxu1 %v3266_v6  ;;  %763 = vmatprep.subr.mxu0 %v3274_v9 }
 0x17c   :  { %833 = vmatpush1.msra.mxu1 %v3272_v8  ;;  %764 = vmatpush1.msra.mxu0 %v3280_v11 }
 0x17d   :  { %834 = vmatprep.subr.mxu1 %v3276_v10  ;;  %765 = vmatprep.subr.mxu0 %v3284_v13 }
 0x17e   :  { %835 = vmatpush1.msra.mxu1 %v3282_v12  ;;  %766 = vmatpush1.msra.mxu0 %v3290_v15 }
 0x17f   :  { %836 = vmatprep.subr.mxu1 %v3288_v14  ;;  %767 = vmatprep.subr.mxu0 %v3296_v17 }
 0x180   :  { %837 = vmatpush1.msra.mxu1 %v3292_v16  ;;  %768 = vmatpush1.msra.mxu0 %v3302_v21 }
 0x181   :  { %838 = vmatprep.subr.mxu1 %v3298_v18  ;;  %769 = vmatprep.subr.mxu0 %v3308_v23 }
 0x182   :  { %839 = vmatpush1.msra.mxu1 %v3304_v22  ;;  %770 = vmatpush1.msra.mxu0 %v3314_v25 }
 0x183   :  { %840 = vmatprep.subr.mxu1 %v3310_v24  ;;  %771 = vmatprep.subr.mxu0 %v3320_v27 }
 0x184   :  { %841 = vmatpush1.msra.mxu1 %v3316_v26  ;;  %772 = vmatpush1.msra.mxu0 %v3326_v29 }
 0x185   :  { %842 = vmatprep.subr.mxu1 %v3322_v28  ;;  %773 = vmatprep.subr.mxu0 %v3332_v31 }
 0x186   :  { %843 = vmatpush1.msra.mxu1 %v3328_v30  ;;  %774 = vmatpush1.msra.mxu0 %v3338_v33 }
 0x187   :  { %844 = vmatprep.subr.mxu1 %v3334_v32  ;;  %775 = vmatprep.subr.mxu0 %v3344_v36 }
 0x188   :  { %845 = vmatpush1.msra.mxu1 %v3340_v34  ;;  %776 = vmatpush1.msra.mxu0 %v3350_v39 }
 0x189   :  { %846 = vmatprep.subr.mxu1 %v3346_v38  ;;  %777 = vmatprep.subr.mxu0 %v3356_v41 }
 0x18a   :  { %847 = vmatpush1.msra.mxu1 %v3352_v40  ;;  %778 = vmatpush1.msra.mxu0 %v3362_v43 }
 0x18b   :  { %848 = vmatprep.subr.mxu1 %v3358_v42  ;;  %779 = vmatprep.subr.mxu0 %v3368_v45  ;;  %v3400_v45 = vld [vmem:[#allocation2 + $0x110] sm:$0xff] }
 0x18c   :  { %849 = vmatpush1.msra.mxu1 %v3364_v44  ;;  %780 = vmatpush1.msra.mxu0 %v3374_v47  ;;  %4475 = vst [vmem:[#allocation37_spill] sm:$0xff] %v3400_v45 }
 0x18d   :  { %850 = vmatprep.subr.mxu1 %v3370_v46  ;;  %781 = vmatprep.subr.mxu0 %v3380_v49 }
 0x18e   :  { %851 = vmatpush1.msra.mxu1 %v3376_v48  ;;  %782 = vmatpush1.msra.mxu0 %v3386_v51 }
 0x18f   :  { %852 = vmatprep.subr.mxu1 %v3382_v50  ;;  %783 = vmatprep.subr.mxu0 %v3392_v19 }
 0x190   :  { %853 = vmatpush1.msra.mxu1 %v3388_v1  ;;  %784 = vmatpush1.msra.mxu0 %v3398_v37 }
 0x191   :  { %854 = vmatprep.subr.mxu1 %v3394_v35  ;;  %938 = vmatprep.subr.mxu0 %v3216_v52 }
 0x192   :  { %855 = vmatpush1.msra.mxu1 %v3400_v45 }
 0x193   :  { %1009 = vmatprep.subr.mxu1 %v3218_v53 }
 0x223   :  { %v362_v50 = vpop.f32.mrf.mxu1  ;;  %v516_v49 = vpop.f32.mrf.mxu0 }
 0x224   :  { %v665_v51 = vrot.slane %v516_v49, 6  ;;  %v681_v46 = vrot.slane %v516_v49, 2  ;;  %v4483_v49 = vlaneseq }
 0x225   :  { %v3410_v48 = vpop.f32.mrf.mxu1  ;;  %v518_v47 = vpop.f32.mrf.mxu0 }
 0x226   :  { %4476 = vst [vmem:[#allocation38_spill] sm:$0xff] %v3410_v48  ;;  %v666_v44 = vrot.slane %v518_v47, 6  ;;  %v682_v19 = vrot.slane %v518_v47, 2  ;;  %v622_v38 = vshrl.u32 %v4483_v49, 7 }
 0x227   :  { %v368_v1 = vpop.f32.mrf.mxu1 }
 0x228   :  { %v3412_v43 = vadd.f32 %v665_v51, %v368_v1  ;;  %v3414_v35 = vadd.f32 %v681_v46, %v368_v1  ;;  %v522_v37 = vpop.f32.mrf.mxu0  ;;  %v627_v46 = vsub.s32 1, %v622_v38 }
 0x229   :  { %v645_v45 = vrot.slane %v522_v37, 2  ;;  %v370_v42 = vpop.f32.mrf.mxu1  ;;  %v608_v1 = vrot.slane %v522_v37, 6  ;;  %v631_v37 = vsub.s32 2, %v622_v38 }
 0x22a   :  { %4477 = vst [vmem:[#allocation39_spill] sm:$0xff] %v3412_v43  ;;  %4478 = vst [vmem:[#allocation40_spill] sm:$0xff] %v3414_v35  ;;  %v3416_v52 = vadd.f32 %v666_v44, %v370_v42  ;;  %v3418_v53 = vadd.f32 %v682_v19, %v370_v42  ;;  %v3420_v41 = vpop.f32.mrf.mxu0  ;;  %v623_v43 = vsub.s32 0, %v622_v38  ;;  %v144_v19 = vld [vmem:[#allocation2 + $0x300] ss:$8 sm:$0xf] }
 0x22b   :  { %4481 = vst [vmem:[#allocation43_spill] sm:$0xff] %v3420_v41  ;;  %v3422_v40 = vadd.f32 %v645_v45, %v362_v50  ;;  %v439_v39 = vpop.f32.mrf.mxu1  ;;  %v609_v47 = vrot.slane %v3420_v41, 6  ;;  %v616_v42 = vadd.f32 %v608_v1, %v362_v50  ;;  %v3448_v30 = vrot.slane %v144_v19, %v631_v37 }
 0x22c   :  { %4479 = vst [vmem:[#allocation41_spill] sm:$0xff] %v3416_v52  ;;  %4480 = vst [vmem:[#allocation42_spill] sm:$0xff] %v3418_v53  ;;  %v3429_v53 = vrot.slane %v144_v19, %v627_v46  ;;  %v3431_v34 = vrot.slane %v144_v19, %v623_v43 }
 0x22d   :  { %4482 = vst [vmem:[#allocation44_spill] sm:$0xff] %v3422_v40  ;;  %v3426_v51 = vpop.f32.mrf.mxu1  ;;  %v617_v44 = vadd.f32 %v609_v47, %v3410_v48  ;;  %4492 = vst [vmem:[#allocation53_spill] sm:$0xff] %v3448_v30 }
 0x22e   :  { %4484 = vst [vmem:[#allocation45_spill] sm:$0xff] %v3429_v53  ;;  %4485 = vst [vmem:[#allocation46_spill] sm:$0xff] %v3431_v34  ;;  %v3441_v50 = vadd.f32 %v3431_v34, %v616_v42 }
 0x22f   :  { %v445_v35 = vpop.f32.mrf.mxu1  ;;  %v3434_v49 = vadd.f32 %v3429_v53, %v617_v44 }
 0x230   :  { %4489 = vst [vmem:[#allocation50_spill] sm:$0xff] %v3441_v50 }
 0x231   :  { %v447_v52 = vpop.f32.mrf.mxu1  ;;  %4486 = vst [vmem:[#allocation47_spill] sm:$0xff] %v3434_v49  ;;  %v2610_v44 = vmul.f32 -1.442695, %v3434_v49  ;;  %v4496_v49 = vmov 0.0  }
 0x233   :  { %v593_v45 = vpop.f32.mrf.mxu1  ;;  %2829 = vpow2.f32 %v2610_v44 }
 0x234   :  { %v667_v40 = vrot.slane %v593_v45, 6  ;;  %v683_v36 = vrot.slane %v593_v45, 2 }
 0x235   :  { %v595_v41 = vpop.f32.mrf.mxu1 }
 0x236   :  { %v3436_v33 = vadd.f32 %v667_v40, %v445_v35  ;;  %v3438_v32 = vadd.f32 %v683_v36, %v445_v35  ;;  %v668_v47 = vrot.slane %v595_v41, 6  ;;  %v684_v48 = vrot.slane %v595_v41, 2 }
 0x237   :  { %v599_v1 = vpop.f32.mrf.mxu1  ;;  %v2609_v35 = vmul.f32 -1.442695, %v3441_v50  ;;  %v4516_v50 = vld [vmem:[#allocation31_spill] sm:$0xff] }
 0x238   :  { %4487 = vst [vmem:[#allocation48_spill] sm:$0xff] %v3436_v33  ;;  %4488 = vst [vmem:[#allocation49_spill] sm:$0xff] %v3438_v32  ;;  %v3443_v46 = vadd.f32 %v668_v47, %v447_v52  ;;  %v3445_v45 = vadd.f32 %v684_v48, %v447_v52  ;;  %v610_v43 = vrot.slane %v599_v1, 6  ;;  %v647_v31 = vrot.slane %v599_v1, 2 }
 0x239   :  { %v3457_v42 = vpop.f32.mrf.mxu1  ;;  %2831 = vpow2.f32 %v2609_v35  ;;  %v635_v48 = vsub.s32 3, %v622_v38 }
 0x23a   :  { %4490 = vst [vmem:[#allocation51_spill] sm:$0xff] %v3443_v46  ;;  %4491 = vst [vmem:[#allocation52_spill] sm:$0xff] %v3445_v45  ;;  %v618_v53 = vadd.f32 %v610_v43, %v439_v39  ;;  %v3450_v40 = vadd.f32 %v647_v31, %v439_v39  ;;  %v611_v52 = vrot.slane %v3457_v42, 6 }
 0x23b   :  { %v3461_v47 = vrot.slane %v144_v19, %v635_v48 }
 0x23c   :  { %v3454_v36 = vadd.f32 %v3448_v30, %v618_v53  ;;  %v619_v37 = vadd.f32 %v611_v52, %v3426_v51 }
 0x23d   :  { %4494 = vst [vmem:[#allocation55_spill] sm:$0xff] %v3461_v47 }
 0x23e   :  { %4493 = vst [vmem:[#allocation54_spill] sm:$0xff] %v3454_v36  ;;  %v2611_v41 = vmul.f32 -1.442695, %v3454_v36  ;;  %v3464_v31 = vadd.f32 %v3461_v47, %v619_v37  ;;  %v4515_v36 = vld [vmem:[#allocation30_spill] sm:$0xff] }
 0x240   :  { %2833 = vpow2.f32 %v2611_v41  ;;  %4495 = vst [vmem:[#allocation56_spill] sm:$0xff] %v3464_v31  ;;  %v2830_v39 = vpop.eup %2829  ;;  %v2612_v43 = vmul.f32 -1.442695, %v3464_v31  ;;  %v2606_v31 = vsel %vm697_vm4, 1.0, %v4496_v49 }
 0x241   :  { %v721_v44 = vadd.f32 1.0, %v2830_v39 }
 0x246   :  { %v2832_v53 = vpop.eup %2831 }
 0x247   :  { %v720_v32 = vadd.f32 1.0, %v2832_v53 }
 0x24d   :  { %v2834_v1 = vpop.eup %2833 }
 0x24e   :  { %v722_v45 = vadd.f32 1.0, %v2834_v1 }
 0x250   :  { %2835 = vrcp.f32 %v722_v45 }
 0x251   :  { %2837 = vpow2.f32 %v2612_v43 }
 0x252   :  { %2839 = vrcp.f32 %v721_v44  ;;  %v4501_v44 = vld [vmem:[#allocation16_spill] sm:$0xff] }
 0x253   :  { %2841 = vrcp.f32 %v720_v32 }
 0x25d   :  { %v2836_v38 = vpop.eup %2835 }
 0x25e   :  { %v2838_v35 = vpop.eup %2837  ;;  %v732_v41 = vmul.f32 2.0, %v2836_v38  ;;  %v4502_v38 = vld [vmem:[#allocation17_spill] sm:$0xff] }
 0x25f   :  { %v2840_v19 = vpop.eup %2839  ;;  %v723_v37 = vadd.f32 1.0, %v2838_v35  ;;  %v4503_v35 = vld [vmem:[#allocation18_spill] sm:$0xff] }
 0x260   :  { %v2613_v52 = vadd.f32 -1.0, %v732_v41  ;;  %v2842_v48 = vpop.eup %2841  ;;  %v734_v46 = vmul.f32 0.0, %v2840_v19  ;;  %v4504_v41 = vld [vmem:[#allocation19_spill] sm:$0xff]  ;;  %v4505_v19 = vld [vmem:[#allocation20_spill] sm:$0xff] }
 0x261   :  { %2843 = vrcp.f32 %v723_v37  ;;  %v4508_v37 = vld [vmem:[#allocation23_spill] sm:$0xff] }
 0x262   :  { %v735_v33 = vmul.f32 %v2842_v48, %v2613_v52  ;;  %v4506_v52 = vld [vmem:[#allocation21_spill] sm:$0xff]  ;;  %v4507_v48 = vld [vmem:[#allocation22_spill] sm:$0xff] }
 0x264   :  { %v736_v39 = vadd.f32 %v735_v33, %v734_v46  ;;  %v4498_v33 = vld [vmem:[#allocation13_spill] sm:$0xff]  ;;  %v4499_v46 = vld [vmem:[#allocation14_spill] sm:$0xff] }
 0x266   :  { %2845 = vtanh.f32 %v736_v39  ;;  %v3469_v45 = vmul.f32 %v2606_v31, %v736_v39  ;;  %v4509_v39 = vld [vmem:[#allocation24_spill] sm:$0xff] }
 0x26e   :  { %v2844_v53 = vpop.eup %2843 }
 0x273   :  { %v2846_v32 = vpop.eup %2845 }
 0x274   :  { %v738_v1 = vmul.f32 %v2846_v32, %v2844_v53  ;;  %v4510_v53 = vld [vmem:[#allocation25_spill] sm:$0xff]  ;;  %v4511_v32 = vld [vmem:[#allocation26_spill] sm:$0xff] }
 0x276   :  { %v3471_v43 = vmul.f32 %v2606_v31, %v738_v1  ;;  %v4500_v31 = vld [vmem:[#allocation15_spill] sm:$0xff] }
 0x277   :  { %v4512_v1 = vld [vmem:[#allocation27_spill] sm:$0xff] }
 0x278   :  { %4497 = vst [vmem:[#allocation57_spill] sm:$0xff] %v3471_v43  ;;  %818 = vmatmul.mubr.f32.vlgmr.msra.gmra.mxu0 %v3471_v43  ;;  %889 = vmatmul.mubr.f32.vlgmr.msra.gmra.mxu1 %v3471_v43  ;;  %v4514_v43 = vld [vmem:[#allocation29_spill] sm:$0xff] }
 0x279   :  { %939 = vmatpush1.msra.mxu0 %v3222_v54  ;;  %1010 = vmatpush1.msra.mxu1 %v3224_v55 }
 0x27a   :  { %940 = vmatprep.subr.mxu0 %v3228_v56  ;;  %1011 = vmatprep.subr.mxu1 %v3230_v57 }
 0x27b   :  { %941 = vmatpush1.msra.mxu0 %v3234_v58  ;;  %1012 = vmatpush1.msra.mxu1 %v3236_v59 }
 0x27c   :  { %942 = vmatprep.subr.mxu0 %v3240_v60  ;;  %1013 = vmatprep.subr.mxu1 %v3242_v61 }
 0x27d   :  { %943 = vmatpush1.msra.mxu0 %v3246_v62  ;;  %1014 = vmatpush1.msra.mxu1 %v3248_v63 }
 0x27e   :  { %944 = vmatprep.subr.mxu0 %v3252_v0  ;;  %1015 = vmatprep.subr.mxu1 %v3254_v2 }
 0x27f   :  { %945 = vmatpush1.msra.mxu0 %v3258_v3  ;;  %1016 = vmatpush1.msra.mxu1 %v3260_v4 }
 0x280   :  { %946 = vmatprep.subr.mxu0 %v3264_v5  ;;  %1017 = vmatprep.subr.mxu1 %v3266_v6 }
 0x281   :  { %947 = vmatpush1.msra.mxu0 %v3268_v7  ;;  %1018 = vmatpush1.msra.mxu1 %v3272_v8 }
 0x282   :  { %948 = vmatprep.subr.mxu0 %v3274_v9  ;;  %1019 = vmatprep.subr.mxu1 %v3276_v10 }
 0x283   :  { %949 = vmatpush1.msra.mxu0 %v3280_v11  ;;  %1020 = vmatpush1.msra.mxu1 %v3282_v12 }
 0x284   :  { %950 = vmatprep.subr.mxu0 %v3284_v13  ;;  %1021 = vmatprep.subr.mxu1 %v3288_v14 }
 0x285   :  { %951 = vmatpush1.msra.mxu0 %v3290_v15  ;;  %1022 = vmatpush1.msra.mxu1 %v3292_v16 }
 0x286   :  { %952 = vmatprep.subr.mxu0 %v3296_v17  ;;  %1023 = vmatprep.subr.mxu1 %v3298_v18 }
 0x287   :  { %953 = vmatpush1.msra.mxu0 %v3302_v21  ;;  %1024 = vmatpush1.msra.mxu1 %v3304_v22 }
 0x288   :  { %954 = vmatprep.subr.mxu0 %v3308_v23  ;;  %1025 = vmatprep.subr.mxu1 %v3310_v24 }
 0x289   :  { %955 = vmatpush1.msra.mxu0 %v3314_v25  ;;  %1026 = vmatpush1.msra.mxu1 %v3316_v26 }
 0x28a   :  { %956 = vmatprep.subr.mxu0 %v3320_v27  ;;  %1027 = vmatprep.subr.mxu1 %v3322_v28 }
 0x28b   :  { %957 = vmatpush1.msra.mxu0 %v3326_v29  ;;  %1028 = vmatpush1.msra.mxu1 %v4498_v33 }
 0x28c   :  { %958 = vmatprep.subr.mxu0 %v4499_v46  ;;  %1029 = vmatprep.subr.mxu1 %v4500_v31 }
 0x28d   :  { %959 = vmatpush1.msra.mxu0 %v4501_v44  ;;  %1030 = vmatpush1.msra.mxu1 %v4502_v38 }
 0x28e   :  { %960 = vmatprep.subr.mxu0 %v4503_v35  ;;  %1031 = vmatprep.subr.mxu1 %v4504_v41 }
 0x28f   :  { %961 = vmatpush1.msra.mxu0 %v4505_v19  ;;  %1032 = vmatpush1.msra.mxu1 %v4506_v52  ;;  %v4517_v52 = vld [vmem:[#allocation32_spill] sm:$0xff] }
 0x290   :  { %962 = vmatprep.subr.mxu0 %v4507_v48  ;;  %1033 = vmatprep.subr.mxu1 %v4508_v37  ;;  %v4518_v48 = vld [vmem:[#allocation33_spill] sm:$0xff]  ;;  %v4519_v37 = vld [vmem:[#allocation34_spill] sm:$0xff] }
 0x291   :  { %963 = vmatpush1.msra.mxu0 %v4509_v39  ;;  %1034 = vmatpush1.msra.mxu1 %v4510_v53  ;;  %v4520_v39 = vld [vmem:[#allocation35_spill] sm:$0xff]  ;;  %v4521_v53 = vld [vmem:[#allocation36_spill] sm:$0xff] }
 0x292   :  { %964 = vmatprep.subr.mxu0 %v4511_v32  ;;  %1035 = vmatprep.subr.mxu1 %v4512_v1  ;;  %v4522_v1 = vld [vmem:[#allocation37_spill] sm:$0xff] }
 0x293   :  { %965 = vmatpush1.msra.mxu0 %v4513_v20  ;;  %1036 = vmatpush1.msra.mxu1 %v4514_v43  ;;  %v4523_v43 = vld [vmem:[#allocation11_spill] sm:$0xff]  ;;  %v4526_v20 = vld [vmem:[#allocation38_spill] sm:$0xff] }
 0x294   :  { %966 = vmatprep.subr.mxu0 %v4515_v36  ;;  %1037 = vmatprep.subr.mxu1 %v4516_v50  ;;  %v4524_v36 = vld [vmem:[#allocation12_spill] sm:$0xff]  ;;  %v4525_v50 = vld [vmem:[#allocation43_spill] sm:$0xff] }
 0x295   :  { %967 = vmatpush1.msra.mxu0 %v4517_v52  ;;  %1038 = vmatpush1.msra.mxu1 %v4518_v48  ;;  %v646_v52 = vrot.slane %v4525_v50, 2 }
 0x296   :  { %968 = vmatprep.subr.mxu0 %v4519_v37  ;;  %1039 = vmatprep.subr.mxu1 %v4520_v39  ;;  %v4527_v37 = vld [vmem:[#allocation44_spill] sm:$0xff]  ;;  %v4530_v39 = vld [vmem:[#allocation45_spill] sm:$0xff] }
 0x297   :  { %969 = vmatpush1.msra.mxu0 %v4521_v53  ;;  %1002 = vmatprep.mubr.f32.mxu0 %v4496_v49  ;;  %v654_v48 = vadd.f32 %v646_v52, %v4526_v20  ;;  %v3545_v32 = vadd.f32 %v4527_v37, %v3431_v34  ;;  %v3549_v53 = vadd.f32 %v3450_v40, %v3448_v30 }
 0x298   :  { %1040 = vmatpush1.msra.mxu1 %v4522_v1  ;;  %1073 = vmatprep.mubr.f32.mxu1 %v4496_v49  ;;  %v648_v49 = vrot.slane %v3457_v42, 2 }
 0x299   :  { %1119 = vmatprep.subr.mxu0 %v4523_v43  ;;  %1190 = vmatprep.subr.mxu1 %v4524_v36  ;;  %4528 = vst [vmem:[#allocation13_spill] sm:$0xff] %v3545_v32  ;;  %4529 = vst [vmem:[#allocation14_spill] sm:$0xff] %v3549_v53  ;;  %v3552_v1 = vadd.f32 %v654_v48, %v4530_v39  ;;  %v745_v43 = vrot.slane %v3545_v32, 2  ;;  %v747_v36 = vrot.slane %v3549_v53, 2 }
 0x29a   :  { %v656_v41 = vadd.f32 %v648_v49, %v3426_v51 }
 0x29b   :  { %4531 = vst [vmem:[#allocation15_spill] sm:$0xff] %v3552_v1  ;;  %v746_v37 = vrot.slane %v3552_v1, 2 }
 0x29c   :  { %v3560_v42 = vadd.f32 %v656_v41, %v3461_v47  ;;  %v4552_v47 = vld [vmem:[#allocation36_spill] sm:$0xff] }
 0x29e   :  { %4532 = vst [vmem:[#allocation16_spill] sm:$0xff] %v3560_v42  ;;  %v748_v53 = vrot.slane %v3560_v42, 2  ;;  %v4553_v42 = vmov 0.0  }
 0x338   :  { %v819_v50 = vpop.f32.mrf.mxu0  ;;  %v890_v19 = vpop.f32.mrf.mxu1 }
 0x339   :  { %v820_v20 = vadd.f32 %v819_v50, %v745_v43  ;;  %v891_v52 = vadd.f32 %v890_v19, %v747_v36 }
 0x33a   :  { %v821_v34 = vpop.f32.mrf.mxu0  ;;  %v892_v39 = vpop.f32.mrf.mxu1 }
 0x33b   :  { %v2614_v40 = vmul.f32 -1.442695, %v820_v20  ;;  %v2616_v30 = vmul.f32 -1.442695, %v891_v52  ;;  %v822_v35 = vadd.f32 %v821_v34, %v746_v37  ;;  %v893_v43 = vadd.f32 %v892_v39, %v748_v53 }
 0x33d   :  { %2847 = vpow2.f32 %v2614_v40  ;;  %v2615_v48 = vmul.f32 -1.442695, %v822_v35  ;;  %v2617_v36 = vmul.f32 -1.442695, %v893_v43  ;;  %v4535_v43 = vld [vmem:[#allocation19_spill] sm:$0xff] }
 0x33e   :  { %2849 = vpow2.f32 %v2616_v30 }
 0x33f   :  { %2851 = vpow2.f32 %v2615_v48 }
 0x340   :  { %2853 = vpow2.f32 %v2617_v36  ;;  %v4536_v36 = vld [vmem:[#allocation20_spill] sm:$0xff] }
 0x34a   :  { %v2848_v19 = vpop.eup %2847 }
 0x34b   :  { %v2850_v50 = vpop.eup %2849  ;;  %v907_v49 = vadd.f32 1.0, %v2848_v19  ;;  %v4537_v19 = vld [vmem:[#allocation21_spill] sm:$0xff] }
 0x34c   :  { %v2852_v1 = vpop.eup %2851  ;;  %v909_v32 = vadd.f32 1.0, %v2850_v50  ;;  %v4538_v50 = vld [vmem:[#allocation22_spill] sm:$0xff] }
 0x34d   :  { %v908_v51 = vadd.f32 1.0, %v2852_v1  ;;  %v2854_v30 = vpop.eup %2853 }
 0x34e   :  { %2855 = vrcp.f32 %v909_v32  ;;  %v910_v39 = vadd.f32 1.0, %v2854_v30  ;;  %v4541_v30 = vld [vmem:[#allocation25_spill] sm:$0xff] }
 0x34f   :  { %2857 = vrcp.f32 %v908_v51  ;;  %v4539_v51 = vld [vmem:[#allocation23_spill] sm:$0xff] }
 0x350   :  { %2859 = vrcp.f32 %v907_v49  ;;  %v4540_v49 = vld [vmem:[#allocation24_spill] sm:$0xff] }
 0x351   :  { %2861 = vrcp.f32 %v910_v39  ;;  %v4548_v39 = vld [vmem:[#allocation32_spill] sm:$0xff] }
 0x35b   :  { %v2856_v34 = vpop.eup %2855 }
 0x35c   :  { %v2858_v35 = vpop.eup %2857  ;;  %v919_v41 = vmul.f32 2.0, %v2856_v34  ;;  %v4542_v34 = vld [vmem:[#allocation26_spill] sm:$0xff] }
 0x35d   :  { %v921_v20 = vmul.f32 %v2858_v35, %v3469_v45  ;;  %v2860_v37 = vpop.eup %2859  ;;  %v4534_v45 = vld [vmem:[#allocation18_spill] sm:$0xff]  ;;  %v4543_v35 = vld [vmem:[#allocation27_spill] sm:$0xff] }
 0x35e   :  { %v2618_v52 = vadd.f32 -1.0, %v919_v41  ;;  %v2862_v1 = vpop.eup %2861  ;;  %v4544_v41 = vld [vmem:[#allocation28_spill] sm:$0xff] }
 0x360   :  { %v922_v53 = vmul.f32 %v2860_v37, %v2618_v52  ;;  %v4546_v52 = vld [vmem:[#allocation30_spill] sm:$0xff]  ;;  %v4547_v37 = vld [vmem:[#allocation31_spill] sm:$0xff] }
 0x362   :  { %v3564_v40 = vadd.f32 %v922_v53, %v921_v20  ;;  %v4545_v20 = vld [vmem:[#allocation29_spill] sm:$0xff] }
 0x363   :  { %v4549_v53 = vld [vmem:[#allocation33_spill] sm:$0xff] }
 0x364   :  { %2863 = vtanh.f32 %v3564_v40 }
 0x371   :  { %v2864_v48 = vpop.eup %2863 }
 0x372   :  { %v3567_v32 = vmul.f32 %v2864_v48, %v2862_v1  ;;  %v4550_v1 = vld [vmem:[#allocation34_spill] sm:$0xff]  ;;  %v4551_v48 = vld [vmem:[#allocation35_spill] sm:$0xff] }
 0x374   :  { %4533 = vst [vmem:[#allocation43_spill] sm:$0xff] %v3567_v32  ;;  %1003 = vmatmul.mubr.f32.vlgmr.msra.gmra.mxu0 %v3567_v32  ;;  %1074 = vmatmul.mubr.f32.vlgmr.msra.gmra.mxu1 %v3567_v32 }
 0x375   :  { %1120 = vmatpush1.msra.mxu0 %v3222_v54  ;;  %1191 = vmatpush1.msra.mxu1 %v3224_v55 }
 0x376   :  { %1121 = vmatprep.subr.mxu0 %v3228_v56  ;;  %1192 = vmatprep.subr.mxu1 %v3230_v57 }
 0x377   :  { %1122 = vmatpush1.msra.mxu0 %v3234_v58  ;;  %1193 = vmatpush1.msra.mxu1 %v3236_v59 }
 0x378   :  { %1123 = vmatprep.subr.mxu0 %v3240_v60  ;;  %1194 = vmatprep.subr.mxu1 %v3242_v61 }
 0x379   :  { %1124 = vmatpush1.msra.mxu0 %v3246_v62  ;;  %1195 = vmatpush1.msra.mxu1 %v3248_v63 }
 0x37a   :  { %1125 = vmatprep.subr.mxu0 %v3252_v0  ;;  %1196 = vmatprep.subr.mxu1 %v3254_v2 }
 0x37b   :  { %1126 = vmatpush1.msra.mxu0 %v3258_v3  ;;  %1197 = vmatpush1.msra.mxu1 %v3260_v4 }
 0x37c   :  { %1127 = vmatprep.subr.mxu0 %v3264_v5  ;;  %1198 = vmatprep.subr.mxu1 %v3266_v6 }
 0x37d   :  { %1128 = vmatpush1.msra.mxu0 %v3268_v7  ;;  %1199 = vmatpush1.msra.mxu1 %v3272_v8 }
 0x37e   :  { %1129 = vmatprep.subr.mxu0 %v3274_v9  ;;  %1200 = vmatprep.subr.mxu1 %v3276_v10 }
 0x37f   :  { %1130 = vmatpush1.msra.mxu0 %v3280_v11  ;;  %1201 = vmatpush1.msra.mxu1 %v3282_v12 }
 0x380   :  { %1131 = vmatprep.subr.mxu0 %v3284_v13  ;;  %1202 = vmatprep.subr.mxu1 %v3288_v14 }
 0x381   :  { %1132 = vmatpush1.msra.mxu0 %v3290_v15  ;;  %1203 = vmatpush1.msra.mxu1 %v3292_v16 }
 0x382   :  { %1133 = vmatprep.subr.mxu0 %v3296_v17  ;;  %1204 = vmatprep.subr.mxu1 %v3298_v18 }
 0x383   :  { %1134 = vmatpush1.msra.mxu0 %v3302_v21  ;;  %1205 = vmatpush1.msra.mxu1 %v3304_v22 }
 0x384   :  { %1135 = vmatprep.subr.mxu0 %v3308_v23  ;;  %1206 = vmatprep.subr.mxu1 %v3310_v24 }
 0x385   :  { %1136 = vmatpush1.msra.mxu0 %v3314_v25  ;;  %1207 = vmatpush1.msra.mxu1 %v3316_v26 }
 0x386   :  { %1137 = vmatprep.subr.mxu0 %v3320_v27  ;;  %1208 = vmatprep.subr.mxu1 %v3322_v28 }
 0x387   :  { %1138 = vmatpush1.msra.mxu0 %v3326_v29  ;;  %1209 = vmatpush1.msra.mxu1 %v4498_v33 }
 0x388   :  { %1139 = vmatprep.subr.mxu0 %v4499_v46  ;;  %1210 = vmatprep.subr.mxu1 %v4500_v31 }
 0x389   :  { %1140 = vmatpush1.msra.mxu0 %v4501_v44  ;;  %1211 = vmatpush1.msra.mxu1 %v4502_v38 }
 0x38a   :  { %1141 = vmatprep.subr.mxu0 %v4534_v45  ;;  %1212 = vmatprep.subr.mxu1 %v4535_v43 }
 0x38b   :  { %1142 = vmatpush1.msra.mxu0 %v4536_v36  ;;  %1213 = vmatpush1.msra.mxu1 %v4537_v19 }
 0x38c   :  { %1143 = vmatprep.subr.mxu0 %v4538_v50  ;;  %1214 = vmatprep.subr.mxu1 %v4539_v51 }
 0x38d   :  { %1144 = vmatpush1.msra.mxu0 %v4540_v49  ;;  %1215 = vmatpush1.msra.mxu1 %v4541_v30  ;;  %v4559_v49 = vld [vmem:[#allocation47_spill] sm:$0xff] }
 0x38e   :  { %1145 = vmatprep.subr.mxu0 %v4542_v34  ;;  %1216 = vmatprep.subr.mxu1 %v4543_v35  ;;  %v4554_v35 = vld [vmem:[#allocation37_spill] sm:$0xff] }
 0x38f   :  { %1146 = vmatpush1.msra.mxu0 %v4544_v41  ;;  %1217 = vmatpush1.msra.mxu1 %v4545_v20  ;;  %v4555_v20 = vld [vmem:[#allocation11_spill] sm:$0xff]  ;;  %v4558_v41 = vld [vmem:[#allocation54_spill] sm:$0xff] }
 0x390   :  { %1147 = vmatprep.subr.mxu0 %v4546_v52  ;;  %1218 = vmatprep.subr.mxu1 %v4547_v37  ;;  %v4556_v52 = vld [vmem:[#allocation12_spill] sm:$0xff]  ;;  %v4557_v37 = vld [vmem:[#allocation50_spill] sm:$0xff] }
 0x391   :  { %1148 = vmatpush1.msra.mxu0 %v4548_v39  ;;  %1219 = vmatpush1.msra.mxu1 %v4549_v53  ;;  %v930_v39 = vrot.slane %v4557_v37, 4  ;;  %v932_v53 = vrot.slane %v4558_v41, 4 }
 0x392   :  { %1149 = vmatprep.subr.mxu0 %v4550_v1  ;;  %1220 = vmatprep.subr.mxu1 %v4551_v48 }
 0x393   :  { %1150 = vmatpush1.msra.mxu0 %v4552_v47  ;;  %1183 = vmatprep.mubr.f32.mxu0 %v4553_v42  ;;  %v931_v47 = vrot.slane %v4559_v49, 4 }
 0x394   :  { %1221 = vmatpush1.msra.mxu1 %v4554_v35  ;;  %1254 = vmatprep.mubr.f32.mxu1 %v4553_v42 }
 0x395   :  { %1292 = vmatprep.subr.mxu0 %v4555_v20  ;;  %1363 = vmatprep.subr.mxu1 %v4556_v52  ;;  %v4560_v52 = vld [vmem:[#allocation56_spill] sm:$0xff] }
 0x396   :  { %v933_v36 = vrot.slane %v4560_v52, 4 }
 0x434   :  { %v1004_v34 = vpop.f32.mrf.mxu0  ;;  %v1075_v1 = vpop.f32.mrf.mxu1 }
 0x435   :  { %v1005_v30 = vadd.f32 %v1004_v34, %v930_v39  ;;  %v1076_v48 = vadd.f32 %v1075_v1, %v932_v53 }
 0x436   :  { %v1006_v51 = vpop.f32.mrf.mxu0  ;;  %v1077_v20 = vpop.f32.mrf.mxu1 }
 0x437   :  { %v2619_v50 = vmul.f32 -1.442695, %v1005_v30  ;;  %v2621_v19 = vmul.f32 -1.442695, %v1076_v48  ;;  %v1007_v35 = vadd.f32 %v1006_v51, %v931_v47  ;;  %v1078_v37 = vadd.f32 %v1077_v20, %v933_v36 }
 0x439   :  { %2865 = vpow2.f32 %v2619_v50  ;;  %v2620_v42 = vmul.f32 -1.442695, %v1007_v35  ;;  %v2622_v45 = vmul.f32 -1.442695, %v1078_v37 }
 0x43a   :  { %2867 = vpow2.f32 %v2621_v19 }
 0x43b   :  { %2869 = vpow2.f32 %v2620_v42 }
 0x446   :  { %v2866_v43 = vpop.eup %2865 }
 0x447   :  { %v2868_v41 = vpop.eup %2867  ;;  %v1092_v53 = vadd.f32 1.0, %v2866_v43 }
 0x448   :  { %v2870_v38 = vpop.eup %2869  ;;  %v1094_v34 = vadd.f32 1.0, %v2868_v41 }
 0x449   :  { %v1093_v39 = vadd.f32 1.0, %v2870_v38 }
 0x44a   :  { %2871 = vrcp.f32 %v1094_v34 }
 0x44b   :  { %2873 = vpow2.f32 %v2622_v45  ;;  %v2268_v45 = vrot.slane %v3567_v32, 6  ;;  %v3907_v32 = vld [vmem:[#allocation2 + $0x108] sm:$0xff] }
 0x44c   :  { %2875 = vrcp.f32 %v1093_v39 }
 0x44d   :  { %2877 = vrcp.f32 %v1092_v53 }
 0x457   :  { %v2872_v47 = vpop.eup %2871 }
 0x458   :  { %v2874_v50 = vpop.eup %2873  ;;  %v1104_v51 = vmul.f32 2.0, %v2872_v47 }
 0x459   :  { %v2876_v19 = vpop.eup %2875  ;;  %v1095_v30 = vadd.f32 1.0, %v2874_v50 }
 0x45a   :  { %v2623_v42 = vadd.f32 -1.0, %v1104_v51  ;;  %v2878_v49 = vpop.eup %2877  ;;  %v1106_v36 = vmul.f32 %v2876_v19, %v3564_v40  ;;  %v4561_v40 = vld [vmem:[#allocation57_spill] sm:$0xff] }
 0x45b   :  { %2879 = vrcp.f32 %v1095_v30  ;;  %v2286_v52 = vsel %vm2285_vm5, %v4561_v40, %v2268_v45 }
 0x45c   :  { %v1107_v35 = vmul.f32 %v2878_v49, %v2623_v42 }
 0x45e   :  { %v3642_v1 = vadd.f32 %v1107_v35, %v1106_v36 }
 0x460   :  { %2881 = vtanh.f32 %v3642_v1 }
 0x468   :  { %v2880_v38 = vpop.eup %2879 }
 0x46d   :  { %v2882_v43 = vpop.eup %2881 }
 0x46e   :  { %v1110_v48 = vmul.f32 %v2882_v43, %v2880_v38 }
 0x470   :  { %1184 = vmatmul.mubr.f32.vlgmr.msra.gmra.mxu0 %v1110_v48  ;;  %1255 = vmatmul.mubr.f32.vlgmr.msra.gmra.mxu1 %v1110_v48  ;;  %v2271_v20 = vrot.slane %v1110_v48, 4 }
 0x471   :  { %1293 = vmatpush1.msra.mxu0 %v3222_v54  ;;  %1364 = vmatpush1.msra.mxu1 %v3224_v55  ;;  %v4562_v54 = vld [vmem:[#allocation17_spill] sm:$0xff]  ;;  %v4563_v55 = vld [vmem:[#allocation18_spill] sm:$0xff] }
 0x472   :  { %1294 = vmatprep.subr.mxu0 %v3228_v56  ;;  %1365 = vmatprep.subr.mxu1 %v3230_v57  ;;  %v3653_v37 = vsel %vm2287_vm6, %v2286_v52, %v2271_v20  ;;  %v4564_v56 = vld [vmem:[#allocation19_spill] sm:$0xff]  ;;  %v4565_v57 = vld [vmem:[#allocation20_spill] sm:$0xff] }
 0x473   :  { %1295 = vmatpush1.msra.mxu0 %v3234_v58  ;;  %1366 = vmatpush1.msra.mxu1 %v3236_v59  ;;  %v4566_v58 = vld [vmem:[#allocation21_spill] sm:$0xff]  ;;  %v4567_v59 = vld [vmem:[#allocation22_spill] sm:$0xff] }
 0x474   :  { %1296 = vmatprep.subr.mxu0 %v3240_v60  ;;  %1367 = vmatprep.subr.mxu1 %v3242_v61  ;;  %v4568_v60 = vld [vmem:[#allocation23_spill] sm:$0xff]  ;;  %v4569_v61 = vld [vmem:[#allocation24_spill] sm:$0xff] }
 0x475   :  { %1297 = vmatpush1.msra.mxu0 %v3246_v62  ;;  %1368 = vmatpush1.msra.mxu1 %v3248_v63  ;;  %v4570_v62 = vld [vmem:[#allocation25_spill] sm:$0xff]  ;;  %v4571_v63 = vld [vmem:[#allocation26_spill] sm:$0xff] }
 0x476   :  { %1298 = vmatprep.subr.mxu0 %v3252_v0  ;;  %1369 = vmatprep.subr.mxu1 %v3254_v2  ;;  %v4572_v0 = vld [vmem:[#allocation27_spill] sm:$0xff]  ;;  %v4573_v2 = vld [vmem:[#allocation28_spill] sm:$0xff] }
 0x477   :  { %1299 = vmatpush1.msra.mxu0 %v3258_v3  ;;  %1370 = vmatpush1.msra.mxu1 %v3260_v4  ;;  %v4574_v3 = vld [vmem:[#allocation29_spill] sm:$0xff]  ;;  %v4575_v4 = vld [vmem:[#allocation30_spill] sm:$0xff]  ;;  %4608 = vst [vmem:[#allocation28_spill] sm:$0xff] %v3907_v32 }
 0x478   :  { %1300 = vmatprep.subr.mxu0 %v3264_v5  ;;  %1371 = vmatprep.subr.mxu1 %v3266_v6  ;;  %v4576_v5 = vld [vmem:[#allocation31_spill] sm:$0xff]  ;;  %v4577_v6 = vld [vmem:[#allocation32_spill] sm:$0xff] }
 0x479   :  { %1301 = vmatpush1.msra.mxu0 %v3268_v7  ;;  %1372 = vmatpush1.msra.mxu1 %v3272_v8  ;;  %v4578_v7 = vld [vmem:[#allocation33_spill] sm:$0xff]  ;;  %v4579_v8 = vld [vmem:[#allocation34_spill] sm:$0xff] }
 0x47a   :  { %1302 = vmatprep.subr.mxu0 %v3274_v9  ;;  %1373 = vmatprep.subr.mxu1 %v3276_v10  ;;  %v4580_v9 = vld [vmem:[#allocation35_spill] sm:$0xff]  ;;  %v4581_v10 = vld [vmem:[#allocation36_spill] sm:$0xff] }
 0x47b   :  { %1303 = vmatpush1.msra.mxu0 %v3280_v11  ;;  %1374 = vmatpush1.msra.mxu1 %v3282_v12  ;;  %v4582_v11 = vmov 0.0   ;;  %v4583_v12 = vld [vmem:[#allocation37_spill] sm:$0xff] }
 0x47c   :  { %1304 = vmatprep.subr.mxu0 %v3284_v13  ;;  %1375 = vmatprep.subr.mxu1 %v3288_v14  ;;  %v3715_v13 = vld [vmem:[#allocation2 + $0x2e8] sm:$0xff]  ;;  %v3718_v14 = vld [vmem:[#allocation2 + $0x2f8] sm:$0xff] }
 0x47d   :  { %1305 = vmatpush1.msra.mxu0 %v3290_v15  ;;  %1376 = vmatpush1.msra.mxu1 %v3292_v16  ;;  %4584 = vst [vmem:[#allocation38_spill] sm:$0xff] %v3715_v13  ;;  %4585 = vst [vmem:[#allocation44_spill] sm:$0xff] %v3718_v14  ;;  %v4586_v15 = vld [vmem:[#allocation13_spill] sm:$0xff] }
 0x47e   :  { %1306 = vmatprep.subr.mxu0 %v3296_v17  ;;  %1377 = vmatprep.subr.mxu1 %v3298_v18  ;;  %v1111_v16 = vrot.slane %v4586_v15, 6  ;;  %v4587_v17 = vld [vmem:[#allocation14_spill] sm:$0xff]  ;;  %v3790_v15 = vld [vmem:[#allocation2 + $0x258] sm:$0xff] }
 0x47f   :  { %1307 = vmatpush1.msra.mxu0 %v3302_v21  ;;  %1378 = vmatpush1.msra.mxu1 %v3304_v22  ;;  %v1113_v18 = vrot.slane %v4587_v17, 6  ;;  %v3796_v17 = vld [vmem:[#allocation2 + $0x250] sm:$0xff] }
 0x480   :  { %1308 = vmatprep.subr.mxu0 %v3308_v23  ;;  %1379 = vmatprep.subr.mxu1 %v3310_v24 }
 0x481   :  { %1309 = vmatpush1.msra.mxu0 %v3314_v25  ;;  %1380 = vmatpush1.msra.mxu1 %v3316_v26  ;;  %v4588_v25 = vld [vmem:[#allocation15_spill] sm:$0xff] }
 0x482   :  { %1310 = vmatprep.subr.mxu0 %v3320_v27  ;;  %1381 = vmatprep.subr.mxu1 %v3322_v28  ;;  %v1112_v26 = vrot.slane %v4588_v25, 6  ;;  %v3814_v25 = vld [vmem:[#allocation2 + $0x218] sm:$0xff] }
 0x483   :  { %1311 = vmatpush1.msra.mxu0 %v3326_v29  ;;  %1382 = vmatpush1.msra.mxu1 %v4498_v33 }
 0x484   :  { %1312 = vmatprep.subr.mxu0 %v4499_v46  ;;  %1383 = vmatprep.subr.mxu1 %v4500_v31 }
 0x485   :  { %1313 = vmatpush1.msra.mxu0 %v4501_v44  ;;  %1384 = vmatpush1.msra.mxu1 %v4562_v54  ;;  %v4589_v44 = vld [vmem:[#allocation16_spill] sm:$0xff] }
 0x486   :  { %1314 = vmatprep.subr.mxu0 %v4563_v55  ;;  %1385 = vmatprep.subr.mxu1 %v4564_v56  ;;  %v1114_v41 = vrot.slane %v4589_v44, 6  ;;  %v3838_v44 = vld [vmem:[#allocation2 + $0x1d8] sm:$0xff] }
 0x487   :  { %1315 = vmatpush1.msra.mxu0 %v4565_v57  ;;  %1386 = vmatpush1.msra.mxu1 %v4566_v58  ;;  %v3729_v57 = vld [vmem:[#allocation2 + $0x2e0] sm:$0xff]  ;;  %v3732_v58 = vld [vmem:[#allocation2 + $0x2f0] sm:$0xff] }
 0x488   :  { %1316 = vmatprep.subr.mxu0 %v4567_v59  ;;  %1387 = vmatprep.subr.mxu1 %v4568_v60  ;;  %v3738_v59 = vld [vmem:[#allocation2 + $0x2d8] sm:$0xff] }
 0x489   :  { %1317 = vmatpush1.msra.mxu0 %v4569_v61  ;;  %1388 = vmatpush1.msra.mxu1 %v4570_v62  ;;  %v3745_v61 = vld [vmem:[#allocation2 + $0x2c0] sm:$0xff]  ;;  %v3748_v62 = vld [vmem:[#allocation2 + $0x2d0] sm:$0xff] }
 0x48a   :  { %1318 = vmatprep.subr.mxu0 %v4571_v63  ;;  %1389 = vmatprep.subr.mxu1 %v4572_v0  ;;  %v3751_v63 = vld [vmem:[#allocation2 + $0x2a8] sm:$0xff]  ;;  %v3754_v0 = vld [vmem:[#allocation2 + $0x2b8] sm:$0xff] }
 0x48b   :  { %1319 = vmatpush1.msra.mxu0 %v4573_v2  ;;  %1390 = vmatpush1.msra.mxu1 %v4574_v3  ;;  %v3757_v2 = vld [vmem:[#allocation2 + $0x2a0] sm:$0xff]  ;;  %v3763_v3 = vld [vmem:[#allocation2 + $0x288] sm:$0xff] }
 0x48c   :  { %1320 = vmatprep.subr.mxu0 %v4575_v4  ;;  %1391 = vmatprep.subr.mxu1 %v4576_v5  ;;  %v3766_v4 = vld [vmem:[#allocation2 + $0x298] sm:$0xff]  ;;  %v3769_v5 = vld [vmem:[#allocation2 + $0x280] sm:$0xff] }
 0x48d   :  { %1321 = vmatpush1.msra.mxu0 %v4577_v6  ;;  %1392 = vmatpush1.msra.mxu1 %v4578_v7  ;;  %v3772_v6 = vld [vmem:[#allocation2 + $0x290] sm:$0xff]  ;;  %v3775_v7 = vld [vmem:[#allocation2 + $0x268] sm:$0xff] }
 0x48e   :  { %1322 = vmatprep.subr.mxu0 %v4579_v8  ;;  %1393 = vmatprep.subr.mxu1 %v4580_v9  ;;  %v3778_v8 = vld [vmem:[#allocation2 + $0x278] sm:$0xff]  ;;  %v3781_v9 = vld [vmem:[#allocation2 + $0x260] sm:$0xff] }
 0x48f   :  { %1323 = vmatpush1.msra.mxu0 %v4581_v10  ;;  %1356 = vmatprep.mubr.f32.mxu0 %v4582_v11  ;;  %v3784_v10 = vld [vmem:[#allocation2 + $0x270] sm:$0xff] }
 0x490   :  { %1394 = vmatpush1.msra.mxu1 %v4583_v12  ;;  %1427 = vmatprep.mubr.f32.mxu1 %v4582_v11  ;;  %v3787_v12 = vld [vmem:[#allocation2 + $0x248] sm:$0xff] }
 0x491   :  { %1477 = vmatprep.subr.mxu0 %v3715_v13  ;;  %1548 = vmatprep.subr.mxu1 %v3718_v14 }
 0x530   :  { %v1185_v21 = vpop.f32.mrf.mxu0  ;;  %v1256_v22 = vpop.f32.mrf.mxu1 }
 0x531   :  { %v1186_v23 = vadd.f32 %v1185_v21, %v1111_v16  ;;  %v1257_v24 = vadd.f32 %v1256_v22, %v1113_v18  ;;  %v3793_v16 = vld [vmem:[#allocation2 + $0x240] sm:$0xff]  ;;  %v3799_v18 = vld [vmem:[#allocation2 + $0x228] sm:$0xff]  ;;  %v3802_v21 = vld [vmem:[#allocation2 + $0x238] sm:$0xff] }
 0x532   :  { %v1187_v27 = vpop.f32.mrf.mxu0  ;;  %v1258_v31 = vpop.f32.mrf.mxu1  ;;  %v3805_v22 = vld [vmem:[#allocation2 + $0x220] sm:$0xff] }
 0x533   :  { %v2624_v28 = vmul.f32 -1.442695, %v1186_v23  ;;  %v2626_v29 = vmul.f32 -1.442695, %v1257_v24  ;;  %v1188_v33 = vadd.f32 %v1187_v27, %v1112_v26  ;;  %v1259_v34 = vadd.f32 %v1258_v31, %v1114_v41  ;;  %v3808_v23 = vld [vmem:[#allocation2 + $0x230] sm:$0xff]  ;;  %v3811_v24 = vld [vmem:[#allocation2 + $0x208] sm:$0xff] }
 0x534   :  { %v3817_v26 = vld [vmem:[#allocation2 + $0x200] sm:$0xff]  ;;  %v3820_v27 = vld [vmem:[#allocation2 + $0x210] sm:$0xff]  ;;  %v3835_v31 = vld [vmem:[#allocation2 + $0x1c8] sm:$0xff] }
 0x535   :  { %2883 = vpow2.f32 %v2624_v28  ;;  %v2625_v46 = vmul.f32 -1.442695, %v1188_v33  ;;  %v2627_v47 = vmul.f32 -1.442695, %v1259_v34  ;;  %v3823_v28 = vld [vmem:[#allocation2 + $0x1e8] sm:$0xff]  ;;  %v3829_v33 = vld [vmem:[#allocation2 + $0x1e0] sm:$0xff] }
 0x536   :  { %2885 = vpow2.f32 %v2626_v29  ;;  %v3826_v29 = vld [vmem:[#allocation2 + $0x1f8] sm:$0xff]  ;;  %v3841_v41 = vld [vmem:[#allocation2 + $0x1c0] sm:$0xff]  ;;  %v3844_v34 = vld [vmem:[#allocation2 + $0x1d0] sm:$0xff] }
 0x537   :  { %2887 = vpow2.f32 %v2625_v46  ;;  %v3832_v46 = vld [vmem:[#allocation2 + $0x1f0] sm:$0xff] }
 0x542   :  { %v2884_v39 = vpop.eup %2883 }
 0x543   :  { %v2886_v53 = vpop.eup %2885  ;;  %v1273_v42 = vadd.f32 1.0, %v2884_v39  ;;  %v3847_v39 = vld [vmem:[#allocation2 + $0x1a8] sm:$0xff] }
 0x544   :  { %v2888_v50 = vpop.eup %2887  ;;  %v1275_v51 = vadd.f32 1.0, %v2886_v53  ;;  %v3850_v53 = vld [vmem:[#allocation2 + $0x1b8] sm:$0xff] }
 0x545   :  { %v1274_v19 = vadd.f32 1.0, %v2888_v50  ;;  %v3856_v50 = vld [vmem:[#allocation2 + $0x1b0] sm:$0xff] }
 0x546   :  { %2889 = vrcp.f32 %v1275_v51  ;;  %v3859_v51 = vld [vmem:[#allocation2 + $0x188] sm:$0xff] }
 0x547   :  { %2891 = vpow2.f32 %v2627_v47  ;;  %v3853_v47 = vld [vmem:[#allocation2 + $0x1a0] sm:$0xff]  ;;  %4592 = vst [vmem:[#allocation50_spill] sm:$0xff] %v3859_v51 }
 0x548   :  { %2893 = vrcp.f32 %v1274_v19  ;;  %4591 = vst [vmem:[#allocation12_spill] sm:$0xff] %v3853_v47  ;;  %v3862_v19 = vld [vmem:[#allocation2 + $0x198] sm:$0xff] }
 0x549   :  { %2895 = vrcp.f32 %v1273_v42  ;;  %4593 = vst [vmem:[#allocation54_spill] sm:$0xff] %v3862_v19  ;;  %v3865_v42 = vld [vmem:[#allocation2 + $0x180] sm:$0xff] }
 0x54a   :  { %4594 = vst [vmem:[#allocation47_spill] sm:$0xff] %v3865_v42 }
 0x553   :  { %v2890_v49 = vpop.eup %2889 }
 0x554   :  { %v2892_v30 = vpop.eup %2891  ;;  %v1285_v35 = vmul.f32 2.0, %v2890_v49  ;;  %v3868_v49 = vld [vmem:[#allocation2 + $0x190] sm:$0xff] }
 0x555   :  { %v2894_v36 = vpop.eup %2893  ;;  %v1276_v45 = vadd.f32 1.0, %v2892_v30  ;;  %4595 = vst [vmem:[#allocation56_spill] sm:$0xff] %v3868_v49  ;;  %v3871_v30 = vld [vmem:[#allocation2 + $0x168] sm:$0xff] }
 0x556   :  { %v2628_v38 = vadd.f32 -1.0, %v1285_v35  ;;  %v2896_v43 = vpop.eup %2895  ;;  %v1287_v20 = vmul.f32 %v2894_v36, %v3642_v1  ;;  %v3735_v1 = vld [vmem:[#allocation2 + $0x2c8] sm:$0xff]  ;;  %4596 = vst [vmem:[#allocation57_spill] sm:$0xff] %v3871_v30  ;;  %v3874_v35 = vld [vmem:[#allocation2 + $0x178] sm:$0xff]  ;;  %v3877_v36 = vld [vmem:[#allocation2 + $0x160] sm:$0xff] }
 0x557   :  { %2897 = vrcp.f32 %v1276_v45  ;;  %4597 = vst [vmem:[#allocation17_spill] sm:$0xff] %v3874_v35  ;;  %4598 = vst [vmem:[#allocation18_spill] sm:$0xff] %v3877_v36  ;;  %v3886_v45 = vld [vmem:[#allocation2 + $0x158] sm:$0xff] }
 0x558   :  { %v1288_v48 = vmul.f32 %v2896_v43, %v2628_v38  ;;  %v3880_v38 = vld [vmem:[#allocation2 + $0x170] sm:$0xff]  ;;  %v3883_v43 = vld [vmem:[#allocation2 + $0x148] sm:$0xff]  ;;  %4601 = vst [vmem:[#allocation21_spill] sm:$0xff] %v3886_v45 }
 0x559   :  { %4599 = vst [vmem:[#allocation19_spill] sm:$0xff] %v3880_v38  ;;  %4600 = vst [vmem:[#allocation20_spill] sm:$0xff] %v3883_v43 }
 0x55a   :  { %v3726_v40 = vadd.f32 %v1288_v48, %v1287_v20  ;;  %v3889_v48 = vld [vmem:[#allocation2 + $0x140] sm:$0xff]  ;;  %v3892_v20 = vld [vmem:[#allocation2 + $0x150] sm:$0xff] }
 0x55b   :  { %4602 = vst [vmem:[#allocation22_spill] sm:$0xff] %v3889_v48  ;;  %4603 = vst [vmem:[#allocation23_spill] sm:$0xff] %v3892_v20 }
 0x55c   :  { %2899 = vtanh.f32 %v3726_v40 }
 0x564   :  { %v2898_v52 = vpop.eup %2897 }
 0x569   :  { %v2900_v54 = vpop.eup %2899 }
 0x56a   :  { %v1291_v55 = vmul.f32 %v2900_v54, %v2898_v52  ;;  %v3895_v52 = vld [vmem:[#allocation2 + $0x128] sm:$0xff]  ;;  %v3898_v54 = vld [vmem:[#allocation2 + $0x138] sm:$0xff] }
 0x56b   :  { %4604 = vst [vmem:[#allocation24_spill] sm:$0xff] %v3895_v52  ;;  %4605 = vst [vmem:[#allocation25_spill] sm:$0xff] %v3898_v54 }
 0x56c   :  { %1357 = vmatmul.mubr.f32.vlgmr.msra.gmra.mxu0 %v1291_v55  ;;  %1428 = vmatmul.mubr.f32.vlgmr.msra.gmra.mxu1 %v1291_v55  ;;  %v2274_v56 = vrot.slane %v1291_v55, 2  ;;  %v3901_v55 = vld [vmem:[#allocation2 + $0x120] sm:$0xff] }
 0x56d   :  { %1478 = vmatpush1.msra.mxu0 %v3729_v57  ;;  %1549 = vmatpush1.msra.mxu1 %v3732_v58  ;;  %4606 = vst [vmem:[#allocation26_spill] sm:$0xff] %v3901_v55 }
 0x56e   :  { %1479 = vmatprep.subr.mxu0 %v3735_v1  ;;  %1550 = vmatprep.subr.mxu1 %v3738_v59  ;;  %v3743_v60 = vsel %vm2289_vm7, %v3653_v37, %v2274_v56  ;;  %v3760_v37 = vld [vmem:[#allocation2 + $0x2b0] sm:$0xff] }
 0x56f   :  { %4590 = vst [vmem:[#allocation11_spill] sm:$0xff] %v3743_v60  ;;  %1480 = vmatpush1.msra.mxu0 %v3745_v61  ;;  %1551 = vmatpush1.msra.mxu1 %v3748_v62  ;;  %v3904_v56 = vld [vmem:[#allocation2 + $0x130] sm:$0xff]  ;;  %v3910_v60 = vld [vmem:[#allocation2 + $0x118] sm:$0xff] }
 0x570   :  { %1481 = vmatprep.subr.mxu0 %v3751_v63  ;;  %1552 = vmatprep.subr.mxu1 %v3754_v0  ;;  %4607 = vst [vmem:[#allocation27_spill] sm:$0xff] %v3904_v56  ;;  %4609 = vst [vmem:[#allocation29_spill] sm:$0xff] %v3910_v60 }
 0x571   :  { %1482 = vmatpush1.msra.mxu0 %v3757_v2  ;;  %1553 = vmatpush1.msra.mxu1 %v3760_v37 }
 0x572   :  { %1483 = vmatprep.subr.mxu0 %v3763_v3  ;;  %1554 = vmatprep.subr.mxu1 %v3766_v4 }
 0x573   :  { %1484 = vmatpush1.msra.mxu0 %v3769_v5  ;;  %1555 = vmatpush1.msra.mxu1 %v3772_v6 }
 0x574   :  { %1485 = vmatprep.subr.mxu0 %v3775_v7  ;;  %1556 = vmatprep.subr.mxu1 %v3778_v8 }
 0x575   :  { %1486 = vmatpush1.msra.mxu0 %v3781_v9  ;;  %1557 = vmatpush1.msra.mxu1 %v3784_v10 }
 0x576   :  { %1487 = vmatprep.subr.mxu0 %v3787_v12  ;;  %1558 = vmatprep.subr.mxu1 %v3790_v15 }
 0x577   :  { %1488 = vmatpush1.msra.mxu0 %v3793_v16  ;;  %1559 = vmatpush1.msra.mxu1 %v3796_v17 }
 0x578   :  { %1489 = vmatprep.subr.mxu0 %v3799_v18  ;;  %1560 = vmatprep.subr.mxu1 %v3802_v21 }
 0x579   :  { %1490 = vmatpush1.msra.mxu0 %v3805_v22  ;;  %1561 = vmatpush1.msra.mxu1 %v3808_v23 }
 0x57a   :  { %1491 = vmatprep.subr.mxu0 %v3811_v24  ;;  %1562 = vmatprep.subr.mxu1 %v3814_v25 }
 0x57b   :  { %1492 = vmatpush1.msra.mxu0 %v3817_v26  ;;  %1563 = vmatpush1.msra.mxu1 %v3820_v27 }
 0x57c   :  { %1493 = vmatprep.subr.mxu0 %v3823_v28  ;;  %1564 = vmatprep.subr.mxu1 %v3826_v29 }
 0x57d   :  { %1494 = vmatpush1.msra.mxu0 %v3829_v33  ;;  %1565 = vmatpush1.msra.mxu1 %v3832_v46 }
 0x57e   :  { %1495 = vmatprep.subr.mxu0 %v3835_v31  ;;  %1566 = vmatprep.subr.mxu1 %v3838_v44 }
 0x57f   :  { %1496 = vmatpush1.msra.mxu0 %v3841_v41  ;;  %1567 = vmatpush1.msra.mxu1 %v3844_v34 }
 0x580   :  { %1497 = vmatprep.subr.mxu0 %v3847_v39  ;;  %1568 = vmatprep.subr.mxu1 %v3850_v53 }
 0x581   :  { %1498 = vmatpush1.msra.mxu0 %v3853_v47  ;;  %1569 = vmatpush1.msra.mxu1 %v3856_v50 }
 0x582   :  { %1499 = vmatprep.subr.mxu0 %v3859_v51  ;;  %1570 = vmatprep.subr.mxu1 %v3862_v19 }
 0x583   :  { %1500 = vmatpush1.msra.mxu0 %v3865_v42  ;;  %1571 = vmatpush1.msra.mxu1 %v3868_v49 }
 0x584   :  { %1501 = vmatprep.subr.mxu0 %v3871_v30  ;;  %1572 = vmatprep.subr.mxu1 %v3874_v35  ;;  %v4622_v30 = vld [vmem:[#allocation51_spill] sm:$0xff] }
 0x585   :  { %1502 = vmatpush1.msra.mxu0 %v3877_v36  ;;  %1573 = vmatpush1.msra.mxu1 %v3880_v38  ;;  %v4618_v38 = vld [vmem:[#allocation45_spill] sm:$0xff] }
 0x586   :  { %1503 = vmatprep.subr.mxu0 %v3883_v43  ;;  %1574 = vmatprep.subr.mxu1 %v3886_v45 }
 0x587   :  { %1504 = vmatpush1.msra.mxu0 %v3889_v48  ;;  %1575 = vmatpush1.msra.mxu1 %v3892_v20  ;;  %v4616_v20 = vld [vmem:[#allocation48_spill] sm:$0xff] }
 0x588   :  { %1505 = vmatprep.subr.mxu0 %v3895_v52  ;;  %1576 = vmatprep.subr.mxu1 %v3898_v54  ;;  %v3913_v52 = vld [vmem:[#allocation2 + $0x100] sm:$0xff]  ;;  %v3917_v54 = vld [vmem:[#allocation2 + $0x110] sm:$0xff] }
 0x589   :  { %1506 = vmatpush1.msra.mxu0 %v3901_v55  ;;  %1577 = vmatpush1.msra.mxu1 %v3904_v56  ;;  %4610 = vst [vmem:[#allocation30_spill] sm:$0xff] %v3913_v52  ;;  %4611 = vst [vmem:[#allocation31_spill] sm:$0xff] %v3917_v54  ;;  %v4613_v56 = vld [vmem:[#allocation39_spill] sm:$0xff] }
 0x58a   :  { %1507 = vmatprep.subr.mxu0 %v3907_v32  ;;  %1578 = vmatprep.subr.mxu1 %v3910_v60  ;;  %v4612_v32 = vld [vmem:[#allocation46_spill] sm:$0xff]  ;;  %v4615_v60 = vld [vmem:[#allocation53_spill] sm:$0xff] }
 0x58b   :  { %1508 = vmatpush1.msra.mxu0 %v3913_v52  ;;  %1541 = vmatprep.mubr.f32.mxu0 %v4582_v11  ;;  %v3925_v55 = vadd.f32 %v4613_v56, %v4612_v32  ;;  %v3929_v48 = vadd.f32 %v4616_v20, %v4615_v60  ;;  %v4621_v60 = vld [vmem:[#allocation55_spill] sm:$0xff] }
 0x58c   :  { %1579 = vmatpush1.msra.mxu1 %v3917_v54  ;;  %1612 = vmatprep.mubr.f32.mxu1 %v4582_v11  ;;  %v4619_v11 = vld [vmem:[#allocation41_spill] sm:$0xff]  ;;  %v3940_v49 = vadd.f32 %v4622_v30, %v4621_v60 }
 0x58d   :  { %1662 = vmatprep.subr.mxu0 %v3715_v13  ;;  %1733 = vmatprep.subr.mxu1 %v3718_v14  ;;  %4614 = vst [vmem:[#allocation32_spill] sm:$0xff] %v3925_v55  ;;  %4617 = vst [vmem:[#allocation33_spill] sm:$0xff] %v3929_v48  ;;  %v3935_v36 = vadd.f32 %v4619_v11, %v4618_v38 }
 0x58e   :  { %4623 = vst [vmem:[#allocation35_spill] sm:$0xff] %v3940_v49 }
 0x58f   :  { %4620 = vst [vmem:[#allocation34_spill] sm:$0xff] %v3935_v36 }
 0x62c   :  { %v1358_v52 = vpop.f32.mrf.mxu0  ;;  %v1429_v45 = vpop.f32.mrf.mxu1 }
 0x62d   :  { %v1359_v43 = vadd.f32 %v1358_v52, %v3925_v55  ;;  %v1430_v54 = vadd.f32 %v1429_v45, %v3929_v48 }
 0x62e   :  { %v1360_v13 = vpop.f32.mrf.mxu0  ;;  %v1431_v20 = vpop.f32.mrf.mxu1 }
 0x62f   :  { %v2629_v14 = vmul.f32 -1.442695, %v1359_v43  ;;  %v2631_v35 = vmul.f32 -1.442695, %v1430_v54  ;;  %v1361_v56 = vadd.f32 %v1360_v13, %v3935_v36  ;;  %v1432_v45 = vadd.f32 %v1431_v20, %v3940_v49 }
 0x631   :  { %2901 = vpow2.f32 %v2629_v14  ;;  %v2630_v32 = vmul.f32 -1.442695, %v1361_v56  ;;  %v2632_v11 = vmul.f32 -1.442695, %v1432_v45  ;;  %v4628_v45 = vld [vmem:[#allocation18_spill] sm:$0xff] }
 0x632   :  { %2903 = vpow2.f32 %v2631_v35 }
 0x633   :  { %2905 = vpow2.f32 %v2630_v32 }
 0x63e   :  { %v2902_v52 = vpop.eup %2901 }
 0x63f   :  { %v2904_v48 = vpop.eup %2903  ;;  %v1446_v54 = vadd.f32 1.0, %v2902_v52  ;;  %v4629_v52 = vld [vmem:[#allocation19_spill] sm:$0xff] }
 0x640   :  { %v2906_v55 = vpop.eup %2905  ;;  %v1448_v38 = vadd.f32 1.0, %v2904_v48 }
 0x641   :  { %v1447_v43 = vadd.f32 1.0, %v2906_v55 }
 0x642   :  { %2907 = vrcp.f32 %v1448_v38 }
 0x643   :  { %2909 = vpow2.f32 %v2632_v11  ;;  %v4630_v11 = vld [vmem:[#allocation20_spill] sm:$0xff] }
 0x644   :  { %2911 = vrcp.f32 %v1447_v43  ;;  %v4631_v43 = vld [vmem:[#allocation21_spill] sm:$0xff] }
 0x645   :  { %2913 = vrcp.f32 %v1446_v54  ;;  %v4632_v54 = vld [vmem:[#allocation22_spill] sm:$0xff] }
 0x64f   :  { %v2908_v13 = vpop.eup %2907 }
 0x650   :  { %v2910_v32 = vpop.eup %2909  ;;  %v1458_v14 = vmul.f32 2.0, %v2908_v13  ;;  %v4633_v13 = vld [vmem:[#allocation23_spill] sm:$0xff] }
 0x651   :  { %v2912_v35 = vpop.eup %2911  ;;  %v1449_v36 = vadd.f32 1.0, %v2910_v32  ;;  %v4634_v32 = vld [vmem:[#allocation24_spill] sm:$0xff] }
 0x652   :  { %v2633_v56 = vadd.f32 -1.0, %v1458_v14  ;;  %v2914_v30 = vpop.eup %2913  ;;  %v1460_v20 = vmul.f32 %v2912_v35, %v3726_v40  ;;  %v4625_v40 = vld [vmem:[#allocation56_spill] sm:$0xff]  ;;  %v4635_v14 = vld [vmem:[#allocation25_spill] sm:$0xff]  ;;  %v4636_v35 = vld [vmem:[#allocation26_spill] sm:$0xff] }
 0x653   :  { %2915 = vrcp.f32 %v1449_v36  ;;  %v4627_v36 = vld [vmem:[#allocation17_spill] sm:$0xff] }
 0x654   :  { %v1461_v60 = vmul.f32 %v2914_v30, %v2633_v56  ;;  %v4637_v56 = vld [vmem:[#allocation27_spill] sm:$0xff]  ;;  %v4638_v30 = vld [vmem:[#allocation28_spill] sm:$0xff] }
 0x656   :  { %v3944_v49 = vadd.f32 %v1461_v60, %v1460_v20  ;;  %v4626_v60 = vld [vmem:[#allocation57_spill] sm:$0xff] }
 0x657   :  { %v4639_v20 = vld [vmem:[#allocation29_spill] sm:$0xff] }
 0x658   :  { %2917 = vtanh.f32 %v3944_v49 }
 0x660   :  { %v2916_v48 = vpop.eup %2915 }
 0x665   :  { %v2918_v38 = vpop.eup %2917 }
 0x666   :  { %v3947_v55 = vmul.f32 %v2918_v38, %v2916_v48  ;;  %v4640_v48 = vld [vmem:[#allocation30_spill] sm:$0xff]  ;;  %v4641_v38 = vmov 0.0  }
 0x668   :  { %4624 = vst [vmem:[#allocation36_spill] sm:$0xff] %v3947_v55  ;;  %1542 = vmatmul.mubr.f32.vlgmr.msra.gmra.mxu0 %v3947_v55  ;;  %1613 = vmatmul.mubr.f32.vlgmr.msra.gmra.mxu1 %v3947_v55  ;;  %v4642_v55 = vld [vmem:[#allocation31_spill] sm:$0xff] }
 0x669   :  { %1663 = vmatpush1.msra.mxu0 %v3729_v57  ;;  %1734 = vmatpush1.msra.mxu1 %v3732_v58 }
 0x66a   :  { %1664 = vmatprep.subr.mxu0 %v3735_v1  ;;  %1735 = vmatprep.subr.mxu1 %v3738_v59 }
 0x66b   :  { %1665 = vmatpush1.msra.mxu0 %v3745_v61  ;;  %1736 = vmatpush1.msra.mxu1 %v3748_v62 }
 0x66c   :  { %1666 = vmatprep.subr.mxu0 %v3751_v63  ;;  %1737 = vmatprep.subr.mxu1 %v3754_v0 }
 0x66d   :  { %1667 = vmatpush1.msra.mxu0 %v3757_v2  ;;  %1738 = vmatpush1.msra.mxu1 %v3760_v37 }
 0x66e   :  { %1668 = vmatprep.subr.mxu0 %v3763_v3  ;;  %1739 = vmatprep.subr.mxu1 %v3766_v4 }
 0x66f   :  { %1669 = vmatpush1.msra.mxu0 %v3769_v5  ;;  %1740 = vmatpush1.msra.mxu1 %v3772_v6 }
 0x670   :  { %1670 = vmatprep.subr.mxu0 %v3775_v7  ;;  %1741 = vmatprep.subr.mxu1 %v3778_v8 }
 0x671   :  { %1671 = vmatpush1.msra.mxu0 %v3781_v9  ;;  %1742 = vmatpush1.msra.mxu1 %v3784_v10 }
 0x672   :  { %1672 = vmatprep.subr.mxu0 %v3787_v12  ;;  %1743 = vmatprep.subr.mxu1 %v3790_v15 }
 0x673   :  { %1673 = vmatpush1.msra.mxu0 %v3793_v16  ;;  %1744 = vmatpush1.msra.mxu1 %v3796_v17 }
 0x674   :  { %1674 = vmatprep.subr.mxu0 %v3799_v18  ;;  %1745 = vmatprep.subr.mxu1 %v3802_v21 }
 0x675   :  { %1675 = vmatpush1.msra.mxu0 %v3805_v22  ;;  %1746 = vmatpush1.msra.mxu1 %v3808_v23 }
 0x676   :  { %1676 = vmatprep.subr.mxu0 %v3811_v24  ;;  %1747 = vmatprep.subr.mxu1 %v3814_v25 }
 0x677   :  { %1677 = vmatpush1.msra.mxu0 %v3817_v26  ;;  %1748 = vmatpush1.msra.mxu1 %v3820_v27 }
 0x678   :  { %1678 = vmatprep.subr.mxu0 %v3823_v28  ;;  %1749 = vmatprep.subr.mxu1 %v3826_v29 }
 0x679   :  { %1679 = vmatpush1.msra.mxu0 %v3829_v33  ;;  %1750 = vmatpush1.msra.mxu1 %v3832_v46 }
 0x67a   :  { %1680 = vmatprep.subr.mxu0 %v3835_v31  ;;  %1751 = vmatprep.subr.mxu1 %v3838_v44 }
 0x67b   :  { %1681 = vmatpush1.msra.mxu0 %v3841_v41  ;;  %1752 = vmatpush1.msra.mxu1 %v3844_v34 }
 0x67c   :  { %1682 = vmatprep.subr.mxu0 %v3847_v39  ;;  %1753 = vmatprep.subr.mxu1 %v3850_v53 }
 0x67d   :  { %1683 = vmatpush1.msra.mxu0 %v3853_v47  ;;  %1754 = vmatpush1.msra.mxu1 %v3856_v50 }
 0x67e   :  { %1684 = vmatprep.subr.mxu0 %v3859_v51  ;;  %1755 = vmatprep.subr.mxu1 %v3862_v19 }
 0x67f   :  { %1685 = vmatpush1.msra.mxu0 %v3865_v42  ;;  %1756 = vmatpush1.msra.mxu1 %v4625_v40 }
 0x680   :  { %1686 = vmatprep.subr.mxu0 %v4626_v60  ;;  %1757 = vmatprep.subr.mxu1 %v4627_v36 }
 0x681   :  { %1687 = vmatpush1.msra.mxu0 %v4628_v45  ;;  %1758 = vmatpush1.msra.mxu1 %v4629_v52 }
 0x682   :  { %1688 = vmatprep.subr.mxu0 %v4630_v11  ;;  %1759 = vmatprep.subr.mxu1 %v4631_v43 }
 0x683   :  { %1689 = vmatpush1.msra.mxu0 %v4632_v54  ;;  %1760 = vmatpush1.msra.mxu1 %v4633_v13  ;;  %v4643_v13 = vld [vmem:[#allocation38_spill] sm:$0xff] }
 0x684   :  { %1690 = vmatprep.subr.mxu0 %v4634_v32  ;;  %1761 = vmatprep.subr.mxu1 %v4635_v14  ;;  %v4644_v32 = vld [vmem:[#allocation44_spill] sm:$0xff]  ;;  %v4645_v14 = vld [vmem:[#allocation46_spill] sm:$0xff] }
 0x685   :  { %1691 = vmatpush1.msra.mxu0 %v4636_v35  ;;  %1762 = vmatpush1.msra.mxu1 %v4637_v56  ;;  %v4646_v35 = vld [vmem:[#allocation40_spill] sm:$0xff]  ;;  %v4648_v56 = vld [vmem:[#allocation53_spill] sm:$0xff] }
 0x686   :  { %1692 = vmatprep.subr.mxu0 %v4638_v30  ;;  %1763 = vmatprep.subr.mxu1 %v4639_v20  ;;  %v4019_v54 = vadd.f32 %v4646_v35, %v4645_v14  ;;  %v4649_v30 = vld [vmem:[#allocation49_spill] sm:$0xff] }
 0x687   :  { %1693 = vmatpush1.msra.mxu0 %v4640_v48  ;;  %1726 = vmatprep.mubr.f32.mxu0 %v4641_v38  ;;  %v4023_v43 = vadd.f32 %v4649_v30, %v4648_v56  ;;  %v4651_v20 = vld [vmem:[#allocation45_spill] sm:$0xff]  ;;  %v4652_v48 = vld [vmem:[#allocation42_spill] sm:$0xff] }
 0x688   :  { %1764 = vmatpush1.msra.mxu1 %v4642_v55  ;;  %1797 = vmatprep.mubr.f32.mxu1 %v4641_v38  ;;  %4647 = vst [vmem:[#allocation37_spill] sm:$0xff] %v4019_v54  ;;  %v4027_v11 = vadd.f32 %v4652_v48, %v4651_v20  ;;  %v1469_v55 = vrot.slane %v4019_v54, 2  ;;  %v4654_v48 = vld [vmem:[#allocation55_spill] sm:$0xff]  ;;  %v4655_v20 = vld [vmem:[#allocation52_spill] sm:$0xff] }
 0x689   :  { %1843 = vmatprep.subr.mxu0 %v4643_v13  ;;  %1914 = vmatprep.subr.mxu1 %v4644_v32  ;;  %4650 = vst [vmem:[#allocation13_spill] sm:$0xff] %v4023_v43  ;;  %v1471_v38 = vrot.slane %v4023_v43, 2  ;;  %v4034_v56 = vadd.f32 %v4655_v20, %v4654_v48 }
 0x68a   :  { %4653 = vst [vmem:[#allocation14_spill] sm:$0xff] %v4027_v11  ;;  %v1470_v36 = vrot.slane %v4027_v11, 2 }
 0x68b   :  { %4656 = vst [vmem:[#allocation15_spill] sm:$0xff] %v4034_v56  ;;  %v1472_v43 = vrot.slane %v4034_v56, 2  ;;  %v4674_v56 = vmov 0.0  }
 0x728   :  { %v1543_v52 = vpop.f32.mrf.mxu0  ;;  %v1614_v13 = vpop.f32.mrf.mxu1 }
 0x729   :  { %v1544_v45 = vadd.f32 %v1543_v52, %v1469_v55  ;;  %v1615_v32 = vadd.f32 %v1614_v13, %v1471_v38 }
 0x72a   :  { %v1545_v35 = vpop.f32.mrf.mxu0  ;;  %v1616_v54 = vpop.f32.mrf.mxu1 }
 0x72b   :  { %v2634_v14 = vmul.f32 -1.442695, %v1544_v45  ;;  %v2636_v60 = vmul.f32 -1.442695, %v1615_v32  ;;  %v1546_v40 = vadd.f32 %v1545_v35, %v1470_v36  ;;  %v1617_v42 = vadd.f32 %v1616_v54, %v1472_v43 }
 0x72d   :  { %2919 = vpow2.f32 %v2634_v14  ;;  %v2635_v30 = vmul.f32 -1.442695, %v1546_v40  ;;  %v2637_v13 = vmul.f32 -1.442695, %v1617_v42 }
 0x72e   :  { %2921 = vpow2.f32 %v2636_v60 }
 0x72f   :  { %2923 = vpow2.f32 %v2635_v30 }
 0x73a   :  { %v2920_v55 = vpop.eup %2919 }
 0x73b   :  { %v2922_v52 = vpop.eup %2921  ;;  %v1631_v32 = vadd.f32 1.0, %v2920_v55 }
 0x73c   :  { %v2924_v38 = vpop.eup %2923  ;;  %v1633_v11 = vadd.f32 1.0, %v2922_v52  ;;  %v4659_v52 = vld [vmem:[#allocation57_spill] sm:$0xff] }
 0x73d   :  { %v1632_v45 = vadd.f32 1.0, %v2924_v38  ;;  %v4661_v38 = vld [vmem:[#allocation18_spill] sm:$0xff] }
 0x73e   :  { %2925 = vrcp.f32 %v1633_v11 }
 0x73f   :  { %2927 = vpow2.f32 %v2637_v13  ;;  %v4660_v13 = vld [vmem:[#allocation17_spill] sm:$0xff] }
 0x740   :  { %2929 = vrcp.f32 %v1632_v45  ;;  %v4662_v45 = vld [vmem:[#allocation19_spill] sm:$0xff] }
 0x741   :  { %2931 = vrcp.f32 %v1631_v32  ;;  %v4663_v32 = vld [vmem:[#allocation20_spill] sm:$0xff] }
 0x74b   :  { %v2926_v40 = vpop.eup %2925 }
 0x74c   :  { %v2928_v60 = vpop.eup %2927  ;;  %v1643_v36 = vmul.f32 2.0, %v2926_v40  ;;  %v4664_v40 = vld [vmem:[#allocation21_spill] sm:$0xff] }
 0x74d   :  { %v2930_v14 = vpop.eup %2929  ;;  %v1634_v30 = vadd.f32 1.0, %v2928_v60  ;;  %v4665_v60 = vld [vmem:[#allocation22_spill] sm:$0xff] }
 0x74e   :  { %v2638_v20 = vadd.f32 -1.0, %v1643_v36  ;;  %v2932_v35 = vpop.eup %2931  ;;  %v1645_v43 = vmul.f32 %v2930_v14, %v3944_v49  ;;  %v4657_v49 = vld [vmem:[#allocation47_spill] sm:$0xff]  ;;  %v4667_v14 = vld [vmem:[#allocation24_spill] sm:$0xff] }
 0x74f   :  { %2933 = vrcp.f32 %v1634_v30  ;;  %v4666_v36 = vld [vmem:[#allocation23_spill] sm:$0xff] }
 0x750   :  { %v1646_v48 = vmul.f32 %v2932_v35, %v2638_v20  ;;  %v4668_v20 = vld [vmem:[#allocation25_spill] sm:$0xff]  ;;  %v4669_v35 = vld [vmem:[#allocation26_spill] sm:$0xff]  ;;  %v4670_v30 = vld [vmem:[#allocation27_spill] sm:$0xff] }
 0x752   :  { %v4038_v54 = vadd.f32 %v1646_v48, %v1645_v43  ;;  %v4658_v48 = vld [vmem:[#allocation56_spill] sm:$0xff] }
 0x753   :  { %v4671_v43 = vld [vmem:[#allocation28_spill] sm:$0xff] }
 0x754   :  { %2935 = vtanh.f32 %v4038_v54 }
 0x75c   :  { %v2934_v42 = vpop.eup %2933 }
 0x761   :  { %v2936_v11 = vpop.eup %2935 }
 0x762   :  { %v4041_v55 = vmul.f32 %v2936_v11, %v2934_v42  ;;  %v4672_v42 = vld [vmem:[#allocation29_spill] sm:$0xff]  ;;  %v4673_v11 = vld [vmem:[#allocation30_spill] sm:$0xff] }
 0x764   :  { %1727 = vmatmul.mubr.f32.vlgmr.msra.gmra.mxu0 %v4041_v55  ;;  %1798 = vmatmul.mubr.f32.vlgmr.msra.gmra.mxu1 %v4041_v55 }
 0x765   :  { %1844 = vmatpush1.msra.mxu0 %v3729_v57  ;;  %1915 = vmatpush1.msra.mxu1 %v3732_v58 }
 0x766   :  { %1845 = vmatprep.subr.mxu0 %v3735_v1  ;;  %1916 = vmatprep.subr.mxu1 %v3738_v59 }
 0x767   :  { %1846 = vmatpush1.msra.mxu0 %v3745_v61  ;;  %1917 = vmatpush1.msra.mxu1 %v3748_v62 }
 0x768   :  { %1847 = vmatprep.subr.mxu0 %v3751_v63  ;;  %1918 = vmatprep.subr.mxu1 %v3754_v0 }
 0x769   :  { %1848 = vmatpush1.msra.mxu0 %v3757_v2  ;;  %1919 = vmatpush1.msra.mxu1 %v3760_v37 }
 0x76a   :  { %1849 = vmatprep.subr.mxu0 %v3763_v3  ;;  %1920 = vmatprep.subr.mxu1 %v3766_v4 }
 0x76b   :  { %1850 = vmatpush1.msra.mxu0 %v3769_v5  ;;  %1921 = vmatpush1.msra.mxu1 %v3772_v6 }
 0x76c   :  { %1851 = vmatprep.subr.mxu0 %v3775_v7  ;;  %1922 = vmatprep.subr.mxu1 %v3778_v8 }
 0x76d   :  { %1852 = vmatpush1.msra.mxu0 %v3781_v9  ;;  %1923 = vmatpush1.msra.mxu1 %v3784_v10 }
 0x76e   :  { %1853 = vmatprep.subr.mxu0 %v3787_v12  ;;  %1924 = vmatprep.subr.mxu1 %v3790_v15 }
 0x76f   :  { %1854 = vmatpush1.msra.mxu0 %v3793_v16  ;;  %1925 = vmatpush1.msra.mxu1 %v3796_v17 }
 0x770   :  { %1855 = vmatprep.subr.mxu0 %v3799_v18  ;;  %1926 = vmatprep.subr.mxu1 %v3802_v21 }
 0x771   :  { %1856 = vmatpush1.msra.mxu0 %v3805_v22  ;;  %1927 = vmatpush1.msra.mxu1 %v3808_v23 }
 0x772   :  { %1857 = vmatprep.subr.mxu0 %v3811_v24  ;;  %1928 = vmatprep.subr.mxu1 %v3814_v25 }
 0x773   :  { %1858 = vmatpush1.msra.mxu0 %v3817_v26  ;;  %1929 = vmatpush1.msra.mxu1 %v3820_v27 }
 0x774   :  { %1859 = vmatprep.subr.mxu0 %v3823_v28  ;;  %1930 = vmatprep.subr.mxu1 %v3826_v29 }
 0x775   :  { %1860 = vmatpush1.msra.mxu0 %v3829_v33  ;;  %1931 = vmatpush1.msra.mxu1 %v3832_v46 }
 0x776   :  { %1861 = vmatprep.subr.mxu0 %v3835_v31  ;;  %1932 = vmatprep.subr.mxu1 %v3838_v44 }
 0x777   :  { %1862 = vmatpush1.msra.mxu0 %v3841_v41  ;;  %1933 = vmatpush1.msra.mxu1 %v3844_v34 }
 0x778   :  { %1863 = vmatprep.subr.mxu0 %v3847_v39  ;;  %1934 = vmatprep.subr.mxu1 %v3850_v53 }
 0x779   :  { %1864 = vmatpush1.msra.mxu0 %v3853_v47  ;;  %1935 = vmatpush1.msra.mxu1 %v3856_v50 }
 0x77a   :  { %1865 = vmatprep.subr.mxu0 %v3859_v51  ;;  %1936 = vmatprep.subr.mxu1 %v3862_v19 }
 0x77b   :  { %1866 = vmatpush1.msra.mxu0 %v4657_v49  ;;  %1937 = vmatpush1.msra.mxu1 %v4658_v48 }
 0x77c   :  { %1867 = vmatprep.subr.mxu0 %v4659_v52  ;;  %1938 = vmatprep.subr.mxu1 %v4660_v13 }
 0x77d   :  { %1868 = vmatpush1.msra.mxu0 %v4661_v38  ;;  %1939 = vmatpush1.msra.mxu1 %v4662_v45  ;;  %v4680_v45 = vld [vmem:[#allocation34_spill] sm:$0xff] }
 0x77e   :  { %1869 = vmatprep.subr.mxu0 %v4663_v32  ;;  %1940 = vmatprep.subr.mxu1 %v4664_v40  ;;  %v4675_v32 = vld [vmem:[#allocation31_spill] sm:$0xff] }
 0x77f   :  { %1870 = vmatpush1.msra.mxu0 %v4665_v60  ;;  %1941 = vmatpush1.msra.mxu1 %v4666_v36  ;;  %v4676_v60 = vld [vmem:[#allocation44_spill] sm:$0xff]  ;;  %v4679_v36 = vld [vmem:[#allocation33_spill] sm:$0xff] }
 0x780   :  { %1871 = vmatprep.subr.mxu0 %v4667_v14  ;;  %1942 = vmatprep.subr.mxu1 %v4668_v20  ;;  %v4677_v14 = vld [vmem:[#allocation38_spill] sm:$0xff]  ;;  %v4678_v20 = vld [vmem:[#allocation32_spill] sm:$0xff] }
 0x781   :  { %1872 = vmatpush1.msra.mxu0 %v4669_v35  ;;  %1943 = vmatpush1.msra.mxu1 %v4670_v30  ;;  %v1654_v35 = vrot.slane %v4678_v20, 4  ;;  %v1656_v30 = vrot.slane %v4679_v36, 4 }
 0x782   :  { %1873 = vmatprep.subr.mxu0 %v4671_v43  ;;  %1944 = vmatprep.subr.mxu1 %v4672_v42 }
 0x783   :  { %1874 = vmatpush1.msra.mxu0 %v4673_v11  ;;  %1907 = vmatprep.mubr.f32.mxu0 %v4674_v56  ;;  %v1655_v11 = vrot.slane %v4680_v45, 4 }
 0x784   :  { %1945 = vmatpush1.msra.mxu1 %v4675_v32  ;;  %1978 = vmatprep.mubr.f32.mxu1 %v4674_v56 }
 0x785   :  { %2087 = vmatprep.subr.mxu1 %v4676_v60  ;;  %2016 = vmatprep.subr.mxu0 %v4677_v14  ;;  %v4681_v14 = vld [vmem:[#allocation35_spill] sm:$0xff] }
 0x786   :  { %v1657_v48 = vrot.slane %v4681_v14, 4  ;;  %v4682_v14 = vld [vmem:[#allocation36_spill] sm:$0xff] }
 0x824   :  { %v1728_v40 = vpop.f32.mrf.mxu0  ;;  %v1799_v43 = vpop.f32.mrf.mxu1 }
 0x825   :  { %v1729_v38 = vadd.f32 %v1728_v40, %v1654_v35  ;;  %v1800_v42 = vadd.f32 %v1799_v43, %v1656_v30 }
 0x826   :  { %v1730_v52 = vpop.f32.mrf.mxu0  ;;  %v1801_v60 = vpop.f32.mrf.mxu1 }
 0x827   :  { %v2639_v13 = vmul.f32 -1.442695, %v1729_v38  ;;  %v2641_v49 = vmul.f32 -1.442695, %v1800_v42  ;;  %v1731_v32 = vadd.f32 %v1730_v52, %v1655_v11  ;;  %v1802_v20 = vadd.f32 %v1801_v60, %v1657_v48 }
 0x829   :  { %2937 = vpow2.f32 %v2639_v13  ;;  %v2640_v56 = vmul.f32 -1.442695, %v1731_v32  ;;  %v2642_v19 = vmul.f32 -1.442695, %v1802_v20 }
 0x82a   :  { %2939 = vpow2.f32 %v2641_v49 }
 0x82b   :  { %2941 = vpow2.f32 %v2640_v56 }
 0x836   :  { %v2938_v51 = vpop.eup %2937 }
 0x837   :  { %v2940_v36 = vpop.eup %2939  ;;  %v1816_v30 = vadd.f32 1.0, %v2938_v51 }
 0x838   :  { %v2942_v47 = vpop.eup %2941  ;;  %v1818_v40 = vadd.f32 1.0, %v2940_v36 }
 0x839   :  { %v1817_v35 = vadd.f32 1.0, %v2942_v47 }
 0x83a   :  { %2943 = vrcp.f32 %v1818_v40 }
 0x83b   :  { %2945 = vpow2.f32 %v2642_v19  ;;  %v2277_v19 = vrot.slane %v4041_v55, 6 }
 0x83c   :  { %2947 = vrcp.f32 %v1817_v35 }
 0x83d   :  { %2949 = vrcp.f32 %v1816_v30 }
 0x847   :  { %v2944_v52 = vpop.eup %2943 }
 0x848   :  { %v2946_v13 = vpop.eup %2945  ;;  %v1828_v38 = vmul.f32 2.0, %v2944_v52 }
 0x849   :  { %v2948_v49 = vpop.eup %2947  ;;  %v1819_v32 = vadd.f32 1.0, %v2946_v13 }
 0x84a   :  { %v2643_v56 = vadd.f32 -1.0, %v1828_v38  ;;  %v2950_v45 = vpop.eup %2949  ;;  %v1830_v48 = vmul.f32 %v2948_v49, %v4038_v54  ;;  %v2291_v54 = vsel %vm2285_vm5, %v4682_v14, %v2277_v19 }
 0x84b   :  { %2951 = vrcp.f32 %v1819_v32 }
 0x84c   :  { %v1831_v43 = vmul.f32 %v2950_v45, %v2643_v56 }
 0x84e   :  { %v4116_v42 = vadd.f32 %v1831_v43, %v1830_v48 }
 0x850   :  { %2953 = vtanh.f32 %v4116_v42 }
 0x858   :  { %v2952_v47 = vpop.eup %2951 }
 0x85d   :  { %v2954_v51 = vpop.eup %2953 }
 0x85e   :  { %v1834_v11 = vmul.f32 %v2954_v51, %v2952_v47 }
 0x860   :  { %1908 = vmatmul.mubr.f32.vlgmr.msra.gmra.mxu0 %v1834_v11  ;;  %1979 = vmatmul.mubr.f32.vlgmr.msra.gmra.mxu1 %v1834_v11  ;;  %v2280_v60 = vrot.slane %v1834_v11, 4 }
 0x861   :  { %2088 = vmatpush1.msra.mxu1 %v3732_v58  ;;  %2017 = vmatpush1.msra.mxu0 %v3729_v57  ;;  %v4683_v57 = vld [vmem:[#allocation12_spill] sm:$0xff]  ;;  %v4684_v58 = vld [vmem:[#allocation54_spill] sm:$0xff] }
 0x862   :  { %2089 = vmatprep.subr.mxu1 %v3738_v59  ;;  %2018 = vmatprep.subr.mxu0 %v3735_v1  ;;  %v4127_v20 = vsel %vm2287_vm6, %v2291_v54, %v2280_v60  ;;  %v4685_v1 = vld [vmem:[#allocation50_spill] sm:$0xff]  ;;  %v4686_v59 = vld [vmem:[#allocation56_spill] sm:$0xff]  ;;  %v160_v54 = vld [vmem:[#allocation4 + $0x78] sm:$0xff] }
 0x863   :  { %2090 = vmatpush1.msra.mxu1 %v3748_v62  ;;  %2019 = vmatpush1.msra.mxu0 %v3745_v61  ;;  %v4687_v61 = vld [vmem:[#allocation47_spill] sm:$0xff]  ;;  %v4688_v62 = vld [vmem:[#allocation17_spill] sm:$0xff] }
 0x864   :  { %2091 = vmatprep.subr.mxu1 %v3754_v0  ;;  %2020 = vmatprep.subr.mxu0 %v3751_v63  ;;  %v4689_v63 = vld [vmem:[#allocation57_spill] sm:$0xff]  ;;  %v4690_v0 = vld [vmem:[#allocation19_spill] sm:$0xff] }
 0x865   :  { %2092 = vmatpush1.msra.mxu1 %v3760_v37  ;;  %2021 = vmatpush1.msra.mxu0 %v3757_v2  ;;  %v4691_v2 = vld [vmem:[#allocation18_spill] sm:$0xff]  ;;  %v4692_v37 = vld [vmem:[#allocation21_spill] sm:$0xff] }
 0x866   :  { %2093 = vmatprep.subr.mxu1 %v3766_v4  ;;  %2022 = vmatprep.subr.mxu0 %v3763_v3  ;;  %v4693_v3 = vld [vmem:[#allocation20_spill] sm:$0xff]  ;;  %v4694_v4 = vld [vmem:[#allocation23_spill] sm:$0xff] }
 0x867   :  { %2094 = vmatpush1.msra.mxu1 %v3772_v6  ;;  %2023 = vmatpush1.msra.mxu0 %v3769_v5  ;;  %v4695_v5 = vld [vmem:[#allocation22_spill] sm:$0xff]  ;;  %v4696_v6 = vld [vmem:[#allocation25_spill] sm:$0xff] }
 0x868   :  { %2095 = vmatprep.subr.mxu1 %v3778_v8  ;;  %2024 = vmatprep.subr.mxu0 %v3775_v7  ;;  %v4697_v7 = vld [vmem:[#allocation24_spill] sm:$0xff]  ;;  %v4698_v8 = vld [vmem:[#allocation27_spill] sm:$0xff] }
 0x869   :  { %2096 = vmatpush1.msra.mxu1 %v3784_v10  ;;  %2025 = vmatpush1.msra.mxu0 %v3781_v9  ;;  %v4699_v9 = vld [vmem:[#allocation26_spill] sm:$0xff]  ;;  %v4700_v10 = vld [vmem:[#allocation29_spill] sm:$0xff] }
 0x86a   :  { %2097 = vmatprep.subr.mxu1 %v3790_v15  ;;  %2026 = vmatprep.subr.mxu0 %v3787_v12  ;;  %v4701_v12 = vld [vmem:[#allocation28_spill] sm:$0xff]  ;;  %v4702_v15 = vld [vmem:[#allocation31_spill] sm:$0xff] }
 0x86b   :  { %2098 = vmatpush1.msra.mxu1 %v3796_v17  ;;  %2027 = vmatpush1.msra.mxu0 %v3793_v16  ;;  %v4703_v16 = vld [vmem:[#allocation30_spill] sm:$0xff]  ;;  %v4704_v17 = vmov 0.0  }
 0x86c   :  { %2099 = vmatprep.subr.mxu1 %v3802_v21  ;;  %2028 = vmatprep.subr.mxu0 %v3799_v18  ;;  %v4705_v18 = vld [vmem:[#allocation37_spill] sm:$0xff] }
 0x86d   :  { %2100 = vmatpush1.msra.mxu1 %v3808_v23  ;;  %2029 = vmatpush1.msra.mxu0 %v3805_v22  ;;  %v1835_v21 = vrot.slane %v4705_v18, 6  ;;  %v4706_v22 = vld [vmem:[#allocation13_spill] sm:$0xff]  ;;  %v171_v18 = vld [vmem:[#allocation4 + $0xd0] sm:$0xff] }
 0x86e   :  { %2101 = vmatprep.subr.mxu1 %v3814_v25  ;;  %2030 = vmatprep.subr.mxu0 %v3811_v24  ;;  %v1837_v23 = vrot.slane %v4706_v22, 6  ;;  %v169_v22 = vld [vmem:[#allocation4 + $0xc0] sm:$0xff] }
 0x86f   :  { %2102 = vmatpush1.msra.mxu1 %v3820_v27  ;;  %2031 = vmatpush1.msra.mxu0 %v3817_v26 }
 0x870   :  { %2103 = vmatprep.subr.mxu1 %v3826_v29  ;;  %2032 = vmatprep.subr.mxu0 %v3823_v28  ;;  %v4707_v28 = vld [vmem:[#allocation14_spill] sm:$0xff] }
 0x871   :  { %2104 = vmatpush1.msra.mxu1 %v3832_v46  ;;  %2033 = vmatpush1.msra.mxu0 %v3829_v33  ;;  %v1836_v29 = vrot.slane %v4707_v28, 6  ;;  %v163_v28 = vld [vmem:[#allocation4 + $0x90] sm:$0xff] }
 0x872   :  { %2105 = vmatprep.subr.mxu1 %v3838_v44  ;;  %2034 = vmatprep.subr.mxu0 %v3835_v31 }
 0x873   :  { %2106 = vmatpush1.msra.mxu1 %v3844_v34  ;;  %2035 = vmatpush1.msra.mxu0 %v3841_v41 }
 0x874   :  { %2107 = vmatprep.subr.mxu1 %v3850_v53  ;;  %2036 = vmatprep.subr.mxu0 %v3847_v39  ;;  %v4708_v39 = vld [vmem:[#allocation15_spill] sm:$0xff] }
 0x875   :  { %2108 = vmatpush1.msra.mxu1 %v3856_v50  ;;  %2037 = vmatpush1.msra.mxu0 %v4683_v57  ;;  %v1838_v53 = vrot.slane %v4708_v39, 6  ;;  %v159_v57 = vld [vmem:[#allocation4 + $0x70] sm:$0xff]  ;;  %v4711_v39 = vld [vmem:[#allocation53_spill] sm:$0xff] }
 0x876   :  { %2109 = vmatprep.subr.mxu1 %v4684_v58  ;;  %2038 = vmatprep.subr.mxu0 %v4685_v1 }
 0x877   :  { %2110 = vmatpush1.msra.mxu1 %v4686_v59  ;;  %2039 = vmatpush1.msra.mxu0 %v4687_v61  ;;  %v157_v59 = vld [vmem:[#allocation4 + $0x60] sm:$0xff]  ;;  %v156_v61 = vld [vmem:[#allocation4 + $0x58] sm:$0xff] }
 0x878   :  { %2111 = vmatprep.subr.mxu1 %v4688_v62  ;;  %2040 = vmatprep.subr.mxu0 %v4689_v63  ;;  %v155_v62 = vld [vmem:[#allocation4 + $0x50] sm:$0xff]  ;;  %v154_v63 = vld [vmem:[#allocation4 + $0x48] sm:$0xff] }
 0x879   :  { %2112 = vmatpush1.msra.mxu1 %v4690_v0  ;;  %2041 = vmatpush1.msra.mxu0 %v4691_v2  ;;  %v152_v0 = vld [vmem:[#allocation4 + $0x38] sm:$0xff]  ;;  %v151_v2 = vld [vmem:[#allocation4 + $0x30] sm:$0xff] }
 0x87a   :  { %2113 = vmatprep.subr.mxu1 %v4692_v37  ;;  %2042 = vmatprep.subr.mxu0 %v4693_v3  ;;  %v150_v37 = vld [vmem:[#allocation4 + $0x28] sm:$0xff]  ;;  %v149_v3 = vld [vmem:[#allocation4 + $0x20] sm:$0xff] }
 0x87b   :  { %2114 = vmatpush1.msra.mxu1 %v4694_v4  ;;  %2043 = vmatpush1.msra.mxu0 %v4695_v5  ;;  %v148_v4 = vld [vmem:[#allocation4 + $0x18] sm:$0xff]  ;;  %v147_v5 = vld [vmem:[#allocation4 + $0x10] sm:$0xff] }
 0x87c   :  { %2115 = vmatprep.subr.mxu1 %v4696_v6  ;;  %2044 = vmatprep.subr.mxu0 %v4697_v7  ;;  %v146_v6 = vld [vmem:[#allocation4 + $0x8] sm:$0xff]  ;;  %v145_v7 = vld [vmem:[#allocation4] sm:$0xff] }
 0x87d   :  { %2116 = vmatpush1.msra.mxu1 %v4698_v8  ;;  %2045 = vmatpush1.msra.mxu0 %v4699_v9  ;;  %v4709_v8 = vld [vmem:[#allocation11_spill] sm:$0xff]  ;;  %v176_v9 = vld [vmem:[#allocation4 + $0xf8] sm:$0xff] }
 0x87e   :  { %2117 = vmatprep.subr.mxu1 %v4700_v10  ;;  %2046 = vmatprep.subr.mxu0 %v4701_v12  ;;  %v175_v10 = vld [vmem:[#allocation4 + $0xf0] sm:$0xff]  ;;  %v174_v12 = vld [vmem:[#allocation4 + $0xe8] sm:$0xff] }
 0x87f   :  { %2118 = vmatpush1.msra.mxu1 %v4702_v15  ;;  %2047 = vmatpush1.msra.mxu0 %v4703_v16  ;;  %v173_v15 = vld [vmem:[#allocation4 + $0xe0] sm:$0xff]  ;;  %v172_v16 = vld [vmem:[#allocation4 + $0xd8] sm:$0xff] }
 0x880   :  { %2080 = vmatprep.mubr.f32.mxu0 %v4704_v17  ;;  %2151 = vmatprep.mubr.f32.mxu1 %v4704_v17 }
 0x881   :  { %2765 = vmatprep.subr.mxu1 %v4704_v17  ;;  %2730 = vmatprep.subr.mxu0 %v4704_v17 }
 0x920   :  { %v1909_v24 = vpop.f32.mrf.mxu0  ;;  %v1980_v25 = vpop.f32.mrf.mxu1 }
 0x921   :  { %v1910_v26 = vadd.f32 %v1909_v24, %v1835_v21  ;;  %v1981_v27 = vadd.f32 %v1980_v25, %v1837_v23  ;;  %v170_v21 = vld [vmem:[#allocation4 + $0xc8] sm:$0xff]  ;;  %v168_v23 = vld [vmem:[#allocation4 + $0xb8] sm:$0xff]  ;;  %v167_v24 = vld [vmem:[#allocation4 + $0xb0] sm:$0xff] }
 0x922   :  { %v1911_v33 = vpop.f32.mrf.mxu0  ;;  %v1982_v34 = vpop.f32.mrf.mxu1  ;;  %v166_v25 = vld [vmem:[#allocation4 + $0xa8] sm:$0xff] }
 0x923   :  { %v2644_v46 = vmul.f32 -1.442695, %v1910_v26  ;;  %v2646_v31 = vmul.f32 -1.442695, %v1981_v27  ;;  %v1912_v44 = vadd.f32 %v1911_v33, %v1836_v29  ;;  %v1983_v50 = vadd.f32 %v1982_v34, %v1838_v53  ;;  %v165_v26 = vld [vmem:[#allocation4 + $0xa0] sm:$0xff]  ;;  %v164_v27 = vld [vmem:[#allocation4 + $0x98] sm:$0xff] }
 0x924   :  { %v162_v29 = vld [vmem:[#allocation4 + $0x88] sm:$0xff]  ;;  %v161_v33 = vld [vmem:[#allocation4 + $0x80] sm:$0xff] }
 0x925   :  { %2955 = vpow2.f32 %v2644_v46  ;;  %v2645_v41 = vmul.f32 -1.442695, %v1912_v44  ;;  %v2647_v40 = vmul.f32 -1.442695, %v1983_v50  ;;  %v4239_v46 = vld [vmem:[#allocation4 + $0x118] sm:$0xff] }
 0x926   :  { %2957 = vpow2.f32 %v2646_v31 }
 0x927   :  { %2959 = vpow2.f32 %v2645_v41  ;;  %v4710_v41 = vld [vmem:[#allocation46_spill] sm:$0xff] }
 0x932   :  { %v2956_v55 = vpop.eup %2955 }
 0x933   :  { %v2958_v36 = vpop.eup %2957  ;;  %v1997_v13 = vadd.f32 1.0, %v2956_v55 }
 0x934   :  { %v2960_v35 = vpop.eup %2959  ;;  %v1999_v30 = vadd.f32 1.0, %v2958_v36 }
 0x935   :  { %v1998_v52 = vadd.f32 1.0, %v2960_v35 }
 0x936   :  { %2961 = vrcp.f32 %v1999_v30 }
 0x937   :  { %2963 = vpow2.f32 %v2647_v40  ;;  %v4712_v40 = vld [vmem:[#allocation45_spill] sm:$0xff] }
 0x938   :  { %2965 = vrcp.f32 %v1998_v52 }
 0x939   :  { %2967 = vrcp.f32 %v1997_v13  ;;  %v4713_v13 = vld [vmem:[#allocation55_spill] sm:$0xff] }
 0x943   :  { %v2962_v38 = vpop.eup %2961 }
 0x944   :  { %v2964_v49 = vpop.eup %2963  ;;  %v2009_v56 = vmul.f32 2.0, %v2962_v38 }
 0x945   :  { %v2966_v45 = vpop.eup %2965  ;;  %v2000_v48 = vadd.f32 1.0, %v2964_v49 }
 0x946   :  { %v2648_v32 = vadd.f32 -1.0, %v2009_v56  ;;  %v2968_v43 = vpop.eup %2967  ;;  %v2011_v51 = vmul.f32 %v2966_v45, %v4116_v42  ;;  %v158_v42 = vld [vmem:[#allocation4 + $0x68] sm:$0xff] }
 0x947   :  { %2969 = vrcp.f32 %v2000_v48 }
 0x948   :  { %v2012_v47 = vmul.f32 %v2968_v43, %v2648_v32 }
 0x94a   :  { %v4196_v19 = vadd.f32 %v2012_v47, %v2011_v51 }
 0x94c   :  { %2971 = vtanh.f32 %v4196_v19 }
 0x954   :  { %v2970_v11 = vpop.eup %2969 }
 0x959   :  { %v2972_v60 = vpop.eup %2971 }
 0x95a   :  { %v2015_v14 = vmul.f32 %v2972_v60, %v2970_v11 }
 0x95c   :  { %2081 = vmatmul.mubr.f32.vlgmr.msra.gmra.mxu0 %v2015_v14  ;;  %2152 = vmatmul.mubr.f32.vlgmr.msra.gmra.mxu1 %v2015_v14  ;;  %v2283_v58 = vrot.slane %v2015_v14, 2 }
 0x95d   :  { %2766 = vmatpush3.msra.mxu1 %v160_v54  ;;  %2797 = vmatprep.mubr.msk.f32.mxu1 %vm3107_vm8, %v4704_v17 }
 0x95e   :  { %2767 = vmatprep.subr.mxu1 %v4704_v17  ;;  %v2293_v1 = vsel %vm2289_vm7, %v4127_v20, %v2283_v58  ;;  %2762 = vmatprep.mubr.msk.f32.mxu0 %vm3107_vm8, %v4704_v17  ;;  %v153_v20 = vld [vmem:[#allocation4 + $0x40] sm:$0xff] }
 0x95f   :  { %2768 = vmatpush3.msra.mxu1 %v159_v57  ;;  %2731 = vmatpush3.msra.mxu0 %v176_v9 }
 0x960   :  { %2769 = vmatprep.subr.mxu1 %v4704_v17  ;;  %2732 = vmatprep.subr.mxu0 %v4704_v17 }
 0x961   :  { %2770 = vmatpush3.msra.mxu1 %v158_v42  ;;  %2733 = vmatpush3.msra.mxu0 %v175_v10 }
 0x962   :  { %2771 = vmatprep.subr.mxu1 %v4704_v17  ;;  %2734 = vmatprep.subr.mxu0 %v4704_v17 }
 0x963   :  { %2772 = vmatpush3.msra.mxu1 %v157_v59  ;;  %2735 = vmatpush3.msra.mxu0 %v174_v12 }
 0x964   :  { %2773 = vmatprep.subr.mxu1 %v4704_v17  ;;  %2736 = vmatprep.subr.mxu0 %v4704_v17 }
 0x965   :  { %2774 = vmatpush3.msra.mxu1 %v156_v61  ;;  %2737 = vmatpush3.msra.mxu0 %v173_v15  ;;  %v4715_v15 = vld [vmem:[#allocation43_spill] sm:$0xff] }
 0x966   :  { %2775 = vmatprep.subr.mxu1 %v4704_v17  ;;  %2738 = vmatprep.subr.mxu0 %v4704_v17 }
 0x967   :  { %2776 = vmatpush3.msra.mxu1 %v155_v62  ;;  %2739 = vmatpush3.msra.mxu0 %v172_v16 }
 0x968   :  { %2777 = vmatprep.subr.mxu1 %v4704_v17  ;;  %2740 = vmatprep.subr.mxu0 %v4704_v17 }
 0x969   :  { %2778 = vmatpush3.msra.mxu1 %v154_v63  ;;  %2741 = vmatpush3.msra.mxu0 %v171_v18 }
 0x96a   :  { %2779 = vmatprep.subr.mxu1 %v4704_v17  ;;  %2742 = vmatprep.subr.mxu0 %v4704_v17 }
 0x96b   :  { %2780 = vmatpush3.msra.mxu1 %v153_v20  ;;  %2743 = vmatpush3.msra.mxu0 %v170_v21  ;;  %v179_v21 = vld [vmem:[#allocation4 + $0x110] sm:$0xff] }
 0x96c   :  { %2781 = vmatprep.subr.mxu1 %v4704_v17  ;;  %2744 = vmatprep.subr.mxu0 %v4704_v17 }
 0x96d   :  { %2782 = vmatpush3.msra.mxu1 %v152_v0  ;;  %2745 = vmatpush3.msra.mxu0 %v169_v22  ;;  %v4716_v22 = vld [vmem:[#allocation10_spill] sm:$0xff] }
 0x96e   :  { %2783 = vmatprep.subr.mxu1 %v4704_v17  ;;  %2746 = vmatprep.subr.mxu0 %v4704_v17 }
 0x96f   :  { %2784 = vmatpush3.msra.mxu1 %v151_v2  ;;  %2747 = vmatpush3.msra.mxu0 %v168_v23  ;;  %v178_v23 = vld [vmem:[#allocation4 + $0x108] sm:$0xff] }
 0x970   :  { %2785 = vmatprep.subr.mxu1 %v4704_v17  ;;  %2748 = vmatprep.subr.mxu0 %v4704_v17 }
 0x971   :  { %2786 = vmatpush3.msra.mxu1 %v150_v37  ;;  %2749 = vmatpush3.msra.mxu0 %v167_v24  ;;  %v177_v24 = vld [vmem:[#allocation4 + $0x100] sm:$0xff] }
 0x972   :  { %2787 = vmatprep.subr.mxu1 %v4704_v17  ;;  %2750 = vmatprep.subr.mxu0 %v4704_v17 }
 0x973   :  { %2788 = vmatpush3.msra.mxu1 %v149_v3  ;;  %2751 = vmatpush3.msra.mxu0 %v166_v25 }
 0x974   :  { %2789 = vmatprep.subr.mxu1 %v4704_v17  ;;  %2752 = vmatprep.subr.mxu0 %v4704_v17 }
 0x975   :  { %2790 = vmatpush3.msra.mxu1 %v148_v4  ;;  %2753 = vmatpush3.msra.mxu0 %v165_v26 }
 0x976   :  { %2791 = vmatprep.subr.mxu1 %v4704_v17  ;;  %2754 = vmatprep.subr.mxu0 %v4704_v17 }
 0x977   :  { %2792 = vmatpush3.msra.mxu1 %v147_v5  ;;  %2755 = vmatpush3.msra.mxu0 %v164_v27 }
 0x978   :  { %2793 = vmatprep.subr.mxu1 %v4704_v17  ;;  %2756 = vmatprep.subr.mxu0 %v4704_v17 }
 0x979   :  { %2794 = vmatpush3.msra.mxu1 %v146_v6  ;;  %2757 = vmatpush3.msra.mxu0 %v163_v28  ;;  %v4714_v6 = vld [vmem:[#allocation8_spill] sm:$0xff] }
 0x97a   :  { %2795 = vmatprep.subr.mxu1 %v4704_v17  ;;  %2758 = vmatprep.subr.mxu0 %v4704_v17  ;;  %vm700_vm9 = vcmp.ge.s32.totalorder %v4714_v6, 64  ;;  %vm701_vm10 = vcmp.lt.s32.totalorder %v4714_v6, 96  ;;  %vm705_vm12 = vcmp.ge.s32.totalorder %v4714_v6, 96 }
 0x97b   :  { %2796 = vmatpush3.msra.mxu1 %v145_v7  ;;  %2759 = vmatpush3.msra.mxu0 %v162_v29  ;;  %vm702_vm11 = vmand %vm700_vm9, %vm701_vm10  ;;  %v2608_v9 = vsel %vm705_vm12, 1.0, %v4704_v17 }
 0x97c   :  { %2798 = vmatmul.mubr.f32.vlgmr.msra.gmra.mxu1 %v4709_v8  ;;  %2760 = vmatprep.subr.mxu0 %v4704_v17  ;;  %v2607_v8 = vsel %vm702_vm11, 1.0, %v4704_v17  ;;  %v2190_v16 = vmul.f32 %v2608_v9, %v4715_v15 }
 0x97d   :  { %2800 = vmatprep.mubr.msk.f32.mxu1 %vm3107_vm8, %v4704_v17  ;;  %2761 = vmatpush3.msra.mxu0 %v161_v33 }
 0x97e   :  { %2806 = vmatprep.subr.mxu0 %v4239_v46 }
 0x980   :  { %2801 = vmatmul.mubr.f32.gmra.mxu1 %v2293_v1 }
 0x981   :  { %2803 = vmatprep.mubr.msk.f32.mxu1 %vm3107_vm8, %v4704_v17  ;;  %v4717_v17 = vld [vmem:[#allocation9_spill] sm:$0xff] }
 0xa1c   :  { %v2082_v31 = vpop.f32.mrf.mxu0  ;;  %v2153_v44 = vpop.f32.mrf.mxu1 }
 0xa1d   :  { %v2083_v34 = vadd.f32 %v2082_v31, %v4710_v41  ;;  %v2154_v53 = vadd.f32 %v2153_v44, %v4711_v39 }
 0xa1e   :  { %v2084_v50 = vpop.f32.mrf.mxu0  ;;  %v2155_v52 = vpop.f32.mrf.mxu1 }
 0xa1f   :  { %v2649_v55 = vmul.f32 -1.442695, %v2083_v34  ;;  %v2651_v36 = vmul.f32 -1.442695, %v2154_v53  ;;  %v2085_v35 = vadd.f32 %v2084_v50, %v4712_v40  ;;  %v2156_v38 = vadd.f32 %v2155_v52, %v4713_v13 }
 0xa21   :  { %2973 = vpow2.f32 %v2649_v55  ;;  %v2650_v30 = vmul.f32 -1.442695, %v2085_v35  ;;  %v2652_v45 = vmul.f32 -1.442695, %v2156_v38 }
 0xa22   :  { %2975 = vpow2.f32 %v2651_v36 }
 0xa23   :  { %2977 = vpow2.f32 %v2650_v30 }
 0xa2e   :  { %v2974_v49 = vpop.eup %2973 }
 0xa2f   :  { %v2976_v56 = vpop.eup %2975  ;;  %v2170_v47 = vadd.f32 1.0, %v2974_v49  ;;  %v2657_v49 = vld [vmem:[#allocation4 + $0x128] ss:$0 sm:$0xff] }
 0xa30   :  { %v2978_v32 = vpop.eup %2977  ;;  %v2172_v43 = vadd.f32 1.0, %v2976_v56 }
 0xa31   :  { %v2171_v48 = vadd.f32 1.0, %v2978_v32 }
 0xa32   :  { %2979 = vrcp.f32 %v2172_v43 }
 0xa33   :  { %2981 = vpow2.f32 %v2652_v45 }
 0xa34   :  { %2983 = vrcp.f32 %v2171_v48 }
 0xa35   :  { %2985 = vrcp.f32 %v2170_v47 }
 0xa3c   :  { %v4247_v51 = vpop.f32.mrf.mxu1 }
 0xa3d   :  { %v2457_v11 = vrot.slane %v4247_v51, 2  ;;  %v2500_v1 = vrot.slane %v4247_v51, 6  ;;  %v2514_v37 = vrot.slane %v4247_v51, 4 }
 0xa3e   :  { %v2799_v60 = vpop.f32.mrf.mxu1 }
 0xa3f   :  { %v2980_v14 = vpop.eup %2979  ;;  %2458 = vrot.lane.b32.xlu0 %v2457_v11, %s3108_s1  ;;  %2509 = vrot.lane.b32.xlu1 %v2457_v11, %s3109_s25 }
 0xa40   :  { %v2982_v54 = vpop.eup %2981  ;;  %v2182_v57 = vmul.f32 2.0, %v2980_v14  ;;  %v4252_v58 = vpop.f32.mrf.mxu1 }
 0xa41   :  { %v2984_v42 = vpop.eup %2983  ;;  %v2451_v59 = vrot.slane %v4252_v58, 6  ;;  %v2173_v20 = vadd.f32 1.0, %v2982_v54  ;;  %v2479_v3 = vrot.slane %v4252_v58, 4  ;;  %v2473_v5 = vrot.slane %v4252_v58, 2 }
 0xa42   :  { %v2653_v61 = vadd.f32 -1.0, %v2182_v57  ;;  %v2802_v62 = vpop.f32.mrf.mxu1  ;;  %v2986_v63 = vpop.eup %2985  ;;  %v2184_v2 = vmul.f32 %v2984_v42, %v4196_v19 }
 0xa43   :  { %2501 = vrot.lane.b32.xlu1 %v2500_v1, %s3109_s25  ;;  %2452 = vrot.lane.b32.xlu0 %v2451_v59, %s3109_s25  ;;  %2987 = vrcp.f32 %v2173_v20 }
 0xa44   :  { %v2185_v0 = vmul.f32 %v2986_v63, %v2653_v61 }
 0xa46   :  { %v2186_v4 = vadd.f32 %v2185_v0, %v2184_v2 }
 0xa47   :  { %2515 = vrot.lane.b32.xlu1 %v2514_v37, %s3101_s22  ;;  %2480 = vrot.lane.b32.xlu0 %v2479_v3, %s3101_s22 }
 0xa48   :  { %2989 = vtanh.f32 %v2186_v4 }
 0xa4b   :  { %2474 = vrot.lane.b32.xlu1 %v2473_v5, %s3109_s25 }
 0xa4f   :  { %2492 = vrot.lane.b32.xlu1 %v2473_v5, %s3108_s1 }
 0xa50   :  { %v2988_v19 = vpop.eup %2987 }
 0xa53   :  { %2486 = vrot.lane.b32.xlu1 %v4252_v58, %s3101_s22 }
 0xa55   :  { %v2990_v7 = vpop.eup %2989 }
 0xa56   :  { %v2188_v10 = vmul.f32 %v2990_v7, %v2988_v19 }
 0xa58   :  { %v2189_v12 = vmul.f32 %v2607_v8, %v2188_v10  ;;  %2804 = vmatmul.mubr.f32.gmra.mxu1 %v2188_v10 }
 0xa5a   :  { %v2191_v18 = vadd.f32 %v2190_v16, %v2189_v12 }
 0xa5c   :  { %2763 = vmatmul.mubr.f32.vlgmr.msra.gmra.mxu0 %v2191_v18 }
 0xa5d   :  { %2807 = vmatpush3.msra.mxu0 %v4239_v46  ;;  %2814 = vmatprep.mubr.msk.f32.mxu0 %vm289_vm3, %v4716_v22  ;;  %v2654_v46 = vld [vmem:[#allocation4 + $0x120] ss:$0 sm:$0xff] }
 0xa5e   :  { %2808 = vmatprep.subr.mxu0 %v179_v21 }
 0xa5f   :  { %2809 = vmatpush3.msra.mxu0 %v179_v21 }
 0xa60   :  { %2810 = vmatprep.subr.mxu0 %v178_v23 }
 0xa61   :  { %2811 = vmatpush3.msra.mxu0 %v178_v23 }
 0xa62   :  { %2812 = vmatprep.subr.mxu0 %v177_v24 }
 0xa63   :  { %2813 = vmatpush3.msra.mxu0 %v177_v24 }
 0xa64   :  { %2815 = vmatmul.mubr.msk.f32.vlgmr.msra.gmra.mxu0 %vm289_vm3, %v4717_v17 }
 0xab1   :  { %v2510_v25 = vpop.permute.xlu1 %2509  ;;  %v2459_v34 = vpop.permute.xlu0 %2458 }
 0xab5   :  { %v2502_v26 = vpop.permute.xlu1 %2501  ;;  %v2453_v50 = vpop.permute.xlu0 %2452 }
 0xab9   :  { %v2516_v29 = vpop.permute.xlu1 %2515  ;;  %v2481_v48 = vpop.permute.xlu0 %2480 }
 0xabd   :  { %v2475_v39 = vpop.permute.xlu1 %2474 }
 0xac1   :  { %v2493_v36 = vpop.permute.xlu1 %2492 }
 0xac5   :  { %v2487_v47 = vpop.permute.xlu1 %2486 }
 0xb18   :  { %v2370_v27 = vpop.f32.mrf.mxu1 }
 0xb19   :  { %v2527_v28 = vrot.slane %v2370_v27, 2  ;;  %2463 = vrot.lane.b32.xlu1 %v2370_v27, %s3101_s22 }
 0xb1a   :  { %v2805_v33 = vpop.f32.mrf.mxu1 }
 0xb1b   :  { %2528 = vrot.lane.b32.xlu0 %v2527_v28, %s3108_s1 }
 0xb1c   :  { %v2262_v31 = vpop.f32.mrf.mxu0 }
 0xb1d   :  { %v2263_v44 = vadd.f32 %v2654_v46, %v2262_v31 }
 0xb1e   :  { %v2764_v41 = vpop.f32.mrf.mxu0 }
 0xb1f   :  { %2266 = vst [vmem:[%s4305_s4] sm:$0x3] %v2263_v44  ;;  %2521 = vrot.lane.b32.xlu0 %v4247_v51, %s3101_s22 }
 0xb24   :  { %v2816_v53 = vpop.f32.mrf.mxu0 }
 0xb25   :  { %v2499_v55 = vadd.f32 %v2816_v53, %v4252_v58 }
 0xb26   :  { %v2440_v40 = vpop.f32.mrf.mxu0 }
 0xb27   :  { %v2512_v35 = vadd.f32 %v2510_v25, %v2499_v55  ;;  %v2449_v30 = vadd.f32 %v2440_v40, %v4247_v51  ;;  %v2504_v2 = vadd.f32 %v2502_v26, %v2499_v55 }
 0xb29   :  { %v2513_v52 = vadd.f32 %v2512_v35, %v2493_v36  ;;  %v2455_v13 = vadd.f32 %v2453_v50, %v2449_v30  ;;  %v2477_v38 = vadd.f32 %v2475_v39, %v2449_v30  ;;  %v2505_v5 = vadd.f32 %v2504_v2, %v2493_v36 }
 0xb2b   :  { %v2461_v56 = vadd.f32 %v2459_v34, %v2455_v13  ;;  %v2478_v45 = vadd.f32 %v2477_v38, %v2459_v34  ;;  %v2495_v32 = vadd.f32 %v2493_v36, %v2477_v38  ;;  %v2518_v43 = vadd.f32 %v2516_v29, %v2513_v52 }
 0xb2c   :  { %v2506_v22 = vadd.f32 %v2505_v5, %v2487_v47 }
 0xb2d   :  { %v2489_v11 = vadd.f32 %v2487_v47, %v2461_v56  ;;  %v2519_v60 = vadd.f32 %v2657_v49, %v2518_v43  ;;  %v2483_v14 = vadd.f32 %v2481_v48, %v2478_v45  ;;  %v2496_v54 = vadd.f32 %v2495_v32, %v2481_v48 }
 0xb2e   :  { %v2507_v25 = vadd.f32 %v2657_v49, %v2506_v22 }
 0xb2f   :  { %v2520_v57 = vmax.f32 %v2519_v60, 0.0  ;;  %v2484_v58 = vadd.f32 %v2657_v49, %v2483_v14  ;;  %v2490_v42 = vadd.f32 %v2657_v49, %v2489_v11  ;;  %v2497_v62 = vadd.f32 %v2657_v49, %v2496_v54 }
 0xb30   :  { %v2508_v28 = vmax.f32 %v2507_v25, 0.0 }
 0xb31   :  { %v2551_v1 = vrot.slane %v2520_v57, 2  ;;  %v2485_v59 = vmax.f32 %v2484_v58, 0.0  ;;  %v2491_v61 = vmax.f32 %v2490_v42, 0.0  ;;  %v2498_v20 = vmax.f32 %v2497_v62, 0.0 }
 0xb33   :  { %2552 = vrot.lane.b32.xlu1 %v2551_v1, %s3101_s22  ;;  %v2536_v51 = vrot.slane %v2485_v59, 2  ;;  %v2541_v63 = vrot.slane %v2491_v61, 4  ;;  %v2546_v0 = vrot.slane %v2498_v20, 6 }
 0xb35   :  { %2537 = vrot.lane.b32.xlu0 %v2536_v51, %s3101_s22 }
 0xb39   :  { %2542 = vrot.lane.b32.xlu0 %v2541_v63, %s3108_s1 }
 0xb3d   :  { %2547 = vrot.lane.b32.xlu0 %v2546_v0, %s3109_s25 }
 0xb8b   :  { %v2464_v16 = vpop.permute.xlu1 %2463 }
 0xb8c   :  { %v2466_v21 = vadd.f32 %v2464_v16, %v2461_v56 }
 0xb8d   :  { %v2529_v37 = vpop.permute.xlu0 %2528 }
 0xb8e   :  { %v2531_v3 = vadd.f32 %v2529_v37, %v2512_v35  ;;  %v2471_v17 = vadd.f32 %v2657_v49, %v2466_v21 }
 0xb90   :  { %v2532_v4 = vadd.f32 %v2531_v3, %v2516_v29  ;;  %v2472_v27 = vmax.f32 %v2471_v17, 0.0 }
 0xb91   :  { %v2522_v6 = vpop.permute.xlu0 %2521 }
 0xb92   :  { %v2524_v19 = vadd.f32 %v2522_v6, %v2505_v5  ;;  %v2533_v7 = vadd.f32 %v2657_v49, %v2532_v4 }
 0xb94   :  { %v2525_v8 = vadd.f32 %v2657_v49, %v2524_v19  ;;  %v2534_v12 = vmax.f32 %v2533_v7, 0.0 }
 0xb96   :  { %v2526_v9 = vmax.f32 %v2525_v8, 0.0  ;;  %v2561_v15 = vrot.slane %v2534_v12, 6 }
 0xb98   :  { %v2556_v10 = vrot.slane %v2526_v9, 4 }
 0xb9a   :  { %2557 = vrot.lane.b32.xlu1 %v2556_v10, %s3108_s1 }
 0xb9e   :  { %2562 = vrot.lane.b32.xlu1 %v2561_v15, %s3109_s25 }
 0xba5   :  { %v2553_v23 = vpop.permute.xlu1 %2552 }
 0xba6   :  { %v2569_v33 = vsel %vm289_vm3, %v2508_v28, %v2553_v23 }
 0xba7   :  { %v2538_v18 = vpop.permute.xlu0 %2537 }
 0xba8   :  { %v2565_v46 = vsel %vm289_vm3, %v2472_v27, %v2538_v18 }
 0xbab   :  { %v2543_v24 = vpop.permute.xlu0 %2542 }
 0xbac   :  { %v2566_v31 = vsel %vm207_vm0, %v2565_v46, %v2543_v24 }
 0xbaf   :  { %v2548_v29 = vpop.permute.xlu0 %2547 }
 0xbb0   :  { %v2568_v34 = vsel %vm2567_vm13, %v2566_v31, %v2548_v29 }
 0xc0c   :  { %v2558_v26 = vpop.permute.xlu1 %2557 }
 0xc0d   :  { %v2570_v44 = vsel %vm207_vm0, %v2569_v33, %v2558_v26 }
 0xc10   :  { %v2563_v41 = vpop.permute.xlu1 %2562 }
 0xc11   :  { %v2571_v39 = vsel %vm2567_vm13, %v2570_v44, %v2563_v41 }
 0xc12   :  { %v2574_v53 = vcombine.low %v2568_v34, %v2571_v39 }
 0xc14   :  { %2658 = vst.sshfl [vmem:[%s4306_s5] sm:$0x33 pattern:$0x76325410] %v2574_v53 }
 0xc15   :  { %2592 = vsyncpa [#allocation3], 1 }
 0xc16   :  { %2593 = vsyncpa [#allocation5], 1 }

</bundles_post_ra>
